<compile_context>
chip_gen: v6e
topology: v6e:2x2x1
jax: 0.10.0
libtpu: 0.0.40
codegen_flags: <defaults>
</compile_context>

<pallas_src>
import math
import jax
import jax.numpy as jnp
from jax import lax
from jax.experimental import pallas as pl
from jax.experimental.pallas import tpu as pltpu

# ---- small, module-consistent shapes ----
B, S, F = 2, 8, 16          # batch, seq, num_features
D_MODEL = 32
N_HEADS = 4
D_FF = 64
N_LAYERS = 2
D_HEAD = D_MODEL // N_HEADS
BS = B * S

assert D_FF == 2 * D_MODEL  # packing splits W1 / W2 into two (D_MODEL, D_MODEL) blocks


# ----------------- in-kernel helpers -----------------
def _ln_custom(h, g, b, eps=1e-6):
    # masformer LayerNorm: unbiased std (Bessel), (x - mean) / (std + eps)
    mean = jnp.mean(h, axis=-1, keepdims=True)
    n = h.shape[-1]
    var = jnp.sum((h - mean) ** 2, axis=-1, keepdims=True) / (n - 1)
    return g * (h - mean) / (jnp.sqrt(var) + eps) + b


def _ln_torch(h, g, b, eps=1e-5):
    # nn.LayerNorm: biased var, /sqrt(var+eps)
    mean = jnp.mean(h, axis=-1, keepdims=True)
    var = jnp.mean((h - mean) ** 2, axis=-1, keepdims=True)
    return g * (h - mean) / jnp.sqrt(var + eps) + b


def _softmax_last(s):
    s = s - jnp.max(s, axis=-1, keepdims=True)
    e = jnp.exp(s)
    # approx reciprocal runs on the (otherwise idle) EUP slot; |rel err| ~2^-12
    return e * pl.reciprocal(jnp.sum(e, axis=-1, keepdims=True), approx=True)


def _sigmoid(x):
    # numerically stable sigmoid (tanh form) — no exp overflow for large |x|
    return 0.5 * (jnp.tanh(0.5 * x) + 1.0)


# ----------------- kernel -----------------
def masformer_kernel(x_ref, pe_ref, we_ref, ev_ref, lw_ref, lv_ref,
                     wf1_ref, fv_ref, out_ref, attn_scr):
    # ---- SrcEmbed on the flattened (B*S, F) slab ----
    h = jnp.dot(x_ref[...], we_ref[...],
                preferred_element_type=jnp.float32) + ev_ref[0]
    h = _ln_custom(h, ev_ref[1], ev_ref[2])

    # ---- PositionalEncoding (dropout == identity in eval) ----
    h = h + pe_ref[...]

    # ---- encoder stack (post-norm nn.TransformerEncoderLayer) ----
    for l in range(N_LAYERS):
        wq, wk, wv, wo = lw_ref[l, 0], lw_ref[l, 1], lw_ref[l, 2], lw_ref[l, 3]
        w1a, w1b, w2a, w2b = lw_ref[l, 4], lw_ref[l, 5], lw_ref[l, 6], lw_ref[l, 7]
        bq, bk, bv, bo = lv_ref[l, 0], lv_ref[l, 1], lv_ref[l, 2], lv_ref[l, 3]
        b1a, b1b, b2 = lv_ref[l, 4], lv_ref[l, 5], lv_ref[l, 6]
        ln1_g, ln1_b = lv_ref[l, 7], lv_ref[l, 8]
        ln2_g, ln2_b = lv_ref[l, 9], lv_ref[l, 10]

        # q/k/v projections over the whole (B*S, d_model) slab
        # (1/sqrt(d_head) already folded into wq / bq on the host)
        q = jnp.dot(h, wq, preferred_element_type=jnp.float32) + bq
        k = jnp.dot(h, wk, preferred_element_type=jnp.float32) + bk
        v = jnp.dot(h, wv, preferred_element_type=jnp.float32) + bv

        # per-(batch, head) attention; head context is written straight into
        # the (B*S, d_model) VMEM scratch (no concatenate / list append).
        for b in range(B):
            r0 = b * S
            qb, kb, vb = q[r0:r0 + S], k[r0:r0 + S], v[r0:r0 + S]
            for hh in range(N_HEADS):
                c0 = hh * D_HEAD
                qh = qb[:, c0:c0 + D_HEAD]
                kh = kb[:, c0:c0 + D_HEAD]
                vh = vb[:, c0:c0 + D_HEAD]
                # (S, dh) . (S, dh)^T  ->  (S, S) scores, no explicit transpose
                sc = lax.dot_general(qh, kh, (((1,), (1,)), ((), ())),
                                     preferred_element_type=jnp.float32)
                p = _softmax_last(sc)
                attn_scr[r0:r0 + S, c0:c0 + D_HEAD] = jnp.dot(
                    p, vh, preferred_element_type=jnp.float32)

        # single output projection over the whole slab
        attn = jnp.dot(attn_scr[...], wo,
                       preferred_element_type=jnp.float32) + bo
        h = _ln_torch(h + attn, ln1_g, ln1_b)

        # feed-forward (relu); W1/W2 stored as two (d_model, d_model) blocks
        ffa = jnp.maximum(
            jnp.dot(h, w1a, preferred_element_type=jnp.float32) + b1a, 0.0)
        ffb = jnp.maximum(
            jnp.dot(h, w1b, preferred_element_type=jnp.float32) + b1b, 0.0)
        ff = (jnp.dot(ffa, w2a, preferred_element_type=jnp.float32)
              + jnp.dot(ffb, w2b, preferred_element_type=jnp.float32) + b2)
        h = _ln_torch(h + ff, ln2_g, ln2_b)

    # ---- TranFinalLayer: Linear -> relu -> custom LN -> Linear(1) -> sigmoid ----
    hf = jnp.maximum(
        jnp.dot(h, wf1_ref[...], preferred_element_type=jnp.float32) + fv_ref[0],
        0.0)
    hf = _ln_custom(hf, fv_ref[1], fv_ref[2])
    w2_row = fv_ref[3]                 # (1, d_model//2)
    b2_fin = fv_ref[4][:, 0:1]         # (1, 1)
    for b in range(B):
        hf_b = hf[b * S:(b + 1) * S]   # (S, d_model//2)
        # (1, dh) . (S, dh)^T -> lane-dense (1, S) row of logits
        logit = lax.dot_general(w2_row, hf_b, (((1,), (1,)), ((), ())),
                                preferred_element_type=jnp.float32) + b2_fin
        out_ref[b:b + 1, :] = _sigmoid(logit)


# ----------------- glue: params, packing, PE, pallas_call -----------------
def init_params(key):
    ks = iter(jax.random.split(key, 64))

    def lin_w(i, o):
        bound = 1.0 / math.sqrt(i)
        return jax.random.uniform(next(ks), (i, o), jnp.float32, -bound, bound)

    def lin_b(i, shape):
        bound = 1.0 / math.sqrt(i)
        return jax.random.uniform(next(ks), shape, jnp.float32, -bound, bound)

    p = {}
    p["we"] = lin_w(F, D_MODEL)
    p["be"] = lin_b(F, (D_MODEL,))
    p["lne_g"] = jnp.ones((D_MODEL,), jnp.float32)
    p["lne_b"] = jnp.zeros((D_MODEL,), jnp.float32)

    p["wqkv"] = jnp.stack([lin_w(D_MODEL, 3 * D_MODEL) for _ in range(N_LAYERS)])
    p["bqkv"] = jnp.stack([lin_b(D_MODEL, (3 * D_MODEL,)) for _ in range(N_LAYERS)])
    p["wo"] = jnp.stack([lin_w(D_MODEL, D_MODEL) for _ in range(N_LAYERS)])
    p["bo"] = jnp.stack([lin_b(D_MODEL, (D_MODEL,)) for _ in range(N_LAYERS)])
    p["ln1_g"] = jnp.ones((N_LAYERS, D_MODEL), jnp.float32)
    p["ln1_b"] = jnp.zeros((N_LAYERS, D_MODEL), jnp.float32)
    p["ln2_g"] = jnp.ones((N_LAYERS, D_MODEL), jnp.float32)
    p["ln2_b"] = jnp.zeros((N_LAYERS, D_MODEL), jnp.float32)
    p["w1"] = jnp.stack([lin_w(D_MODEL, D_FF) for _ in range(N_LAYERS)])
    p["b1"] = jnp.stack([lin_b(D_MODEL, (D_FF,)) for _ in range(N_LAYERS)])
    p["w2"] = jnp.stack([lin_w(D_FF, D_MODEL) for _ in range(N_LAYERS)])
    p["b2"] = jnp.stack([lin_b(D_FF, (D_MODEL,)) for _ in range(N_LAYERS)])

    p["wf1"] = lin_w(D_MODEL, D_MODEL // 2)
    p["bf1"] = lin_b(D_MODEL, (D_MODEL // 2,))
    p["lnf_g"] = jnp.ones((D_MODEL // 2,), jnp.float32)
    p["lnf_b"] = jnp.zeros((D_MODEL // 2,), jnp.float32)
    p["wf2"] = lin_w(D_MODEL // 2, 1)
    p["bf2"] = lin_b(D_MODEL // 2, (1,))
    return p


def pack_params(p):
    """Pack the 22 parameter arrays into 6 contiguous slabs (fewer, bigger DMAs)."""
    scale = 1.0 / math.sqrt(D_HEAD)
    Dm = D_MODEL

    lw, lv = [], []
    for l in range(N_LAYERS):
        wqkv, bqkv = p["wqkv"][l], p["bqkv"][l]
        w1, b1, w2 = p["w1"][l], p["b1"][l], p["w2"][l]
        lw.append(jnp.stack([
            wqkv[:, :Dm] * scale,            # Wq (1/sqrt(d_head) folded in)
            wqkv[:, Dm:2 * Dm],              # Wk
            wqkv[:, 2 * Dm:],                # Wv
            p["wo"][l],                      # Wo
            w1[:, :Dm], w1[:, Dm:],          # W1 -> two (Dm, Dm) blocks
            w2[:Dm, :], w2[Dm:, :],          # W2 -> two (Dm, Dm) blocks
        ]))
        lv.append(jnp.stack([
            bqkv[:Dm] * scale, bqkv[Dm:2 * Dm], bqkv[2 * Dm:],
            p["bo"][l],
            b1[:Dm], b1[Dm:], p["b2"][l],
            p["ln1_g"][l], p["ln1_b"][l],
            p["ln2_g"][l], p["ln2_b"][l],
        ])[:, None, :])
    layer_w = jnp.stack(lw)                                          # (L, 8, Dm, Dm)
    layer_v = jnp.stack(lv)                                          # (L, 11, 1, Dm)

    emb_v = jnp.stack([p["be"], p["lne_g"], p["lne_b"]])[:, None, :]  # (3, 1, Dm)

    dh = D_MODEL // 2
    fin_v = jnp.stack([
        p["bf1"], p["lnf_g"], p["lnf_b"],
        p["wf2"][:, 0],                      # final 1-wide matmul as a row vector
        jnp.full((dh,), p["bf2"][0]),        # final bias broadcast across lanes
    ])[:, None, :]                                                   # (5, 1, dh)

    return p["we"], emb_v, layer_w, layer_v, p["wf1"], fin_v


def positional_encoding(seq_len, d_model):
    pos = jnp.arange(seq_len, dtype=jnp.float32)[:, None]
    div = jnp.exp(jnp.arange(0, d_model, 2, dtype=jnp.float32)
                  * (-math.log(10000.0) / d_model))
    pe = jnp.zeros((seq_len, d_model), jnp.float32)
    pe = pe.at[:, 0::2].set(jnp.sin(pos * div))
    pe = pe.at[:, 1::2].set(jnp.cos(pos * div))
    return pe


def masformer_forward(x, params):
    pe2 = jnp.tile(positional_encoding(S, D_MODEL), (B, 1))   # (B*S, d_model)
    we, emb_v, layer_w, layer_v, wf1, fin_v = pack_params(params)
    x2 = x.reshape(BS, F)

    # Single invocation (no grid): everything fits in VMEM many times over, so
    # the whole batch is processed in one call and all slabs are copied once.
    # For production batch sizes one would add a leading batch-block grid
    # (>=128 rows/block) marked "parallel" (2 TensorCores on v7x).
    out = pl.pallas_call(
        masformer_kernel,
        out_shape=jax.ShapeDtypeStruct((B, S), jnp.float32),
        scratch_shapes=[pltpu.VMEM((BS, D_MODEL), jnp.float32)],
    )(x2, pe2, we, emb_v, layer_w, layer_v, wf1, fin_v)
    return out   # (B, S) — matches torch.sigmoid(x.squeeze(-1))


if __name__ == "__main__":
    key = jax.random.PRNGKey(0)
    k_x, k_p = jax.random.split(key)
    x = jax.random.normal(k_x, (B, S, F), jnp.float32)
    params = init_params(k_p)

    y = jax.jit(masformer_forward)(x, params)
    y = jax.block_until_ready(y)
    assert y.shape == (B, S)
    assert bool(jnp.all(jnp.isfinite(y)))
    assert bool(jnp.all((y >= 0.0) & (y <= 1.0)))
    print("KERNEL_OK")
</pallas_src>

<mosaic_0001>
module attributes {stable_mosaic.version = 11 : i64} {
  func.func @masformer_kernel(%arg0: memref<16x16xf32, #tpu.memory_space<vmem>>, %arg1: memref<16x32xf32, #tpu.memory_space<vmem>>, %arg2: memref<16x32xf32, #tpu.memory_space<vmem>>, %arg3: memref<3x1x32xf32, #tpu.memory_space<vmem>>, %arg4: memref<2x8x32x32xf32, #tpu.memory_space<vmem>>, %arg5: memref<2x11x1x32xf32, #tpu.memory_space<vmem>>, %arg6: memref<32x16xf32, #tpu.memory_space<vmem>>, %arg7: memref<5x1x16xf32, #tpu.memory_space<vmem>>, %arg8: memref<2x8xf32, #tpu.memory_space<vmem>>, %arg9: memref<16x32xf32, #tpu.memory_space<vmem>>) attributes {dimension_semantics = [], scalar_prefetch = 0 : i64, scratch_operands = 1 : i64, tpu.core_type = #tpu.core_type<tc>} {
    %c0 = arith.constant 0 : index
    %c0_0 = arith.constant 0 : index
    %0 = vector.load %arg0[%c0, %c0_0] : memref<16x16xf32, #tpu.memory_space<vmem>>, vector<16x16xf32>
    %c0_1 = arith.constant 0 : index
    %c0_2 = arith.constant 0 : index
    %1 = vector.load %arg2[%c0_1, %c0_2] : memref<16x32xf32, #tpu.memory_space<vmem>>, vector<16x32xf32>
    %cst = arith.constant dense<0.000000e+00> : vector<16x32xf32>
    %2 = tpu.matmul %0, %1, %cst {dimension_numbers = #tpu.dot_dimension_numbers<[1], [0], [0], [1], [0, 0, 1, 1], [], []>} : vector<16x16xf32>, vector<16x32xf32>, vector<16x32xf32> -> vector<16x32xf32>
    %c0_3 = arith.constant 0 : index
    %c0_4 = arith.constant 0 : index
    %c0_5 = arith.constant 0 : index
    %3 = vector.load %arg3[%c0_3, %c0_4, %c0_5] : memref<3x1x32xf32, #tpu.memory_space<vmem>>, vector<1x1x32xf32>
    %4 = vector.shape_cast %3 : vector<1x1x32xf32> to vector<1x32xf32>
    %5 = vector.broadcast %4 : vector<1x32xf32> to vector<16x32xf32>
    %6 = arith.addf %2, %5 : vector<16x32xf32>
    %c1 = arith.constant 1 : index
    %c0_6 = arith.constant 0 : index
    %c0_7 = arith.constant 0 : index
    %7 = vector.load %arg3[%c1, %c0_6, %c0_7] : memref<3x1x32xf32, #tpu.memory_space<vmem>>, vector<1x1x32xf32>
    %8 = vector.shape_cast %7 : vector<1x1x32xf32> to vector<1x32xf32>
    %c2 = arith.constant 2 : index
    %c0_8 = arith.constant 0 : index
    %c0_9 = arith.constant 0 : index
    %9 = vector.load %arg3[%c2, %c0_8, %c0_9] : memref<3x1x32xf32, #tpu.memory_space<vmem>>, vector<1x1x32xf32>
    %10 = vector.shape_cast %9 : vector<1x1x32xf32> to vector<1x32xf32>
    %cst_10 = arith.constant dense<0.000000e+00> : vector<16xf32>
    %11 = vector.multi_reduction <add>, %6, %cst_10 [1] : vector<16x32xf32> to vector<16xf32>
    %12 = vector.shape_cast %11 : vector<16xf32> to vector<16x1xf32>
    %cst_11 = arith.constant 3.200000e+01 : f32
    %13 = vector.broadcast %cst_11 : f32 to vector<16x1xf32>
    %14 = arith.divf %12, %13 : vector<16x1xf32>
    %15 = vector.broadcast %14 : vector<16x1xf32> to vector<16x32xf32>
    %16 = arith.subf %6, %15 : vector<16x32xf32>
    %17 = arith.mulf %16, %16 : vector<16x32xf32>
    %cst_12 = arith.constant dense<0.000000e+00> : vector<16xf32>
    %18 = vector.multi_reduction <add>, %17, %cst_12 [1] : vector<16x32xf32> to vector<16xf32>
    %19 = vector.shape_cast %18 : vector<16xf32> to vector<16x1xf32>
    %cst_13 = arith.constant 3.100000e+01 : f32
    %20 = vector.broadcast %cst_13 : f32 to vector<16x1xf32>
    %21 = arith.divf %19, %20 : vector<16x1xf32>
    %22 = vector.broadcast %14 : vector<16x1xf32> to vector<16x32xf32>
    %23 = arith.subf %6, %22 : vector<16x32xf32>
    %24 = vector.broadcast %8 : vector<1x32xf32> to vector<16x32xf32>
    %25 = arith.mulf %24, %23 : vector<16x32xf32>
    %26 = math.sqrt %21 : vector<16x1xf32>
    %cst_14 = arith.constant 9.99999997E-7 : f32
    %27 = vector.broadcast %cst_14 : f32 to vector<16x1xf32>
    %28 = arith.addf %26, %27 : vector<16x1xf32>
    %29 = vector.broadcast %28 : vector<16x1xf32> to vector<16x32xf32>
    %30 = arith.divf %25, %29 : vector<16x32xf32>
    %31 = vector.broadcast %10 : vector<1x32xf32> to vector<16x32xf32>
    %32 = arith.addf %30, %31 : vector<16x32xf32>
    %c0_15 = arith.constant 0 : index
    %c0_16 = arith.constant 0 : index
    %33 = vector.load %arg1[%c0_15, %c0_16] : memref<16x32xf32, #tpu.memory_space<vmem>>, vector<16x32xf32>
    %34 = arith.addf %32, %33 : vector<16x32xf32>
    %c0_17 = arith.constant 0 : index
    %c0_18 = arith.constant 0 : index
    %c0_19 = arith.constant 0 : index
    %c0_20 = arith.constant 0 : index
    %35 = vector.load %arg4[%c0_17, %c0_18, %c0_19, %c0_20] : memref<2x8x32x32xf32, #tpu.memory_space<vmem>>, vector<1x1x32x32xf32>
    %36 = vector.shape_cast %35 : vector<1x1x32x32xf32> to vector<32x32xf32>
    %c0_21 = arith.constant 0 : index
    %c1_22 = arith.constant 1 : index
    %c0_23 = arith.constant 0 : index
    %c0_24 = arith.constant 0 : index
    %37 = vector.load %arg4[%c0_21, %c1_22, %c0_23, %c0_24] : memref<2x8x32x32xf32, #tpu.memory_space<vmem>>, vector<1x1x32x32xf32>
    %38 = vector.shape_cast %37 : vector<1x1x32x32xf32> to vector<32x32xf32>
    %c0_25 = arith.constant 0 : index
    %c2_26 = arith.constant 2 : index
    %c0_27 = arith.constant 0 : index
    %c0_28 = arith.constant 0 : index
    %39 = vector.load %arg4[%c0_25, %c2_26, %c0_27, %c0_28] : memref<2x8x32x32xf32, #tpu.memory_space<vmem>>, vector<1x1x32x32xf32>
    %40 = vector.shape_cast %39 : vector<1x1x32x32xf32> to vector<32x32xf32>
    %c0_29 = arith.constant 0 : index
    %c3 = arith.constant 3 : index
    %c0_30 = arith.constant 0 : index
    %c0_31 = arith.constant 0 : index
    %41 = vector.load %arg4[%c0_29, %c3, %c0_30, %c0_31] : memref<2x8x32x32xf32, #tpu.memory_space<vmem>>, vector<1x1x32x32xf32>
    %42 = vector.shape_cast %41 : vector<1x1x32x32xf32> to vector<32x32xf32>
    %c0_32 = arith.constant 0 : index
    %c4 = arith.constant 4 : index
    %c0_33 = arith.constant 0 : index
    %c0_34 = arith.constant 0 : index
    %43 = vector.load %arg4[%c0_32, %c4, %c0_33, %c0_34] : memref<2x8x32x32xf32, #tpu.memory_space<vmem>>, vector<1x1x32x32xf32>
    %44 = vector.shape_cast %43 : vector<1x1x32x32xf32> to vector<32x32xf32>
    %c0_35 = arith.constant 0 : index
    %c5 = arith.constant 5 : index
    %c0_36 = arith.constant 0 : index
    %c0_37 = arith.constant 0 : index
    %45 = vector.load %arg4[%c0_35, %c5, %c0_36, %c0_37] : memref<2x8x32x32xf32, #tpu.memory_space<vmem>>, vector<1x1x32x32xf32>
    %46 = vector.shape_cast %45 : vector<1x1x32x32xf32> to vector<32x32xf32>
    %c0_38 = arith.constant 0 : index
    %c6 = arith.constant 6 : index
    %c0_39 = arith.constant 0 : index
    %c0_40 = arith.constant 0 : index
    %47 = vector.load %arg4[%c0_38, %c6, %c0_39, %c0_40] : memref<2x8x32x32xf32, #tpu.memory_space<vmem>>, vector<1x1x32x32xf32>
    %48 = vector.shape_cast %47 : vector<1x1x32x32xf32> to vector<32x32xf32>
    %c0_41 = arith.constant 0 : index
    %c7 = arith.constant 7 : index
    %c0_42 = arith.constant 0 : index
    %c0_43 = arith.constant 0 : index
    %49 = vector.load %arg4[%c0_41, %c7, %c0_42, %c0_43] : memref<2x8x32x32xf32, #tpu.memory_space<vmem>>, vector<1x1x32x32xf32>
    %50 = vector.shape_cast %49 : vector<1x1x32x32xf32> to vector<32x32xf32>
    %c0_44 = arith.constant 0 : index
    %c0_45 = arith.constant 0 : index
    %c0_46 = arith.constant 0 : index
    %c0_47 = arith.constant 0 : index
    %51 = vector.load %arg5[%c0_44, %c0_45, %c0_46, %c0_47] : memref<2x11x1x32xf32, #tpu.memory_space<vmem>>, vector<1x1x1x32xf32>
    %52 = vector.shape_cast %51 : vector<1x1x1x32xf32> to vector<1x32xf32>
    %c0_48 = arith.constant 0 : index
    %c1_49 = arith.constant 1 : index
    %c0_50 = arith.constant 0 : index
    %c0_51 = arith.constant 0 : index
    %53 = vector.load %arg5[%c0_48, %c1_49, %c0_50, %c0_51] : memref<2x11x1x32xf32, #tpu.memory_space<vmem>>, vector<1x1x1x32xf32>
    %54 = vector.shape_cast %53 : vector<1x1x1x32xf32> to vector<1x32xf32>
    %c0_52 = arith.constant 0 : index
    %c2_53 = arith.constant 2 : index
    %c0_54 = arith.constant 0 : index
    %c0_55 = arith.constant 0 : index
    %55 = vector.load %arg5[%c0_52, %c2_53, %c0_54, %c0_55] : memref<2x11x1x32xf32, #tpu.memory_space<vmem>>, vector<1x1x1x32xf32>
    %56 = vector.shape_cast %55 : vector<1x1x1x32xf32> to vector<1x32xf32>
    %c0_56 = arith.constant 0 : index
    %c3_57 = arith.constant 3 : index
    %c0_58 = arith.constant 0 : index
    %c0_59 = arith.constant 0 : index
    %57 = vector.load %arg5[%c0_56, %c3_57, %c0_58, %c0_59] : memref<2x11x1x32xf32, #tpu.memory_space<vmem>>, vector<1x1x1x32xf32>
    %58 = vector.shape_cast %57 : vector<1x1x1x32xf32> to vector<1x32xf32>
    %c0_60 = arith.constant 0 : index
    %c4_61 = arith.constant 4 : index
    %c0_62 = arith.constant 0 : index
    %c0_63 = arith.constant 0 : index
    %59 = vector.load %arg5[%c0_60, %c4_61, %c0_62, %c0_63] : memref<2x11x1x32xf32, #tpu.memory_space<vmem>>, vector<1x1x1x32xf32>
    %60 = vector.shape_cast %59 : vector<1x1x1x32xf32> to vector<1x32xf32>
    %c0_64 = arith.constant 0 : index
    %c5_65 = arith.constant 5 : index
    %c0_66 = arith.constant 0 : index
    %c0_67 = arith.constant 0 : index
    %61 = vector.load %arg5[%c0_64, %c5_65, %c0_66, %c0_67] : memref<2x11x1x32xf32, #tpu.memory_space<vmem>>, vector<1x1x1x32xf32>
    %62 = vector.shape_cast %61 : vector<1x1x1x32xf32> to vector<1x32xf32>
    %c0_68 = arith.constant 0 : index
    %c6_69 = arith.constant 6 : index
    %c0_70 = arith.constant 0 : index
    %c0_71 = arith.constant 0 : index
    %63 = vector.load %arg5[%c0_68, %c6_69, %c0_70, %c0_71] : memref<2x11x1x32xf32, #tpu.memory_space<vmem>>, vector<1x1x1x32xf32>
    %64 = vector.shape_cast %63 : vector<1x1x1x32xf32> to vector<1x32xf32>
    %c0_72 = arith.constant 0 : index
    %c7_73 = arith.constant 7 : index
    %c0_74 = arith.constant 0 : index
    %c0_75 = arith.constant 0 : index
    %65 = vector.load %arg5[%c0_72, %c7_73, %c0_74, %c0_75] : memref<2x11x1x32xf32, #tpu.memory_space<vmem>>, vector<1x1x1x32xf32>
    %66 = vector.shape_cast %65 : vector<1x1x1x32xf32> to vector<1x32xf32>
    %c0_76 = arith.constant 0 : index
    %c8 = arith.constant 8 : index
    %c0_77 = arith.constant 0 : index
    %c0_78 = arith.constant 0 : index
    %67 = vector.load %arg5[%c0_76, %c8, %c0_77, %c0_78] : memref<2x11x1x32xf32, #tpu.memory_space<vmem>>, vector<1x1x1x32xf32>
    %68 = vector.shape_cast %67 : vector<1x1x1x32xf32> to vector<1x32xf32>
    %c0_79 = arith.constant 0 : index
    %c9 = arith.constant 9 : index
    %c0_80 = arith.constant 0 : index
    %c0_81 = arith.constant 0 : index
    %69 = vector.load %arg5[%c0_79, %c9, %c0_80, %c0_81] : memref<2x11x1x32xf32, #tpu.memory_space<vmem>>, vector<1x1x1x32xf32>
    %70 = vector.shape_cast %69 : vector<1x1x1x32xf32> to vector<1x32xf32>
    %c0_82 = arith.constant 0 : index
    %c10 = arith.constant 10 : index
    %c0_83 = arith.constant 0 : index
    %c0_84 = arith.constant 0 : index
    %71 = vector.load %arg5[%c0_82, %c10, %c0_83, %c0_84] : memref<2x11x1x32xf32, #tpu.memory_space<vmem>>, vector<1x1x1x32xf32>
    %72 = vector.shape_cast %71 : vector<1x1x1x32xf32> to vector<1x32xf32>
    %cst_85 = arith.constant dense<0.000000e+00> : vector<16x32xf32>
    %73 = tpu.matmul %34, %36, %cst_85 {dimension_numbers = #tpu.dot_dimension_numbers<[1], [0], [0], [1], [0, 0, 1, 1], [], []>} : vector<16x32xf32>, vector<32x32xf32>, vector<16x32xf32> -> vector<16x32xf32>
    %74 = vector.broadcast %52 : vector<1x32xf32> to vector<16x32xf32>
    %75 = arith.addf %73, %74 : vector<16x32xf32>
    %cst_86 = arith.constant dense<0.000000e+00> : vector<16x32xf32>
    %76 = tpu.matmul %34, %38, %cst_86 {dimension_numbers = #tpu.dot_dimension_numbers<[1], [0], [0], [1], [0, 0, 1, 1], [], []>} : vector<16x32xf32>, vector<32x32xf32>, vector<16x32xf32> -> vector<16x32xf32>
    %77 = vector.broadcast %54 : vector<1x32xf32> to vector<16x32xf32>
    %78 = arith.addf %76, %77 : vector<16x32xf32>
    %cst_87 = arith.constant dense<0.000000e+00> : vector<16x32xf32>
    %79 = tpu.matmul %34, %40, %cst_87 {dimension_numbers = #tpu.dot_dimension_numbers<[1], [0], [0], [1], [0, 0, 1, 1], [], []>} : vector<16x32xf32>, vector<32x32xf32>, vector<16x32xf32> -> vector<16x32xf32>
    %80 = vector.broadcast %56 : vector<1x32xf32> to vector<16x32xf32>
    %81 = arith.addf %79, %80 : vector<16x32xf32>
    %82 = vector.extract_strided_slice %75 {offsets = [0, 0], sizes = [8, 32], strides = [1, 1]} : vector<16x32xf32> to vector<8x32xf32>
    %83 = vector.extract_strided_slice %78 {offsets = [0, 0], sizes = [8, 32], strides = [1, 1]} : vector<16x32xf32> to vector<8x32xf32>
    %84 = vector.extract_strided_slice %81 {offsets = [0, 0], sizes = [8, 32], strides = [1, 1]} : vector<16x32xf32> to vector<8x32xf32>
    %85 = vector.extract_strided_slice %82 {offsets = [0, 0], sizes = [8, 8], strides = [1, 1]} : vector<8x32xf32> to vector<8x8xf32>
    %86 = vector.extract_strided_slice %83 {offsets = [0, 0], sizes = [8, 8], strides = [1, 1]} : vector<8x32xf32> to vector<8x8xf32>
    %87 = vector.extract_strided_slice %84 {offsets = [0, 0], sizes = [8, 8], strides = [1, 1]} : vector<8x32xf32> to vector<8x8xf32>
    %cst_88 = arith.constant dense<0.000000e+00> : vector<8x8xf32>
    %88 = tpu.matmul %85, %86, %cst_88 {dimension_numbers = #tpu.dot_dimension_numbers<[1], [1], [0], [0], [0, 0, 1, 0], [], []>} : vector<8x8xf32>, vector<8x8xf32>, vector<8x8xf32> -> vector<8x8xf32>
    %cst_89 = arith.constant dense<0xFF800000> : vector<8xf32>
    %89 = vector.multi_reduction <maximumf>, %88, %cst_89 [1] : vector<8x8xf32> to vector<8xf32>
    %90 = vector.shape_cast %89 : vector<8xf32> to vector<8x1xf32>
    %91 = vector.broadcast %90 : vector<8x1xf32> to vector<8x8xf32>
    %92 = arith.subf %88, %91 : vector<8x8xf32>
    %93 = math.exp %92 : vector<8x8xf32>
    %cst_90 = arith.constant dense<0.000000e+00> : vector<8xf32>
    %94 = vector.multi_reduction <add>, %93, %cst_90 [1] : vector<8x8xf32> to vector<8xf32>
    %95 = vector.shape_cast %94 : vector<8xf32> to vector<8x1xf32>
    %96 = tpu.reciprocal %95 {approx = true} : vector<8x1xf32> -> vector<8x1xf32>
    %97 = vector.broadcast %96 : vector<8x1xf32> to vector<8x8xf32>
    %98 = arith.mulf %93, %97 : vector<8x8xf32>
    %cst_91 = arith.constant dense<0.000000e+00> : vector<8x8xf32>
    %99 = tpu.matmul %98, %87, %cst_91 {dimension_numbers = #tpu.dot_dimension_numbers<[1], [0], [0], [1], [0, 0, 1, 1], [], []>} : vector<8x8xf32>, vector<8x8xf32>, vector<8x8xf32> -> vector<8x8xf32>
    %c0_92 = arith.constant 0 : index
    %c0_93 = arith.constant 0 : index
    %100 = vector.load %arg9[%c0_92, %c0_93] : memref<16x32xf32, #tpu.memory_space<vmem>>, vector<8x8xf32>
    tpu.vector_store %arg9[%c0_92, %c0_93], %99 {strides = array<i32>} : memref<16x32xf32, #tpu.memory_space<vmem>>, vector<8x8xf32>,
    %101 = vector.extract_strided_slice %82 {offsets = [0, 8], sizes = [8, 8], strides = [1, 1]} : vector<8x32xf32> to vector<8x8xf32>
    %102 = vector.extract_strided_slice %83 {offsets = [0, 8], sizes = [8, 8], strides = [1, 1]} : vector<8x32xf32> to vector<8x8xf32>
    %103 = vector.extract_strided_slice %84 {offsets = [0, 8], sizes = [8, 8], strides = [1, 1]} : vector<8x32xf32> to vector<8x8xf32>
    %cst_94 = arith.constant dense<0.000000e+00> : vector<8x8xf32>
    %104 = tpu.matmul %101, %102, %cst_94 {dimension_numbers = #tpu.dot_dimension_numbers<[1], [1], [0], [0], [0, 0, 1, 0], [], []>} : vector<8x8xf32>, vector<8x8xf32>, vector<8x8xf32> -> vector<8x8xf32>
    %cst_95 = arith.constant dense<0xFF800000> : vector<8xf32>
    %105 = vector.multi_reduction <maximumf>, %104, %cst_95 [1] : vector<8x8xf32> to vector<8xf32>
    %106 = vector.shape_cast %105 : vector<8xf32> to vector<8x1xf32>
    %107 = vector.broadcast %106 : vector<8x1xf32> to vector<8x8xf32>
    %108 = arith.subf %104, %107 : vector<8x8xf32>
    %109 = math.exp %108 : vector<8x8xf32>
    %cst_96 = arith.constant dense<0.000000e+00> : vector<8xf32>
    %110 = vector.multi_reduction <add>, %109, %cst_96 [1] : vector<8x8xf32> to vector<8xf32>
    %111 = vector.shape_cast %110 : vector<8xf32> to vector<8x1xf32>
    %112 = tpu.reciprocal %111 {approx = true} : vector<8x1xf32> -> vector<8x1xf32>
    %113 = vector.broadcast %112 : vector<8x1xf32> to vector<8x8xf32>
    %114 = arith.mulf %109, %113 : vector<8x8xf32>
    %cst_97 = arith.constant dense<0.000000e+00> : vector<8x8xf32>
    %115 = tpu.matmul %114, %103, %cst_97 {dimension_numbers = #tpu.dot_dimension_numbers<[1], [0], [0], [1], [0, 0, 1, 1], [], []>} : vector<8x8xf32>, vector<8x8xf32>, vector<8x8xf32> -> vector<8x8xf32>
    %c0_98 = arith.constant 0 : index
    %c8_99 = arith.constant 8 : index
    %116 = vector.load %arg9[%c0_98, %c8_99] : memref<16x32xf32, #tpu.memory_space<vmem>>, vector<8x8xf32>
    tpu.vector_store %arg9[%c0_98, %c8_99], %115 {strides = array<i32>} : memref<16x32xf32, #tpu.memory_space<vmem>>, vector<8x8xf32>,
    %117 = vector.extract_strided_slice %82 {offsets = [0, 16], sizes = [8, 8], strides = [1, 1]} : vector<8x32xf32> to vector<8x8xf32>
    %118 = vector.extract_strided_slice %83 {offsets = [0, 16], sizes = [8, 8], strides = [1, 1]} : vector<8x32xf32> to vector<8x8xf32>
    %119 = vector.extract_strided_slice %84 {offsets = [0, 16], sizes = [8, 8], strides = [1, 1]} : vector<8x32xf32> to vector<8x8xf32>
    %cst_100 = arith.constant dense<0.000000e+00> : vector<8x8xf32>
    %120 = tpu.matmul %117, %118, %cst_100 {dimension_numbers = #tpu.dot_dimension_numbers<[1], [1], [0], [0], [0, 0, 1, 0], [], []>} : vector<8x8xf32>, vector<8x8xf32>, vector<8x8xf32> -> vector<8x8xf32>
    %cst_101 = arith.constant dense<0xFF800000> : vector<8xf32>
    %121 = vector.multi_reduction <maximumf>, %120, %cst_101 [1] : vector<8x8xf32> to vector<8xf32>
    %122 = vector.shape_cast %121 : vector<8xf32> to vector<8x1xf32>
    %123 = vector.broadcast %122 : vector<8x1xf32> to vector<8x8xf32>
    %124 = arith.subf %120, %123 : vector<8x8xf32>
    %125 = math.exp %124 : vector<8x8xf32>
    %cst_102 = arith.constant dense<0.000000e+00> : vector<8xf32>
    %126 = vector.multi_reduction <add>, %125, %cst_102 [1] : vector<8x8xf32> to vector<8xf32>
    %127 = vector.shape_cast %126 : vector<8xf32> to vector<8x1xf32>
    %128 = tpu.reciprocal %127 {approx = true} : vector<8x1xf32> -> vector<8x1xf32>
    %129 = vector.broadcast %128 : vector<8x1xf32> to vector<8x8xf32>
    %130 = arith.mulf %125, %129 : vector<8x8xf32>
    %cst_103 = arith.constant dense<0.000000e+00> : vector<8x8xf32>
    %131 = tpu.matmul %130, %119, %cst_103 {dimension_numbers = #tpu.dot_dimension_numbers<[1], [0], [0], [1], [0, 0, 1, 1], [], []>} : vector<8x8xf32>, vector<8x8xf32>, vector<8x8xf32> -> vector<8x8xf32>
    %c0_104 = arith.constant 0 : index
    %c16 = arith.constant 16 : index
    %132 = vector.load %arg9[%c0_104, %c16] : memref<16x32xf32, #tpu.memory_space<vmem>>, vector<8x8xf32>
    tpu.vector_store %arg9[%c0_104, %c16], %131 {strides = array<i32>} : memref<16x32xf32, #tpu.memory_space<vmem>>, vector<8x8xf32>,
    %133 = vector.extract_strided_slice %82 {offsets = [0, 24], sizes = [8, 8], strides = [1, 1]} : vector<8x32xf32> to vector<8x8xf32>
    %134 = vector.extract_strided_slice %83 {offsets = [0, 24], sizes = [8, 8], strides = [1, 1]} : vector<8x32xf32> to vector<8x8xf32>
    %135 = vector.extract_strided_slice %84 {offsets = [0, 24], sizes = [8, 8], strides = [1, 1]} : vector<8x32xf32> to vector<8x8xf32>
    %cst_105 = arith.constant dense<0.000000e+00> : vector<8x8xf32>
    %136 = tpu.matmul %133, %134, %cst_105 {dimension_numbers = #tpu.dot_dimension_numbers<[1], [1], [0], [0], [0, 0, 1, 0], [], []>} : vector<8x8xf32>, vector<8x8xf32>, vector<8x8xf32> -> vector<8x8xf32>
    %cst_106 = arith.constant dense<0xFF800000> : vector<8xf32>
    %137 = vector.multi_reduction <maximumf>, %136, %cst_106 [1] : vector<8x8xf32> to vector<8xf32>
    %138 = vector.shape_cast %137 : vector<8xf32> to vector<8x1xf32>
    %139 = vector.broadcast %138 : vector<8x1xf32> to vector<8x8xf32>
    %140 = arith.subf %136, %139 : vector<8x8xf32>
    %141 = math.exp %140 : vector<8x8xf32>
    %cst_107 = arith.constant dense<0.000000e+00> : vector<8xf32>
    %142 = vector.multi_reduction <add>, %141, %cst_107 [1] : vector<8x8xf32> to vector<8xf32>
    %143 = vector.shape_cast %142 : vector<8xf32> to vector<8x1xf32>
    %144 = tpu.reciprocal %143 {approx = true} : vector<8x1xf32> -> vector<8x1xf32>
    %145 = vector.broadcast %144 : vector<8x1xf32> to vector<8x8xf32>
    %146 = arith.mulf %141, %145 : vector<8x8xf32>
    %cst_108 = arith.constant dense<0.000000e+00> : vector<8x8xf32>
    %147 = tpu.matmul %146, %135, %cst_108 {dimension_numbers = #tpu.dot_dimension_numbers<[1], [0], [0], [1], [0, 0, 1, 1], [], []>} : vector<8x8xf32>, vector<8x8xf32>, vector<8x8xf32> -> vector<8x8xf32>
    %c0_109 = arith.constant 0 : index
    %c24 = arith.constant 24 : index
    %148 = vector.load %arg9[%c0_109, %c24] : memref<16x32xf32, #tpu.memory_space<vmem>>, vector<8x8xf32>
    tpu.vector_store %arg9[%c0_109, %c24], %147 {strides = array<i32>} : memref<16x32xf32, #tpu.memory_space<vmem>>, vector<8x8xf32>,
    %149 = vector.extract_strided_slice %75 {offsets = [8, 0], sizes = [8, 32], strides = [1, 1]} : vector<16x32xf32> to vector<8x32xf32>
    %150 = vector.extract_strided_slice %78 {offsets = [8, 0], sizes = [8, 32], strides = [1, 1]} : vector<16x32xf32> to vector<8x32xf32>
    %151 = vector.extract_strided_slice %81 {offsets = [8, 0], sizes = [8, 32], strides = [1, 1]} : vector<16x32xf32> to vector<8x32xf32>
    %152 = vector.extract_strided_slice %149 {offsets = [0, 0], sizes = [8, 8], strides = [1, 1]} : vector<8x32xf32> to vector<8x8xf32>
    %153 = vector.extract_strided_slice %150 {offsets = [0, 0], sizes = [8, 8], strides = [1, 1]} : vector<8x32xf32> to vector<8x8xf32>
    %154 = vector.extract_strided_slice %151 {offsets = [0, 0], sizes = [8, 8], strides = [1, 1]} : vector<8x32xf32> to vector<8x8xf32>
    %cst_110 = arith.constant dense<0.000000e+00> : vector<8x8xf32>
    %155 = tpu.matmul %152, %153, %cst_110 {dimension_numbers = #tpu.dot_dimension_numbers<[1], [1], [0], [0], [0, 0, 1, 0], [], []>} : vector<8x8xf32>, vector<8x8xf32>, vector<8x8xf32> -> vector<8x8xf32>
    %cst_111 = arith.constant dense<0xFF800000> : vector<8xf32>
    %156 = vector.multi_reduction <maximumf>, %155, %cst_111 [1] : vector<8x8xf32> to vector<8xf32>
    %157 = vector.shape_cast %156 : vector<8xf32> to vector<8x1xf32>
    %158 = vector.broadcast %157 : vector<8x1xf32> to vector<8x8xf32>
    %159 = arith.subf %155, %158 : vector<8x8xf32>
    %160 = math.exp %159 : vector<8x8xf32>
    %cst_112 = arith.constant dense<0.000000e+00> : vector<8xf32>
    %161 = vector.multi_reduction <add>, %160, %cst_112 [1] : vector<8x8xf32> to vector<8xf32>
    %162 = vector.shape_cast %161 : vector<8xf32> to vector<8x1xf32>
    %163 = tpu.reciprocal %162 {approx = true} : vector<8x1xf32> -> vector<8x1xf32>
    %164 = vector.broadcast %163 : vector<8x1xf32> to vector<8x8xf32>
    %165 = arith.mulf %160, %164 : vector<8x8xf32>
    %cst_113 = arith.constant dense<0.000000e+00> : vector<8x8xf32>
    %166 = tpu.matmul %165, %154, %cst_113 {dimension_numbers = #tpu.dot_dimension_numbers<[1], [0], [0], [1], [0, 0, 1, 1], [], []>} : vector<8x8xf32>, vector<8x8xf32>, vector<8x8xf32> -> vector<8x8xf32>
    %c8_114 = arith.constant 8 : index
    %c0_115 = arith.constant 0 : index
    %167 = vector.load %arg9[%c8_114, %c0_115] : memref<16x32xf32, #tpu.memory_space<vmem>>, vector<8x8xf32>
    tpu.vector_store %arg9[%c8_114, %c0_115], %166 {strides = array<i32>} : memref<16x32xf32, #tpu.memory_space<vmem>>, vector<8x8xf32>,
    %168 = vector.extract_strided_slice %149 {offsets = [0, 8], sizes = [8, 8], strides = [1, 1]} : vector<8x32xf32> to vector<8x8xf32>
    %169 = vector.extract_strided_slice %150 {offsets = [0, 8], sizes = [8, 8], strides = [1, 1]} : vector<8x32xf32> to vector<8x8xf32>
    %170 = vector.extract_strided_slice %151 {offsets = [0, 8], sizes = [8, 8], strides = [1, 1]} : vector<8x32xf32> to vector<8x8xf32>
    %cst_116 = arith.constant dense<0.000000e+00> : vector<8x8xf32>
    %171 = tpu.matmul %168, %169, %cst_116 {dimension_numbers = #tpu.dot_dimension_numbers<[1], [1], [0], [0], [0, 0, 1, 0], [], []>} : vector<8x8xf32>, vector<8x8xf32>, vector<8x8xf32> -> vector<8x8xf32>
    %cst_117 = arith.constant dense<0xFF800000> : vector<8xf32>
    %172 = vector.multi_reduction <maximumf>, %171, %cst_117 [1] : vector<8x8xf32> to vector<8xf32>
    %173 = vector.shape_cast %172 : vector<8xf32> to vector<8x1xf32>
    %174 = vector.broadcast %173 : vector<8x1xf32> to vector<8x8xf32>
    %175 = arith.subf %171, %174 : vector<8x8xf32>
    %176 = math.exp %175 : vector<8x8xf32>
    %cst_118 = arith.constant dense<0.000000e+00> : vector<8xf32>
    %177 = vector.multi_reduction <add>, %176, %cst_118 [1] : vector<8x8xf32> to vector<8xf32>
    %178 = vector.shape_cast %177 : vector<8xf32> to vector<8x1xf32>
    %179 = tpu.reciprocal %178 {approx = true} : vector<8x1xf32> -> vector<8x1xf32>
    %180 = vector.broadcast %179 : vector<8x1xf32> to vector<8x8xf32>
    %181 = arith.mulf %176, %180 : vector<8x8xf32>
    %cst_119 = arith.constant dense<0.000000e+00> : vector<8x8xf32>
    %182 = tpu.matmul %181, %170, %cst_119 {dimension_numbers = #tpu.dot_dimension_numbers<[1], [0], [0], [1], [0, 0, 1, 1], [], []>} : vector<8x8xf32>, vector<8x8xf32>, vector<8x8xf32> -> vector<8x8xf32>
    %c8_120 = arith.constant 8 : index
    %c8_121 = arith.constant 8 : index
    %183 = vector.load %arg9[%c8_120, %c8_121] : memref<16x32xf32, #tpu.memory_space<vmem>>, vector<8x8xf32>
    tpu.vector_store %arg9[%c8_120, %c8_121], %182 {strides = array<i32>} : memref<16x32xf32, #tpu.memory_space<vmem>>, vector<8x8xf32>,
    %184 = vector.extract_strided_slice %149 {offsets = [0, 16], sizes = [8, 8], strides = [1, 1]} : vector<8x32xf32> to vector<8x8xf32>
    %185 = vector.extract_strided_slice %150 {offsets = [0, 16], sizes = [8, 8], strides = [1, 1]} : vector<8x32xf32> to vector<8x8xf32>
    %186 = vector.extract_strided_slice %151 {offsets = [0, 16], sizes = [8, 8], strides = [1, 1]} : vector<8x32xf32> to vector<8x8xf32>
    %cst_122 = arith.constant dense<0.000000e+00> : vector<8x8xf32>
    %187 = tpu.matmul %184, %185, %cst_122 {dimension_numbers = #tpu.dot_dimension_numbers<[1], [1], [0], [0], [0, 0, 1, 0], [], []>} : vector<8x8xf32>, vector<8x8xf32>, vector<8x8xf32> -> vector<8x8xf32>
    %cst_123 = arith.constant dense<0xFF800000> : vector<8xf32>
    %188 = vector.multi_reduction <maximumf>, %187, %cst_123 [1] : vector<8x8xf32> to vector<8xf32>
    %189 = vector.shape_cast %188 : vector<8xf32> to vector<8x1xf32>
    %190 = vector.broadcast %189 : vector<8x1xf32> to vector<8x8xf32>
    %191 = arith.subf %187, %190 : vector<8x8xf32>
    %192 = math.exp %191 : vector<8x8xf32>
    %cst_124 = arith.constant dense<0.000000e+00> : vector<8xf32>
    %193 = vector.multi_reduction <add>, %192, %cst_124 [1] : vector<8x8xf32> to vector<8xf32>
    %194 = vector.shape_cast %193 : vector<8xf32> to vector<8x1xf32>
    %195 = tpu.reciprocal %194 {approx = true} : vector<8x1xf32> -> vector<8x1xf32>
    %196 = vector.broadcast %195 : vector<8x1xf32> to vector<8x8xf32>
    %197 = arith.mulf %192, %196 : vector<8x8xf32>
    %cst_125 = arith.constant dense<0.000000e+00> : vector<8x8xf32>
    %198 = tpu.matmul %197, %186, %cst_125 {dimension_numbers = #tpu.dot_dimension_numbers<[1], [0], [0], [1], [0, 0, 1, 1], [], []>} : vector<8x8xf32>, vector<8x8xf32>, vector<8x8xf32> -> vector<8x8xf32>
    %c8_126 = arith.constant 8 : index
    %c16_127 = arith.constant 16 : index
    %199 = vector.load %arg9[%c8_126, %c16_127] : memref<16x32xf32, #tpu.memory_space<vmem>>, vector<8x8xf32>
    tpu.vector_store %arg9[%c8_126, %c16_127], %198 {strides = array<i32>} : memref<16x32xf32, #tpu.memory_space<vmem>>, vector<8x8xf32>,
    %200 = vector.extract_strided_slice %149 {offsets = [0, 24], sizes = [8, 8], strides = [1, 1]} : vector<8x32xf32> to vector<8x8xf32>
    %201 = vector.extract_strided_slice %150 {offsets = [0, 24], sizes = [8, 8], strides = [1, 1]} : vector<8x32xf32> to vector<8x8xf32>
    %202 = vector.extract_strided_slice %151 {offsets = [0, 24], sizes = [8, 8], strides = [1, 1]} : vector<8x32xf32> to vector<8x8xf32>
    %cst_128 = arith.constant dense<0.000000e+00> : vector<8x8xf32>
    %203 = tpu.matmul %200, %201, %cst_128 {dimension_numbers = #tpu.dot_dimension_numbers<[1], [1], [0], [0], [0, 0, 1, 0], [], []>} : vector<8x8xf32>, vector<8x8xf32>, vector<8x8xf32> -> vector<8x8xf32>
    %cst_129 = arith.constant dense<0xFF800000> : vector<8xf32>
    %204 = vector.multi_reduction <maximumf>, %203, %cst_129 [1] : vector<8x8xf32> to vector<8xf32>
    %205 = vector.shape_cast %204 : vector<8xf32> to vector<8x1xf32>
    %206 = vector.broadcast %205 : vector<8x1xf32> to vector<8x8xf32>
    %207 = arith.subf %203, %206 : vector<8x8xf32>
    %208 = math.exp %207 : vector<8x8xf32>
    %cst_130 = arith.constant dense<0.000000e+00> : vector<8xf32>
    %209 = vector.multi_reduction <add>, %208, %cst_130 [1] : vector<8x8xf32> to vector<8xf32>
    %210 = vector.shape_cast %209 : vector<8xf32> to vector<8x1xf32>
    %211 = tpu.reciprocal %210 {approx = true} : vector<8x1xf32> -> vector<8x1xf32>
    %212 = vector.broadcast %211 : vector<8x1xf32> to vector<8x8xf32>
    %213 = arith.mulf %208, %212 : vector<8x8xf32>
    %cst_131 = arith.constant dense<0.000000e+00> : vector<8x8xf32>
    %214 = tpu.matmul %213, %202, %cst_131 {dimension_numbers = #tpu.dot_dimension_numbers<[1], [0], [0], [1], [0, 0, 1, 1], [], []>} : vector<8x8xf32>, vector<8x8xf32>, vector<8x8xf32> -> vector<8x8xf32>
    %c8_132 = arith.constant 8 : index
    %c24_133 = arith.constant 24 : index
    %215 = vector.load %arg9[%c8_132, %c24_133] : memref<16x32xf32, #tpu.memory_space<vmem>>, vector<8x8xf32>
    tpu.vector_store %arg9[%c8_132, %c24_133], %214 {strides = array<i32>} : memref<16x32xf32, #tpu.memory_space<vmem>>, vector<8x8xf32>,
    %c0_134 = arith.constant 0 : index
    %c0_135 = arith.constant 0 : index
    %216 = vector.load %arg9[%c0_134, %c0_135] : memref<16x32xf32, #tpu.memory_space<vmem>>, vector<16x32xf32>
    %cst_136 = arith.constant dense<0.000000e+00> : vector<16x32xf32>
    %217 = tpu.matmul %216, %42, %cst_136 {dimension_numbers = #tpu.dot_dimension_numbers<[1], [0], [0], [1], [0, 0, 1, 1], [], []>} : vector<16x32xf32>, vector<32x32xf32>, vector<16x32xf32> -> vector<16x32xf32>
    %218 = vector.broadcast %58 : vector<1x32xf32> to vector<16x32xf32>
    %219 = arith.addf %217, %218 : vector<16x32xf32>
    %220 = arith.addf %34, %219 : vector<16x32xf32>
    %cst_137 = arith.constant dense<0.000000e+00> : vector<16xf32>
    %221 = vector.multi_reduction <add>, %220, %cst_137 [1] : vector<16x32xf32> to vector<16xf32>
    %222 = vector.shape_cast %221 : vector<16xf32> to vector<16x1xf32>
    %cst_138 = arith.constant 3.200000e+01 : f32
    %223 = vector.broadcast %cst_138 : f32 to vector<16x1xf32>
    %224 = arith.divf %222, %223 : vector<16x1xf32>
    %225 = vector.broadcast %224 : vector<16x1xf32> to vector<16x32xf32>
    %226 = arith.subf %220, %225 : vector<16x32xf32>
    %227 = arith.mulf %226, %226 : vector<16x32xf32>
    %cst_139 = arith.constant dense<0.000000e+00> : vector<16xf32>
    %228 = vector.multi_reduction <add>, %227, %cst_139 [1] : vector<16x32xf32> to vector<16xf32>
    %229 = vector.shape_cast %228 : vector<16xf32> to vector<16x1xf32>
    %cst_140 = arith.constant 3.200000e+01 : f32
    %230 = vector.broadcast %cst_140 : f32 to vector<16x1xf32>
    %231 = arith.divf %229, %230 : vector<16x1xf32>
    %232 = vector.broadcast %224 : vector<16x1xf32> to vector<16x32xf32>
    %233 = arith.subf %220, %232 : vector<16x32xf32>
    %234 = vector.broadcast %66 : vector<1x32xf32> to vector<16x32xf32>
    %235 = arith.mulf %234, %233 : vector<16x32xf32>
    %cst_141 = arith.constant 9.99999974E-6 : f32
    %236 = vector.broadcast %cst_141 : f32 to vector<16x1xf32>
    %237 = arith.addf %231, %236 : vector<16x1xf32>
    %238 = math.sqrt %237 : vector<16x1xf32>
    %239 = vector.broadcast %238 : vector<16x1xf32> to vector<16x32xf32>
    %240 = arith.divf %235, %239 : vector<16x32xf32>
    %241 = vector.broadcast %68 : vector<1x32xf32> to vector<16x32xf32>
    %242 = arith.addf %240, %241 : vector<16x32xf32>
    %cst_142 = arith.constant dense<0.000000e+00> : vector<16x32xf32>
    %243 = tpu.matmul %242, %44, %cst_142 {dimension_numbers = #tpu.dot_dimension_numbers<[1], [0], [0], [1], [0, 0, 1, 1], [], []>} : vector<16x32xf32>, vector<32x32xf32>, vector<16x32xf32> -> vector<16x32xf32>
    %244 = vector.broadcast %60 : vector<1x32xf32> to vector<16x32xf32>
    %245 = arith.addf %243, %244 : vector<16x32xf32>
    %cst_143 = arith.constant 0.000000e+00 : f32
    %246 = vector.broadcast %cst_143 : f32 to vector<16x32xf32>
    %247 = arith.maximumf %245, %246 : vector<16x32xf32>
    %cst_144 = arith.constant dense<0.000000e+00> : vector<16x32xf32>
    %248 = tpu.matmul %242, %46, %cst_144 {dimension_numbers = #tpu.dot_dimension_numbers<[1], [0], [0], [1], [0, 0, 1, 1], [], []>} : vector<16x32xf32>, vector<32x32xf32>, vector<16x32xf32> -> vector<16x32xf32>
    %249 = vector.broadcast %62 : vector<1x32xf32> to vector<16x32xf32>
    %250 = arith.addf %248, %249 : vector<16x32xf32>
    %cst_145 = arith.constant 0.000000e+00 : f32
    %251 = vector.broadcast %cst_145 : f32 to vector<16x32xf32>
    %252 = arith.maximumf %250, %251 : vector<16x32xf32>
    %cst_146 = arith.constant dense<0.000000e+00> : vector<16x32xf32>
    %253 = tpu.matmul %247, %48, %cst_146 {dimension_numbers = #tpu.dot_dimension_numbers<[1], [0], [0], [1], [0, 0, 1, 1], [], []>} : vector<16x32xf32>, vector<32x32xf32>, vector<16x32xf32> -> vector<16x32xf32>
    %cst_147 = arith.constant dense<0.000000e+00> : vector<16x32xf32>
    %254 = tpu.matmul %252, %50, %cst_147 {dimension_numbers = #tpu.dot_dimension_numbers<[1], [0], [0], [1], [0, 0, 1, 1], [], []>} : vector<16x32xf32>, vector<32x32xf32>, vector<16x32xf32> -> vector<16x32xf32>
    %255 = arith.addf %253, %254 : vector<16x32xf32>
    %256 = vector.broadcast %64 : vector<1x32xf32> to vector<16x32xf32>
    %257 = arith.addf %255, %256 : vector<16x32xf32>
    %258 = arith.addf %242, %257 : vector<16x32xf32>
    %cst_148 = arith.constant dense<0.000000e+00> : vector<16xf32>
    %259 = vector.multi_reduction <add>, %258, %cst_148 [1] : vector<16x32xf32> to vector<16xf32>
    %260 = vector.shape_cast %259 : vector<16xf32> to vector<16x1xf32>
    %cst_149 = arith.constant 3.200000e+01 : f32
    %261 = vector.broadcast %cst_149 : f32 to vector<16x1xf32>
    %262 = arith.divf %260, %261 : vector<16x1xf32>
    %263 = vector.broadcast %262 : vector<16x1xf32> to vector<16x32xf32>
    %264 = arith.subf %258, %263 : vector<16x32xf32>
    %265 = arith.mulf %264, %264 : vector<16x32xf32>
    %cst_150 = arith.constant dense<0.000000e+00> : vector<16xf32>
    %266 = vector.multi_reduction <add>, %265, %cst_150 [1] : vector<16x32xf32> to vector<16xf32>
    %267 = vector.shape_cast %266 : vector<16xf32> to vector<16x1xf32>
    %cst_151 = arith.constant 3.200000e+01 : f32
    %268 = vector.broadcast %cst_151 : f32 to vector<16x1xf32>
    %269 = arith.divf %267, %268 : vector<16x1xf32>
    %270 = vector.broadcast %262 : vector<16x1xf32> to vector<16x32xf32>
    %271 = arith.subf %258, %270 : vector<16x32xf32>
    %272 = vector.broadcast %70 : vector<1x32xf32> to vector<16x32xf32>
    %273 = arith.mulf %272, %271 : vector<16x32xf32>
    %cst_152 = arith.constant 9.99999974E-6 : f32
    %274 = vector.broadcast %cst_152 : f32 to vector<16x1xf32>
    %275 = arith.addf %269, %274 : vector<16x1xf32>
    %276 = math.sqrt %275 : vector<16x1xf32>
    %277 = vector.broadcast %276 : vector<16x1xf32> to vector<16x32xf32>
    %278 = arith.divf %273, %277 : vector<16x32xf32>
    %279 = vector.broadcast %72 : vector<1x32xf32> to vector<16x32xf32>
    %280 = arith.addf %278, %279 : vector<16x32xf32>
    %c1_153 = arith.constant 1 : index
    %c0_154 = arith.constant 0 : index
    %c0_155 = arith.constant 0 : index
    %c0_156 = arith.constant 0 : index
    %281 = vector.load %arg4[%c1_153, %c0_154, %c0_155, %c0_156] : memref<2x8x32x32xf32, #tpu.memory_space<vmem>>, vector<1x1x32x32xf32>
    %282 = vector.shape_cast %281 : vector<1x1x32x32xf32> to vector<32x32xf32>
    %c1_157 = arith.constant 1 : index
    %c1_158 = arith.constant 1 : index
    %c0_159 = arith.constant 0 : index
    %c0_160 = arith.constant 0 : index
    %283 = vector.load %arg4[%c1_157, %c1_158, %c0_159, %c0_160] : memref<2x8x32x32xf32, #tpu.memory_space<vmem>>, vector<1x1x32x32xf32>
    %284 = vector.shape_cast %283 : vector<1x1x32x32xf32> to vector<32x32xf32>
    %c1_161 = arith.constant 1 : index
    %c2_162 = arith.constant 2 : index
    %c0_163 = arith.constant 0 : index
    %c0_164 = arith.constant 0 : index
    %285 = vector.load %arg4[%c1_161, %c2_162, %c0_163, %c0_164] : memref<2x8x32x32xf32, #tpu.memory_space<vmem>>, vector<1x1x32x32xf32>
    %286 = vector.shape_cast %285 : vector<1x1x32x32xf32> to vector<32x32xf32>
    %c1_165 = arith.constant 1 : index
    %c3_166 = arith.constant 3 : index
    %c0_167 = arith.constant 0 : index
    %c0_168 = arith.constant 0 : index
    %287 = vector.load %arg4[%c1_165, %c3_166, %c0_167, %c0_168] : memref<2x8x32x32xf32, #tpu.memory_space<vmem>>, vector<1x1x32x32xf32>
    %288 = vector.shape_cast %287 : vector<1x1x32x32xf32> to vector<32x32xf32>
    %c1_169 = arith.constant 1 : index
    %c4_170 = arith.constant 4 : index
    %c0_171 = arith.constant 0 : index
    %c0_172 = arith.constant 0 : index
    %289 = vector.load %arg4[%c1_169, %c4_170, %c0_171, %c0_172] : memref<2x8x32x32xf32, #tpu.memory_space<vmem>>, vector<1x1x32x32xf32>
    %290 = vector.shape_cast %289 : vector<1x1x32x32xf32> to vector<32x32xf32>
    %c1_173 = arith.constant 1 : index
    %c5_174 = arith.constant 5 : index
    %c0_175 = arith.constant 0 : index
    %c0_176 = arith.constant 0 : index
    %291 = vector.load %arg4[%c1_173, %c5_174, %c0_175, %c0_176] : memref<2x8x32x32xf32, #tpu.memory_space<vmem>>, vector<1x1x32x32xf32>
    %292 = vector.shape_cast %291 : vector<1x1x32x32xf32> to vector<32x32xf32>
    %c1_177 = arith.constant 1 : index
    %c6_178 = arith.constant 6 : index
    %c0_179 = arith.constant 0 : index
    %c0_180 = arith.constant 0 : index
    %293 = vector.load %arg4[%c1_177, %c6_178, %c0_179, %c0_180] : memref<2x8x32x32xf32, #tpu.memory_space<vmem>>, vector<1x1x32x32xf32>
    %294 = vector.shape_cast %293 : vector<1x1x32x32xf32> to vector<32x32xf32>
    %c1_181 = arith.constant 1 : index
    %c7_182 = arith.constant 7 : index
    %c0_183 = arith.constant 0 : index
    %c0_184 = arith.constant 0 : index
    %295 = vector.load %arg4[%c1_181, %c7_182, %c0_183, %c0_184] : memref<2x8x32x32xf32, #tpu.memory_space<vmem>>, vector<1x1x32x32xf32>
    %296 = vector.shape_cast %295 : vector<1x1x32x32xf32> to vector<32x32xf32>
    %c1_185 = arith.constant 1 : index
    %c0_186 = arith.constant 0 : index
    %c0_187 = arith.constant 0 : index
    %c0_188 = arith.constant 0 : index
    %297 = vector.load %arg5[%c1_185, %c0_186, %c0_187, %c0_188] : memref<2x11x1x32xf32, #tpu.memory_space<vmem>>, vector<1x1x1x32xf32>
    %298 = vector.shape_cast %297 : vector<1x1x1x32xf32> to vector<1x32xf32>
    %c1_189 = arith.constant 1 : index
    %c1_190 = arith.constant 1 : index
    %c0_191 = arith.constant 0 : index
    %c0_192 = arith.constant 0 : index
    %299 = vector.load %arg5[%c1_189, %c1_190, %c0_191, %c0_192] : memref<2x11x1x32xf32, #tpu.memory_space<vmem>>, vector<1x1x1x32xf32>
    %300 = vector.shape_cast %299 : vector<1x1x1x32xf32> to vector<1x32xf32>
    %c1_193 = arith.constant 1 : index
    %c2_194 = arith.constant 2 : index
    %c0_195 = arith.constant 0 : index
    %c0_196 = arith.constant 0 : index
    %301 = vector.load %arg5[%c1_193, %c2_194, %c0_195, %c0_196] : memref<2x11x1x32xf32, #tpu.memory_space<vmem>>, vector<1x1x1x32xf32>
    %302 = vector.shape_cast %301 : vector<1x1x1x32xf32> to vector<1x32xf32>
    %c1_197 = arith.constant 1 : index
    %c3_198 = arith.constant 3 : index
    %c0_199 = arith.constant 0 : index
    %c0_200 = arith.constant 0 : index
    %303 = vector.load %arg5[%c1_197, %c3_198, %c0_199, %c0_200] : memref<2x11x1x32xf32, #tpu.memory_space<vmem>>, vector<1x1x1x32xf32>
    %304 = vector.shape_cast %303 : vector<1x1x1x32xf32> to vector<1x32xf32>
    %c1_201 = arith.constant 1 : index
    %c4_202 = arith.constant 4 : index
    %c0_203 = arith.constant 0 : index
    %c0_204 = arith.constant 0 : index
    %305 = vector.load %arg5[%c1_201, %c4_202, %c0_203, %c0_204] : memref<2x11x1x32xf32, #tpu.memory_space<vmem>>, vector<1x1x1x32xf32>
    %306 = vector.shape_cast %305 : vector<1x1x1x32xf32> to vector<1x32xf32>
    %c1_205 = arith.constant 1 : index
    %c5_206 = arith.constant 5 : index
    %c0_207 = arith.constant 0 : index
    %c0_208 = arith.constant 0 : index
    %307 = vector.load %arg5[%c1_205, %c5_206, %c0_207, %c0_208] : memref<2x11x1x32xf32, #tpu.memory_space<vmem>>, vector<1x1x1x32xf32>
    %308 = vector.shape_cast %307 : vector<1x1x1x32xf32> to vector<1x32xf32>
    %c1_209 = arith.constant 1 : index
    %c6_210 = arith.constant 6 : index
    %c0_211 = arith.constant 0 : index
    %c0_212 = arith.constant 0 : index
    %309 = vector.load %arg5[%c1_209, %c6_210, %c0_211, %c0_212] : memref<2x11x1x32xf32, #tpu.memory_space<vmem>>, vector<1x1x1x32xf32>
    %310 = vector.shape_cast %309 : vector<1x1x1x32xf32> to vector<1x32xf32>
    %c1_213 = arith.constant 1 : index
    %c7_214 = arith.constant 7 : index
    %c0_215 = arith.constant 0 : index
    %c0_216 = arith.constant 0 : index
    %311 = vector.load %arg5[%c1_213, %c7_214, %c0_215, %c0_216] : memref<2x11x1x32xf32, #tpu.memory_space<vmem>>, vector<1x1x1x32xf32>
    %312 = vector.shape_cast %311 : vector<1x1x1x32xf32> to vector<1x32xf32>
    %c1_217 = arith.constant 1 : index
    %c8_218 = arith.constant 8 : index
    %c0_219 = arith.constant 0 : index
    %c0_220 = arith.constant 0 : index
    %313 = vector.load %arg5[%c1_217, %c8_218, %c0_219, %c0_220] : memref<2x11x1x32xf32, #tpu.memory_space<vmem>>, vector<1x1x1x32xf32>
    %314 = vector.shape_cast %313 : vector<1x1x1x32xf32> to vector<1x32xf32>
    %c1_221 = arith.constant 1 : index
    %c9_222 = arith.constant 9 : index
    %c0_223 = arith.constant 0 : index
    %c0_224 = arith.constant 0 : index
    %315 = vector.load %arg5[%c1_221, %c9_222, %c0_223, %c0_224] : memref<2x11x1x32xf32, #tpu.memory_space<vmem>>, vector<1x1x1x32xf32>
    %316 = vector.shape_cast %315 : vector<1x1x1x32xf32> to vector<1x32xf32>
    %c1_225 = arith.constant 1 : index
    %c10_226 = arith.constant 10 : index
    %c0_227 = arith.constant 0 : index
    %c0_228 = arith.constant 0 : index
    %317 = vector.load %arg5[%c1_225, %c10_226, %c0_227, %c0_228] : memref<2x11x1x32xf32, #tpu.memory_space<vmem>>, vector<1x1x1x32xf32>
    %318 = vector.shape_cast %317 : vector<1x1x1x32xf32> to vector<1x32xf32>
    %cst_229 = arith.constant dense<0.000000e+00> : vector<16x32xf32>
    %319 = tpu.matmul %280, %282, %cst_229 {dimension_numbers = #tpu.dot_dimension_numbers<[1], [0], [0], [1], [0, 0, 1, 1], [], []>} : vector<16x32xf32>, vector<32x32xf32>, vector<16x32xf32> -> vector<16x32xf32>
    %320 = vector.broadcast %298 : vector<1x32xf32> to vector<16x32xf32>
    %321 = arith.addf %319, %320 : vector<16x32xf32>
    %cst_230 = arith.constant dense<0.000000e+00> : vector<16x32xf32>
    %322 = tpu.matmul %280, %284, %cst_230 {dimension_numbers = #tpu.dot_dimension_numbers<[1], [0], [0], [1], [0, 0, 1, 1], [], []>} : vector<16x32xf32>, vector<32x32xf32>, vector<16x32xf32> -> vector<16x32xf32>
    %323 = vector.broadcast %300 : vector<1x32xf32> to vector<16x32xf32>
    %324 = arith.addf %322, %323 : vector<16x32xf32>
    %cst_231 = arith.constant dense<0.000000e+00> : vector<16x32xf32>
    %325 = tpu.matmul %280, %286, %cst_231 {dimension_numbers = #tpu.dot_dimension_numbers<[1], [0], [0], [1], [0, 0, 1, 1], [], []>} : vector<16x32xf32>, vector<32x32xf32>, vector<16x32xf32> -> vector<16x32xf32>
    %326 = vector.broadcast %302 : vector<1x32xf32> to vector<16x32xf32>
    %327 = arith.addf %325, %326 : vector<16x32xf32>
    %328 = vector.extract_strided_slice %321 {offsets = [0, 0], sizes = [8, 32], strides = [1, 1]} : vector<16x32xf32> to vector<8x32xf32>
    %329 = vector.extract_strided_slice %324 {offsets = [0, 0], sizes = [8, 32], strides = [1, 1]} : vector<16x32xf32> to vector<8x32xf32>
    %330 = vector.extract_strided_slice %327 {offsets = [0, 0], sizes = [8, 32], strides = [1, 1]} : vector<16x32xf32> to vector<8x32xf32>
    %331 = vector.extract_strided_slice %328 {offsets = [0, 0], sizes = [8, 8], strides = [1, 1]} : vector<8x32xf32> to vector<8x8xf32>
    %332 = vector.extract_strided_slice %329 {offsets = [0, 0], sizes = [8, 8], strides = [1, 1]} : vector<8x32xf32> to vector<8x8xf32>
    %333 = vector.extract_strided_slice %330 {offsets = [0, 0], sizes = [8, 8], strides = [1, 1]} : vector<8x32xf32> to vector<8x8xf32>
    %cst_232 = arith.constant dense<0.000000e+00> : vector<8x8xf32>
    %334 = tpu.matmul %331, %332, %cst_232 {dimension_numbers = #tpu.dot_dimension_numbers<[1], [1], [0], [0], [0, 0, 1, 0], [], []>} : vector<8x8xf32>, vector<8x8xf32>, vector<8x8xf32> -> vector<8x8xf32>
    %cst_233 = arith.constant dense<0xFF800000> : vector<8xf32>
    %335 = vector.multi_reduction <maximumf>, %334, %cst_233 [1] : vector<8x8xf32> to vector<8xf32>
    %336 = vector.shape_cast %335 : vector<8xf32> to vector<8x1xf32>
    %337 = vector.broadcast %336 : vector<8x1xf32> to vector<8x8xf32>
    %338 = arith.subf %334, %337 : vector<8x8xf32>
    %339 = math.exp %338 : vector<8x8xf32>
    %cst_234 = arith.constant dense<0.000000e+00> : vector<8xf32>
    %340 = vector.multi_reduction <add>, %339, %cst_234 [1] : vector<8x8xf32> to vector<8xf32>
    %341 = vector.shape_cast %340 : vector<8xf32> to vector<8x1xf32>
    %342 = tpu.reciprocal %341 {approx = true} : vector<8x1xf32> -> vector<8x1xf32>
    %343 = vector.broadcast %342 : vector<8x1xf32> to vector<8x8xf32>
    %344 = arith.mulf %339, %343 : vector<8x8xf32>
    %cst_235 = arith.constant dense<0.000000e+00> : vector<8x8xf32>
    %345 = tpu.matmul %344, %333, %cst_235 {dimension_numbers = #tpu.dot_dimension_numbers<[1], [0], [0], [1], [0, 0, 1, 1], [], []>} : vector<8x8xf32>, vector<8x8xf32>, vector<8x8xf32> -> vector<8x8xf32>
    %c0_236 = arith.constant 0 : index
    %c0_237 = arith.constant 0 : index
    %346 = vector.load %arg9[%c0_236, %c0_237] : memref<16x32xf32, #tpu.memory_space<vmem>>, vector<8x8xf32>
    tpu.vector_store %arg9[%c0_236, %c0_237], %345 {strides = array<i32>} : memref<16x32xf32, #tpu.memory_space<vmem>>, vector<8x8xf32>,
    %347 = vector.extract_strided_slice %328 {offsets = [0, 8], sizes = [8, 8], strides = [1, 1]} : vector<8x32xf32> to vector<8x8xf32>
    %348 = vector.extract_strided_slice %329 {offsets = [0, 8], sizes = [8, 8], strides = [1, 1]} : vector<8x32xf32> to vector<8x8xf32>
    %349 = vector.extract_strided_slice %330 {offsets = [0, 8], sizes = [8, 8], strides = [1, 1]} : vector<8x32xf32> to vector<8x8xf32>
    %cst_238 = arith.constant dense<0.000000e+00> : vector<8x8xf32>
    %350 = tpu.matmul %347, %348, %cst_238 {dimension_numbers = #tpu.dot_dimension_numbers<[1], [1], [0], [0], [0, 0, 1, 0], [], []>} : vector<8x8xf32>, vector<8x8xf32>, vector<8x8xf32> -> vector<8x8xf32>
    %cst_239 = arith.constant dense<0xFF800000> : vector<8xf32>
    %351 = vector.multi_reduction <maximumf>, %350, %cst_239 [1] : vector<8x8xf32> to vector<8xf32>
    %352 = vector.shape_cast %351 : vector<8xf32> to vector<8x1xf32>
    %353 = vector.broadcast %352 : vector<8x1xf32> to vector<8x8xf32>
    %354 = arith.subf %350, %353 : vector<8x8xf32>
    %355 = math.exp %354 : vector<8x8xf32>
    %cst_240 = arith.constant dense<0.000000e+00> : vector<8xf32>
    %356 = vector.multi_reduction <add>, %355, %cst_240 [1] : vector<8x8xf32> to vector<8xf32>
    %357 = vector.shape_cast %356 : vector<8xf32> to vector<8x1xf32>
    %358 = tpu.reciprocal %357 {approx = true} : vector<8x1xf32> -> vector<8x1xf32>
    %359 = vector.broadcast %358 : vector<8x1xf32> to vector<8x8xf32>
    %360 = arith.mulf %355, %359 : vector<8x8xf32>
    %cst_241 = arith.constant dense<0.000000e+00> : vector<8x8xf32>
    %361 = tpu.matmul %360, %349, %cst_241 {dimension_numbers = #tpu.dot_dimension_numbers<[1], [0], [0], [1], [0, 0, 1, 1], [], []>} : vector<8x8xf32>, vector<8x8xf32>, vector<8x8xf32> -> vector<8x8xf32>
    %c0_242 = arith.constant 0 : index
    %c8_243 = arith.constant 8 : index
    %362 = vector.load %arg9[%c0_242, %c8_243] : memref<16x32xf32, #tpu.memory_space<vmem>>, vector<8x8xf32>
    tpu.vector_store %arg9[%c0_242, %c8_243], %361 {strides = array<i32>} : memref<16x32xf32, #tpu.memory_space<vmem>>, vector<8x8xf32>,
    %363 = vector.extract_strided_slice %328 {offsets = [0, 16], sizes = [8, 8], strides = [1, 1]} : vector<8x32xf32> to vector<8x8xf32>
    %364 = vector.extract_strided_slice %329 {offsets = [0, 16], sizes = [8, 8], strides = [1, 1]} : vector<8x32xf32> to vector<8x8xf32>
    %365 = vector.extract_strided_slice %330 {offsets = [0, 16], sizes = [8, 8], strides = [1, 1]} : vector<8x32xf32> to vector<8x8xf32>
    %cst_244 = arith.constant dense<0.000000e+00> : vector<8x8xf32>
    %366 = tpu.matmul %363, %364, %cst_244 {dimension_numbers = #tpu.dot_dimension_numbers<[1], [1], [0], [0], [0, 0, 1, 0], [], []>} : vector<8x8xf32>, vector<8x8xf32>, vector<8x8xf32> -> vector<8x8xf32>
    %cst_245 = arith.constant dense<0xFF800000> : vector<8xf32>
    %367 = vector.multi_reduction <maximumf>, %366, %cst_245 [1] : vector<8x8xf32> to vector<8xf32>
    %368 = vector.shape_cast %367 : vector<8xf32> to vector<8x1xf32>
    %369 = vector.broadcast %368 : vector<8x1xf32> to vector<8x8xf32>
    %370 = arith.subf %366, %369 : vector<8x8xf32>
    %371 = math.exp %370 : vector<8x8xf32>
    %cst_246 = arith.constant dense<0.000000e+00> : vector<8xf32>
    %372 = vector.multi_reduction <add>, %371, %cst_246 [1] : vector<8x8xf32> to vector<8xf32>
    %373 = vector.shape_cast %372 : vector<8xf32> to vector<8x1xf32>
    %374 = tpu.reciprocal %373 {approx = true} : vector<8x1xf32> -> vector<8x1xf32>
    %375 = vector.broadcast %374 : vector<8x1xf32> to vector<8x8xf32>
    %376 = arith.mulf %371, %375 : vector<8x8xf32>
    %cst_247 = arith.constant dense<0.000000e+00> : vector<8x8xf32>
    %377 = tpu.matmul %376, %365, %cst_247 {dimension_numbers = #tpu.dot_dimension_numbers<[1], [0], [0], [1], [0, 0, 1, 1], [], []>} : vector<8x8xf32>, vector<8x8xf32>, vector<8x8xf32> -> vector<8x8xf32>
    %c0_248 = arith.constant 0 : index
    %c16_249 = arith.constant 16 : index
    %378 = vector.load %arg9[%c0_248, %c16_249] : memref<16x32xf32, #tpu.memory_space<vmem>>, vector<8x8xf32>
    tpu.vector_store %arg9[%c0_248, %c16_249], %377 {strides = array<i32>} : memref<16x32xf32, #tpu.memory_space<vmem>>, vector<8x8xf32>,
    %379 = vector.extract_strided_slice %328 {offsets = [0, 24], sizes = [8, 8], strides = [1, 1]} : vector<8x32xf32> to vector<8x8xf32>
    %380 = vector.extract_strided_slice %329 {offsets = [0, 24], sizes = [8, 8], strides = [1, 1]} : vector<8x32xf32> to vector<8x8xf32>
    %381 = vector.extract_strided_slice %330 {offsets = [0, 24], sizes = [8, 8], strides = [1, 1]} : vector<8x32xf32> to vector<8x8xf32>
    %cst_250 = arith.constant dense<0.000000e+00> : vector<8x8xf32>
    %382 = tpu.matmul %379, %380, %cst_250 {dimension_numbers = #tpu.dot_dimension_numbers<[1], [1], [0], [0], [0, 0, 1, 0], [], []>} : vector<8x8xf32>, vector<8x8xf32>, vector<8x8xf32> -> vector<8x8xf32>
    %cst_251 = arith.constant dense<0xFF800000> : vector<8xf32>
    %383 = vector.multi_reduction <maximumf>, %382, %cst_251 [1] : vector<8x8xf32> to vector<8xf32>
    %384 = vector.shape_cast %383 : vector<8xf32> to vector<8x1xf32>
    %385 = vector.broadcast %384 : vector<8x1xf32> to vector<8x8xf32>
    %386 = arith.subf %382, %385 : vector<8x8xf32>
    %387 = math.exp %386 : vector<8x8xf32>
    %cst_252 = arith.constant dense<0.000000e+00> : vector<8xf32>
    %388 = vector.multi_reduction <add>, %387, %cst_252 [1] : vector<8x8xf32> to vector<8xf32>
    %389 = vector.shape_cast %388 : vector<8xf32> to vector<8x1xf32>
    %390 = tpu.reciprocal %389 {approx = true} : vector<8x1xf32> -> vector<8x1xf32>
    %391 = vector.broadcast %390 : vector<8x1xf32> to vector<8x8xf32>
    %392 = arith.mulf %387, %391 : vector<8x8xf32>
    %cst_253 = arith.constant dense<0.000000e+00> : vector<8x8xf32>
    %393 = tpu.matmul %392, %381, %cst_253 {dimension_numbers = #tpu.dot_dimension_numbers<[1], [0], [0], [1], [0, 0, 1, 1], [], []>} : vector<8x8xf32>, vector<8x8xf32>, vector<8x8xf32> -> vector<8x8xf32>
    %c0_254 = arith.constant 0 : index
    %c24_255 = arith.constant 24 : index
    %394 = vector.load %arg9[%c0_254, %c24_255] : memref<16x32xf32, #tpu.memory_space<vmem>>, vector<8x8xf32>
    tpu.vector_store %arg9[%c0_254, %c24_255], %393 {strides = array<i32>} : memref<16x32xf32, #tpu.memory_space<vmem>>, vector<8x8xf32>,
    %395 = vector.extract_strided_slice %321 {offsets = [8, 0], sizes = [8, 32], strides = [1, 1]} : vector<16x32xf32> to vector<8x32xf32>
    %396 = vector.extract_strided_slice %324 {offsets = [8, 0], sizes = [8, 32], strides = [1, 1]} : vector<16x32xf32> to vector<8x32xf32>
    %397 = vector.extract_strided_slice %327 {offsets = [8, 0], sizes = [8, 32], strides = [1, 1]} : vector<16x32xf32> to vector<8x32xf32>
    %398 = vector.extract_strided_slice %395 {offsets = [0, 0], sizes = [8, 8], strides = [1, 1]} : vector<8x32xf32> to vector<8x8xf32>
    %399 = vector.extract_strided_slice %396 {offsets = [0, 0], sizes = [8, 8], strides = [1, 1]} : vector<8x32xf32> to vector<8x8xf32>
    %400 = vector.extract_strided_slice %397 {offsets = [0, 0], sizes = [8, 8], strides = [1, 1]} : vector<8x32xf32> to vector<8x8xf32>
    %cst_256 = arith.constant dense<0.000000e+00> : vector<8x8xf32>
    %401 = tpu.matmul %398, %399, %cst_256 {dimension_numbers = #tpu.dot_dimension_numbers<[1], [1], [0], [0], [0, 0, 1, 0], [], []>} : vector<8x8xf32>, vector<8x8xf32>, vector<8x8xf32> -> vector<8x8xf32>
    %cst_257 = arith.constant dense<0xFF800000> : vector<8xf32>
    %402 = vector.multi_reduction <maximumf>, %401, %cst_257 [1] : vector<8x8xf32> to vector<8xf32>
    %403 = vector.shape_cast %402 : vector<8xf32> to vector<8x1xf32>
    %404 = vector.broadcast %403 : vector<8x1xf32> to vector<8x8xf32>
    %405 = arith.subf %401, %404 : vector<8x8xf32>
    %406 = math.exp %405 : vector<8x8xf32>
    %cst_258 = arith.constant dense<0.000000e+00> : vector<8xf32>
    %407 = vector.multi_reduction <add>, %406, %cst_258 [1] : vector<8x8xf32> to vector<8xf32>
    %408 = vector.shape_cast %407 : vector<8xf32> to vector<8x1xf32>
    %409 = tpu.reciprocal %408 {approx = true} : vector<8x1xf32> -> vector<8x1xf32>
    %410 = vector.broadcast %409 : vector<8x1xf32> to vector<8x8xf32>
    %411 = arith.mulf %406, %410 : vector<8x8xf32>
    %cst_259 = arith.constant dense<0.000000e+00> : vector<8x8xf32>
    %412 = tpu.matmul %411, %400, %cst_259 {dimension_numbers = #tpu.dot_dimension_numbers<[1], [0], [0], [1], [0, 0, 1, 1], [], []>} : vector<8x8xf32>, vector<8x8xf32>, vector<8x8xf32> -> vector<8x8xf32>
    %c8_260 = arith.constant 8 : index
    %c0_261 = arith.constant 0 : index
    %413 = vector.load %arg9[%c8_260, %c0_261] : memref<16x32xf32, #tpu.memory_space<vmem>>, vector<8x8xf32>
    tpu.vector_store %arg9[%c8_260, %c0_261], %412 {strides = array<i32>} : memref<16x32xf32, #tpu.memory_space<vmem>>, vector<8x8xf32>,
    %414 = vector.extract_strided_slice %395 {offsets = [0, 8], sizes = [8, 8], strides = [1, 1]} : vector<8x32xf32> to vector<8x8xf32>
    %415 = vector.extract_strided_slice %396 {offsets = [0, 8], sizes = [8, 8], strides = [1, 1]} : vector<8x32xf32> to vector<8x8xf32>
    %416 = vector.extract_strided_slice %397 {offsets = [0, 8], sizes = [8, 8], strides = [1, 1]} : vector<8x32xf32> to vector<8x8xf32>
    %cst_262 = arith.constant dense<0.000000e+00> : vector<8x8xf32>
    %417 = tpu.matmul %414, %415, %cst_262 {dimension_numbers = #tpu.dot_dimension_numbers<[1], [1], [0], [0], [0, 0, 1, 0], [], []>} : vector<8x8xf32>, vector<8x8xf32>, vector<8x8xf32> -> vector<8x8xf32>
    %cst_263 = arith.constant dense<0xFF800000> : vector<8xf32>
    %418 = vector.multi_reduction <maximumf>, %417, %cst_263 [1] : vector<8x8xf32> to vector<8xf32>
    %419 = vector.shape_cast %418 : vector<8xf32> to vector<8x1xf32>
    %420 = vector.broadcast %419 : vector<8x1xf32> to vector<8x8xf32>
    %421 = arith.subf %417, %420 : vector<8x8xf32>
    %422 = math.exp %421 : vector<8x8xf32>
    %cst_264 = arith.constant dense<0.000000e+00> : vector<8xf32>
    %423 = vector.multi_reduction <add>, %422, %cst_264 [1] : vector<8x8xf32> to vector<8xf32>
    %424 = vector.shape_cast %423 : vector<8xf32> to vector<8x1xf32>
    %425 = tpu.reciprocal %424 {approx = true} : vector<8x1xf32> -> vector<8x1xf32>
    %426 = vector.broadcast %425 : vector<8x1xf32> to vector<8x8xf32>
    %427 = arith.mulf %422, %426 : vector<8x8xf32>
    %cst_265 = arith.constant dense<0.000000e+00> : vector<8x8xf32>
    %428 = tpu.matmul %427, %416, %cst_265 {dimension_numbers = #tpu.dot_dimension_numbers<[1], [0], [0], [1], [0, 0, 1, 1], [], []>} : vector<8x8xf32>, vector<8x8xf32>, vector<8x8xf32> -> vector<8x8xf32>
    %c8_266 = arith.constant 8 : index
    %c8_267 = arith.constant 8 : index
    %429 = vector.load %arg9[%c8_266, %c8_267] : memref<16x32xf32, #tpu.memory_space<vmem>>, vector<8x8xf32>
    tpu.vector_store %arg9[%c8_266, %c8_267], %428 {strides = array<i32>} : memref<16x32xf32, #tpu.memory_space<vmem>>, vector<8x8xf32>,
    %430 = vector.extract_strided_slice %395 {offsets = [0, 16], sizes = [8, 8], strides = [1, 1]} : vector<8x32xf32> to vector<8x8xf32>
    %431 = vector.extract_strided_slice %396 {offsets = [0, 16], sizes = [8, 8], strides = [1, 1]} : vector<8x32xf32> to vector<8x8xf32>
    %432 = vector.extract_strided_slice %397 {offsets = [0, 16], sizes = [8, 8], strides = [1, 1]} : vector<8x32xf32> to vector<8x8xf32>
    %cst_268 = arith.constant dense<0.000000e+00> : vector<8x8xf32>
    %433 = tpu.matmul %430, %431, %cst_268 {dimension_numbers = #tpu.dot_dimension_numbers<[1], [1], [0], [0], [0, 0, 1, 0], [], []>} : vector<8x8xf32>, vector<8x8xf32>, vector<8x8xf32> -> vector<8x8xf32>
    %cst_269 = arith.constant dense<0xFF800000> : vector<8xf32>
    %434 = vector.multi_reduction <maximumf>, %433, %cst_269 [1] : vector<8x8xf32> to vector<8xf32>
    %435 = vector.shape_cast %434 : vector<8xf32> to vector<8x1xf32>
    %436 = vector.broadcast %435 : vector<8x1xf32> to vector<8x8xf32>
    %437 = arith.subf %433, %436 : vector<8x8xf32>
    %438 = math.exp %437 : vector<8x8xf32>
    %cst_270 = arith.constant dense<0.000000e+00> : vector<8xf32>
    %439 = vector.multi_reduction <add>, %438, %cst_270 [1] : vector<8x8xf32> to vector<8xf32>
    %440 = vector.shape_cast %439 : vector<8xf32> to vector<8x1xf32>
    %441 = tpu.reciprocal %440 {approx = true} : vector<8x1xf32> -> vector<8x1xf32>
    %442 = vector.broadcast %441 : vector<8x1xf32> to vector<8x8xf32>
    %443 = arith.mulf %438, %442 : vector<8x8xf32>
    %cst_271 = arith.constant dense<0.000000e+00> : vector<8x8xf32>
    %444 = tpu.matmul %443, %432, %cst_271 {dimension_numbers = #tpu.dot_dimension_numbers<[1], [0], [0], [1], [0, 0, 1, 1], [], []>} : vector<8x8xf32>, vector<8x8xf32>, vector<8x8xf32> -> vector<8x8xf32>
    %c8_272 = arith.constant 8 : index
    %c16_273 = arith.constant 16 : index
    %445 = vector.load %arg9[%c8_272, %c16_273] : memref<16x32xf32, #tpu.memory_space<vmem>>, vector<8x8xf32>
    tpu.vector_store %arg9[%c8_272, %c16_273], %444 {strides = array<i32>} : memref<16x32xf32, #tpu.memory_space<vmem>>, vector<8x8xf32>,
    %446 = vector.extract_strided_slice %395 {offsets = [0, 24], sizes = [8, 8], strides = [1, 1]} : vector<8x32xf32> to vector<8x8xf32>
    %447 = vector.extract_strided_slice %396 {offsets = [0, 24], sizes = [8, 8], strides = [1, 1]} : vector<8x32xf32> to vector<8x8xf32>
    %448 = vector.extract_strided_slice %397 {offsets = [0, 24], sizes = [8, 8], strides = [1, 1]} : vector<8x32xf32> to vector<8x8xf32>
    %cst_274 = arith.constant dense<0.000000e+00> : vector<8x8xf32>
    %449 = tpu.matmul %446, %447, %cst_274 {dimension_numbers = #tpu.dot_dimension_numbers<[1], [1], [0], [0], [0, 0, 1, 0], [], []>} : vector<8x8xf32>, vector<8x8xf32>, vector<8x8xf32> -> vector<8x8xf32>
    %cst_275 = arith.constant dense<0xFF800000> : vector<8xf32>
    %450 = vector.multi_reduction <maximumf>, %449, %cst_275 [1] : vector<8x8xf32> to vector<8xf32>
    %451 = vector.shape_cast %450 : vector<8xf32> to vector<8x1xf32>
    %452 = vector.broadcast %451 : vector<8x1xf32> to vector<8x8xf32>
    %453 = arith.subf %449, %452 : vector<8x8xf32>
    %454 = math.exp %453 : vector<8x8xf32>
    %cst_276 = arith.constant dense<0.000000e+00> : vector<8xf32>
    %455 = vector.multi_reduction <add>, %454, %cst_276 [1] : vector<8x8xf32> to vector<8xf32>
    %456 = vector.shape_cast %455 : vector<8xf32> to vector<8x1xf32>
    %457 = tpu.reciprocal %456 {approx = true} : vector<8x1xf32> -> vector<8x1xf32>
    %458 = vector.broadcast %457 : vector<8x1xf32> to vector<8x8xf32>
    %459 = arith.mulf %454, %458 : vector<8x8xf32>
    %cst_277 = arith.constant dense<0.000000e+00> : vector<8x8xf32>
    %460 = tpu.matmul %459, %448, %cst_277 {dimension_numbers = #tpu.dot_dimension_numbers<[1], [0], [0], [1], [0, 0, 1, 1], [], []>} : vector<8x8xf32>, vector<8x8xf32>, vector<8x8xf32> -> vector<8x8xf32>
    %c8_278 = arith.constant 8 : index
    %c24_279 = arith.constant 24 : index
    %461 = vector.load %arg9[%c8_278, %c24_279] : memref<16x32xf32, #tpu.memory_space<vmem>>, vector<8x8xf32>
    tpu.vector_store %arg9[%c8_278, %c24_279], %460 {strides = array<i32>} : memref<16x32xf32, #tpu.memory_space<vmem>>, vector<8x8xf32>,
    %c0_280 = arith.constant 0 : index
    %c0_281 = arith.constant 0 : index
    %462 = vector.load %arg9[%c0_280, %c0_281] : memref<16x32xf32, #tpu.memory_space<vmem>>, vector<16x32xf32>
    %cst_282 = arith.constant dense<0.000000e+00> : vector<16x32xf32>
    %463 = tpu.matmul %462, %288, %cst_282 {dimension_numbers = #tpu.dot_dimension_numbers<[1], [0], [0], [1], [0, 0, 1, 1], [], []>} : vector<16x32xf32>, vector<32x32xf32>, vector<16x32xf32> -> vector<16x32xf32>
    %464 = vector.broadcast %304 : vector<1x32xf32> to vector<16x32xf32>
    %465 = arith.addf %463, %464 : vector<16x32xf32>
    %466 = arith.addf %280, %465 : vector<16x32xf32>
    %cst_283 = arith.constant dense<0.000000e+00> : vector<16xf32>
    %467 = vector.multi_reduction <add>, %466, %cst_283 [1] : vector<16x32xf32> to vector<16xf32>
    %468 = vector.shape_cast %467 : vector<16xf32> to vector<16x1xf32>
    %cst_284 = arith.constant 3.200000e+01 : f32
    %469 = vector.broadcast %cst_284 : f32 to vector<16x1xf32>
    %470 = arith.divf %468, %469 : vector<16x1xf32>
    %471 = vector.broadcast %470 : vector<16x1xf32> to vector<16x32xf32>
    %472 = arith.subf %466, %471 : vector<16x32xf32>
    %473 = arith.mulf %472, %472 : vector<16x32xf32>
    %cst_285 = arith.constant dense<0.000000e+00> : vector<16xf32>
    %474 = vector.multi_reduction <add>, %473, %cst_285 [1] : vector<16x32xf32> to vector<16xf32>
    %475 = vector.shape_cast %474 : vector<16xf32> to vector<16x1xf32>
    %cst_286 = arith.constant 3.200000e+01 : f32
    %476 = vector.broadcast %cst_286 : f32 to vector<16x1xf32>
    %477 = arith.divf %475, %476 : vector<16x1xf32>
    %478 = vector.broadcast %470 : vector<16x1xf32> to vector<16x32xf32>
    %479 = arith.subf %466, %478 : vector<16x32xf32>
    %480 = vector.broadcast %312 : vector<1x32xf32> to vector<16x32xf32>
    %481 = arith.mulf %480, %479 : vector<16x32xf32>
    %cst_287 = arith.constant 9.99999974E-6 : f32
    %482 = vector.broadcast %cst_287 : f32 to vector<16x1xf32>
    %483 = arith.addf %477, %482 : vector<16x1xf32>
    %484 = math.sqrt %483 : vector<16x1xf32>
    %485 = vector.broadcast %484 : vector<16x1xf32> to vector<16x32xf32>
    %486 = arith.divf %481, %485 : vector<16x32xf32>
    %487 = vector.broadcast %314 : vector<1x32xf32> to vector<16x32xf32>
    %488 = arith.addf %486, %487 : vector<16x32xf32>
    %cst_288 = arith.constant dense<0.000000e+00> : vector<16x32xf32>
    %489 = tpu.matmul %488, %290, %cst_288 {dimension_numbers = #tpu.dot_dimension_numbers<[1], [0], [0], [1], [0, 0, 1, 1], [], []>} : vector<16x32xf32>, vector<32x32xf32>, vector<16x32xf32> -> vector<16x32xf32>
    %490 = vector.broadcast %306 : vector<1x32xf32> to vector<16x32xf32>
    %491 = arith.addf %489, %490 : vector<16x32xf32>
    %cst_289 = arith.constant 0.000000e+00 : f32
    %492 = vector.broadcast %cst_289 : f32 to vector<16x32xf32>
    %493 = arith.maximumf %491, %492 : vector<16x32xf32>
    %cst_290 = arith.constant dense<0.000000e+00> : vector<16x32xf32>
    %494 = tpu.matmul %488, %292, %cst_290 {dimension_numbers = #tpu.dot_dimension_numbers<[1], [0], [0], [1], [0, 0, 1, 1], [], []>} : vector<16x32xf32>, vector<32x32xf32>, vector<16x32xf32> -> vector<16x32xf32>
    %495 = vector.broadcast %308 : vector<1x32xf32> to vector<16x32xf32>
    %496 = arith.addf %494, %495 : vector<16x32xf32>
    %cst_291 = arith.constant 0.000000e+00 : f32
    %497 = vector.broadcast %cst_291 : f32 to vector<16x32xf32>
    %498 = arith.maximumf %496, %497 : vector<16x32xf32>
    %cst_292 = arith.constant dense<0.000000e+00> : vector<16x32xf32>
    %499 = tpu.matmul %493, %294, %cst_292 {dimension_numbers = #tpu.dot_dimension_numbers<[1], [0], [0], [1], [0, 0, 1, 1], [], []>} : vector<16x32xf32>, vector<32x32xf32>, vector<16x32xf32> -> vector<16x32xf32>
    %cst_293 = arith.constant dense<0.000000e+00> : vector<16x32xf32>
    %500 = tpu.matmul %498, %296, %cst_293 {dimension_numbers = #tpu.dot_dimension_numbers<[1], [0], [0], [1], [0, 0, 1, 1], [], []>} : vector<16x32xf32>, vector<32x32xf32>, vector<16x32xf32> -> vector<16x32xf32>
    %501 = arith.addf %499, %500 : vector<16x32xf32>
    %502 = vector.broadcast %310 : vector<1x32xf32> to vector<16x32xf32>
    %503 = arith.addf %501, %502 : vector<16x32xf32>
    %504 = arith.addf %488, %503 : vector<16x32xf32>
    %cst_294 = arith.constant dense<0.000000e+00> : vector<16xf32>
    %505 = vector.multi_reduction <add>, %504, %cst_294 [1] : vector<16x32xf32> to vector<16xf32>
    %506 = vector.shape_cast %505 : vector<16xf32> to vector<16x1xf32>
    %cst_295 = arith.constant 3.200000e+01 : f32
    %507 = vector.broadcast %cst_295 : f32 to vector<16x1xf32>
    %508 = arith.divf %506, %507 : vector<16x1xf32>
    %509 = vector.broadcast %508 : vector<16x1xf32> to vector<16x32xf32>
    %510 = arith.subf %504, %509 : vector<16x32xf32>
    %511 = arith.mulf %510, %510 : vector<16x32xf32>
    %cst_296 = arith.constant dense<0.000000e+00> : vector<16xf32>
    %512 = vector.multi_reduction <add>, %511, %cst_296 [1] : vector<16x32xf32> to vector<16xf32>
    %513 = vector.shape_cast %512 : vector<16xf32> to vector<16x1xf32>
    %cst_297 = arith.constant 3.200000e+01 : f32
    %514 = vector.broadcast %cst_297 : f32 to vector<16x1xf32>
    %515 = arith.divf %513, %514 : vector<16x1xf32>
    %516 = vector.broadcast %508 : vector<16x1xf32> to vector<16x32xf32>
    %517 = arith.subf %504, %516 : vector<16x32xf32>
    %518 = vector.broadcast %316 : vector<1x32xf32> to vector<16x32xf32>
    %519 = arith.mulf %518, %517 : vector<16x32xf32>
    %cst_298 = arith.constant 9.99999974E-6 : f32
    %520 = vector.broadcast %cst_298 : f32 to vector<16x1xf32>
    %521 = arith.addf %515, %520 : vector<16x1xf32>
    %522 = math.sqrt %521 : vector<16x1xf32>
    %523 = vector.broadcast %522 : vector<16x1xf32> to vector<16x32xf32>
    %524 = arith.divf %519, %523 : vector<16x32xf32>
    %525 = vector.broadcast %318 : vector<1x32xf32> to vector<16x32xf32>
    %526 = arith.addf %524, %525 : vector<16x32xf32>
    %c0_299 = arith.constant 0 : index
    %c0_300 = arith.constant 0 : index
    %527 = vector.load %arg6[%c0_299, %c0_300] : memref<32x16xf32, #tpu.memory_space<vmem>>, vector<32x16xf32>
    %cst_301 = arith.constant dense<0.000000e+00> : vector<16x16xf32>
    %528 = tpu.matmul %526, %527, %cst_301 {dimension_numbers = #tpu.dot_dimension_numbers<[1], [0], [0], [1], [0, 0, 1, 1], [], []>} : vector<16x32xf32>, vector<32x16xf32>, vector<16x16xf32> -> vector<16x16xf32>
    %c0_302 = arith.constant 0 : index
    %c0_303 = arith.constant 0 : index
    %c0_304 = arith.constant 0 : index
    %529 = vector.load %arg7[%c0_302, %c0_303, %c0_304] : memref<5x1x16xf32, #tpu.memory_space<vmem>>, vector<1x1x16xf32>
    %530 = vector.shape_cast %529 : vector<1x1x16xf32> to vector<1x16xf32>
    %531 = vector.broadcast %530 : vector<1x16xf32> to vector<16x16xf32>
    %532 = arith.addf %528, %531 : vector<16x16xf32>
    %cst_305 = arith.constant 0.000000e+00 : f32
    %533 = vector.broadcast %cst_305 : f32 to vector<16x16xf32>
    %534 = arith.maximumf %532, %533 : vector<16x16xf32>
    %c1_306 = arith.constant 1 : index
    %c0_307 = arith.constant 0 : index
    %c0_308 = arith.constant 0 : index
    %535 = vector.load %arg7[%c1_306, %c0_307, %c0_308] : memref<5x1x16xf32, #tpu.memory_space<vmem>>, vector<1x1x16xf32>
    %536 = vector.shape_cast %535 : vector<1x1x16xf32> to vector<1x16xf32>
    %c2_309 = arith.constant 2 : index
    %c0_310 = arith.constant 0 : index
    %c0_311 = arith.constant 0 : index
    %537 = vector.load %arg7[%c2_309, %c0_310, %c0_311] : memref<5x1x16xf32, #tpu.memory_space<vmem>>, vector<1x1x16xf32>
    %538 = vector.shape_cast %537 : vector<1x1x16xf32> to vector<1x16xf32>
    %cst_312 = arith.constant dense<0.000000e+00> : vector<16xf32>
    %539 = vector.multi_reduction <add>, %534, %cst_312 [1] : vector<16x16xf32> to vector<16xf32>
    %540 = vector.shape_cast %539 : vector<16xf32> to vector<16x1xf32>
    %cst_313 = arith.constant 1.600000e+01 : f32
    %541 = vector.broadcast %cst_313 : f32 to vector<16x1xf32>
    %542 = arith.divf %540, %541 : vector<16x1xf32>
    %543 = vector.broadcast %542 : vector<16x1xf32> to vector<16x16xf32>
    %544 = arith.subf %534, %543 : vector<16x16xf32>
    %545 = arith.mulf %544, %544 : vector<16x16xf32>
    %cst_314 = arith.constant dense<0.000000e+00> : vector<16xf32>
    %546 = vector.multi_reduction <add>, %545, %cst_314 [1] : vector<16x16xf32> to vector<16xf32>
    %547 = vector.shape_cast %546 : vector<16xf32> to vector<16x1xf32>
    %cst_315 = arith.constant 1.500000e+01 : f32
    %548 = vector.broadcast %cst_315 : f32 to vector<16x1xf32>
    %549 = arith.divf %547, %548 : vector<16x1xf32>
    %550 = vector.broadcast %542 : vector<16x1xf32> to vector<16x16xf32>
    %551 = arith.subf %534, %550 : vector<16x16xf32>
    %552 = vector.broadcast %536 : vector<1x16xf32> to vector<16x16xf32>
    %553 = arith.mulf %552, %551 : vector<16x16xf32>
    %554 = math.sqrt %549 : vector<16x1xf32>
    %cst_316 = arith.constant 9.99999997E-7 : f32
    %555 = vector.broadcast %cst_316 : f32 to vector<16x1xf32>
    %556 = arith.addf %554, %555 : vector<16x1xf32>
    %557 = vector.broadcast %556 : vector<16x1xf32> to vector<16x16xf32>
    %558 = arith.divf %553, %557 : vector<16x16xf32>
    %559 = vector.broadcast %538 : vector<1x16xf32> to vector<16x16xf32>
    %560 = arith.addf %558, %559 : vector<16x16xf32>
    %c3_317 = arith.constant 3 : index
    %c0_318 = arith.constant 0 : index
    %c0_319 = arith.constant 0 : index
    %561 = vector.load %arg7[%c3_317, %c0_318, %c0_319] : memref<5x1x16xf32, #tpu.memory_space<vmem>>, vector<1x1x16xf32>
    %562 = vector.shape_cast %561 : vector<1x1x16xf32> to vector<1x16xf32>
    %c4_320 = arith.constant 4 : index
    %c0_321 = arith.constant 0 : index
    %c0_322 = arith.constant 0 : index
    %563 = vector.load %arg7[%c4_320, %c0_321, %c0_322] : memref<5x1x16xf32, #tpu.memory_space<vmem>>, vector<1x1x16xf32>
    %564 = vector.shape_cast %563 : vector<1x1x16xf32> to vector<1x16xf32>
    %565 = vector.extract_strided_slice %564 {offsets = [0, 0], sizes = [1, 1], strides = [1, 1]} : vector<1x16xf32> to vector<1x1xf32>
    %566 = vector.extract_strided_slice %560 {offsets = [0, 0], sizes = [8, 16], strides = [1, 1]} : vector<16x16xf32> to vector<8x16xf32>
    %cst_323 = arith.constant dense<0.000000e+00> : vector<1x8xf32>
    %567 = tpu.matmul %562, %566, %cst_323 {dimension_numbers = #tpu.dot_dimension_numbers<[1], [1], [0], [0], [0, 0, 1, 0], [], []>} : vector<1x16xf32>, vector<8x16xf32>, vector<1x8xf32> -> vector<1x8xf32>
    %568 = vector.broadcast %565 : vector<1x1xf32> to vector<1x8xf32>
    %569 = arith.addf %567, %568 : vector<1x8xf32>
    %cst_324 = arith.constant 5.000000e-01 : f32
    %570 = vector.broadcast %cst_324 : f32 to vector<1x8xf32>
    %571 = arith.mulf %570, %569 : vector<1x8xf32>
    %572 = math.tanh %571 : vector<1x8xf32>
    %cst_325 = arith.constant 1.000000e+00 : f32
    %573 = vector.broadcast %cst_325 : f32 to vector<1x8xf32>
    %574 = arith.addf %572, %573 : vector<1x8xf32>
    %cst_326 = arith.constant 5.000000e-01 : f32
    %575 = vector.broadcast %cst_326 : f32 to vector<1x8xf32>
    %576 = arith.mulf %575, %574 : vector<1x8xf32>
    %c0_327 = arith.constant 0 : index
    %c0_328 = arith.constant 0 : index
    %577 = vector.load %arg8[%c0_327, %c0_328] : memref<2x8xf32, #tpu.memory_space<vmem>>, vector<1x8xf32>
    tpu.vector_store %arg8[%c0_327, %c0_328], %576 {strides = array<i32>} : memref<2x8xf32, #tpu.memory_space<vmem>>, vector<1x8xf32>,
    %578 = vector.extract_strided_slice %560 {offsets = [8, 0], sizes = [8, 16], strides = [1, 1]} : vector<16x16xf32> to vector<8x16xf32>
    %cst_329 = arith.constant dense<0.000000e+00> : vector<1x8xf32>
    %579 = tpu.matmul %562, %578, %cst_329 {dimension_numbers = #tpu.dot_dimension_numbers<[1], [1], [0], [0], [0, 0, 1, 0], [], []>} : vector<1x16xf32>, vector<8x16xf32>, vector<1x8xf32> -> vector<1x8xf32>
    %580 = vector.broadcast %565 : vector<1x1xf32> to vector<1x8xf32>
    %581 = arith.addf %579, %580 : vector<1x8xf32>
    %cst_330 = arith.constant 5.000000e-01 : f32
    %582 = vector.broadcast %cst_330 : f32 to vector<1x8xf32>
    %583 = arith.mulf %582, %581 : vector<1x8xf32>
    %584 = math.tanh %583 : vector<1x8xf32>
    %cst_331 = arith.constant 1.000000e+00 : f32
    %585 = vector.broadcast %cst_331 : f32 to vector<1x8xf32>
    %586 = arith.addf %584, %585 : vector<1x8xf32>
    %cst_332 = arith.constant 5.000000e-01 : f32
    %587 = vector.broadcast %cst_332 : f32 to vector<1x8xf32>
    %588 = arith.mulf %587, %586 : vector<1x8xf32>
    %c1_333 = arith.constant 1 : index
    %c0_334 = arith.constant 0 : index
    %589 = vector.load %arg8[%c1_333, %c0_334] : memref<2x8xf32, #tpu.memory_space<vmem>>, vector<1x8xf32>
    tpu.vector_store %arg8[%c1_333, %c0_334], %588 {strides = array<i32>} : memref<2x8xf32, #tpu.memory_space<vmem>>, vector<1x8xf32>,
    return
  }
}

</mosaic_0001>

<bundles_post_ra>
// kernel: masformer_forward.1
= control target key start
LH: loop header
LB: loop body
LE: loop exit
PB: predicated region body
PF: predicated region fallthrough
CT: control target
= control target key end

     0   :  { %vm41_vm0 = vcmask 130048   ;;  %s6586_s0 = inlined_call_operand.vmem [shape: f32[16,16], index: 0, kind: input, shape index: {}]   ;;  %s6587_s1 = inlined_call_operand.vmem [shape: f32[16,32], index: 1, kind: input, shape index: {}]   ;;  %s6588_s2 = inlined_call_operand.vmem [shape: f32[16,32], index: 2, kind: input, shape index: {}]   ;;  %s6589_s3 = inlined_call_operand.vmem [shape: f32[3,1,32], index: 3, kind: input, shape index: {}]   ;;  %s6590_s4 = inlined_call_operand.vmem [shape: f32[2,8,32,32], index: 4, kind: input, shape index: {}]   ;;  %s6591_s5 = inlined_call_operand.vmem [shape: f32[2,11,1,32], index: 5, kind: input, shape index: {}]   ;;  %s6592_s6 = inlined_call_operand.vmem [shape: f32[32,16], index: 6, kind: input, shape index: {}]   ;;  %s6593_s7 = inlined_call_operand.vmem [shape: f32[5,1,16], index: 7, kind: input, shape index: {}]   ;;  %s6594_s8 = inlined_call_operand.hbm [shape: f32[2,8], index: 8, kind: output, shape index: {}]  }
   0x1   :  { %v33_v0 = vld [vmem:[%s6588_s2 + $0x8] sm:$0xff]  ;;  %v32_v1 = vld [vmem:[%s6588_s2] sm:$0xff] }
   0x2   :  { %v30_v2 = vld [vmem:[%s6586_s0] sm:$0xff]  ;;  %5316 = vmatprep.subr.mxu0 %v33_v0 }
   0x3   :  { %5320 = vmatprep.mubr.msk.f32.mxu0 %vm41_vm0, %v30_v2 }
   0x4   :  { %13 = vsyncpa [#allocation4], 0  ;;  %5317 = vmatpush3.msra.mxu0 %v33_v0  ;;  %v31_v3 = vld [vmem:[%s6586_s0 + $0x8] sm:$0xff]  ;;  %v4939_v5 = vld [vmem:[%s6589_s3] ss:$0 sm:$0xff]  ;;  %vm127_vm1 = vcmask 261120  }
   0x5   :  { %5318 = vmatprep.subr.mxu0 %v32_v1  ;;  %v193_v21 = vld [vmem:[%s6590_s4 + $0x18] sm:$0xff]  ;;  %v192_v23 = vld [vmem:[%s6590_s4 + $0x10] sm:$0xff]  ;;  %v191_v25 = vld [vmem:[%s6590_s4 + $0x8] sm:$0xff]  ;;  %v5829_v63 = vmov 0.0   ;;  %vm5830_vm6 = vmmov 0   ;;  %vm499_vm7 = vcmask 64512  }
   0x6   :  { %5319 = vmatpush3.msra.mxu0 %v32_v1  ;;  %v4949_v22 = vld [vmem:[%s6590_s4 + $0x38] sm:$0xff]  ;;  %5323 = vmatprep.subr.mxu1 %v193_v21  ;;  %v4948_v24 = vld [vmem:[%s6590_s4 + $0x30] sm:$0xff]  ;;  %v4947_v26 = vld [vmem:[%s6590_s4 + $0x28] sm:$0xff]  ;;  %s5831_s23 = smov 120   ;;  %s5832_s26 = smov 104   ;;  %vm831_vm8 = vcmask 130112  }
   0x7   :  { %5321 = vmatmul.mubr.msk.f32.vlgmr.msra.gmra.mxu0 %vm41_vm0, %v31_v3  ;;  %5334 = vmatprep.subr.mxu0 %v4949_v22  ;;  %v190_v27 = vld [vmem:[%s6590_s4] sm:$0xff]  ;;  %v4953_v29 = vld [vmem:[%s6590_s4 + $0x58] sm:$0xff]  ;;  %v187_v57 = vld [vmem:[%s6587_s1 + $0x8] sm:$0xff]  ;;  %s5833_s27 = smov 112   ;;  %s5834_s28 = smov 8   ;;  %vm1002_vm9 = vcmask 195712  }
   0x8   :  { %5324 = vmatpush3.msra.mxu1 %v193_v21  ;;  %5335 = vmatpush3.msra.mxu0 %v4949_v22  ;;  %v4946_v28 = vld [vmem:[%s6590_s4 + $0x20] sm:$0xff]  ;;  %v4952_v60 = vld [vmem:[%s6590_s4 + $0x50] sm:$0xff]  ;;  %v4951_v61 = vld [vmem:[%s6590_s4 + $0x48] sm:$0xff]  ;;  %s5835_s29 = smov 16   ;;  %s5836_s30 = smov 24   ;;  %vm1173_vm10 = vcmask 261312  }
   0x9   :  { %5325 = vmatprep.subr.mxu1 %v192_v23  ;;  %5336 = vmatprep.subr.mxu0 %v4948_v24  ;;  %v4944_v46 = vld [vmem:[%s6589_s3 + $0x1] ss:$0 sm:$0xff]  ;;  %v4945_v49 = vld [vmem:[%s6589_s3 + $0x2] ss:$0 sm:$0xff]  ;;  %v4984_v2 = vld [vmem:[%s6591_s5] ss:$0 sm:$0xff] }
   0xa   :  { %5326 = vmatpush3.msra.mxu1 %v192_v23  ;;  %5337 = vmatpush3.msra.mxu0 %v4948_v24  ;;  %v186_v51 = vld [vmem:[%s6587_s1] sm:$0xff] }
   0xb   :  { %5327 = vmatprep.subr.mxu1 %v191_v25  ;;  %5338 = vmatprep.subr.mxu0 %v4947_v26  ;;  %v4950_v62 = vld [vmem:[%s6590_s4 + $0x40] sm:$0xff] }
   0xc   :  { %5328 = vmatpush3.msra.mxu1 %v191_v25  ;;  %5339 = vmatpush3.msra.mxu0 %v4947_v26  ;;  %v4987_v3 = vld [vmem:[%s6591_s5 + $0x1] ss:$0 sm:$0xff] }
   0xd   :  { %5329 = vmatprep.subr.mxu1 %v190_v27  ;;  %5340 = vmatprep.subr.mxu0 %v4946_v28 }
   0xe   :  { %5330 = vmatpush3.msra.mxu1 %v190_v27  ;;  %5341 = vmatpush3.msra.mxu0 %v4946_v28 }
   0xf   :  { %5345 = vmatprep.subr.mxu1 %v4953_v29  ;;  %5356 = vmatprep.subr.mxu0 %v5829_v63 }
  0xc7   :  { %v5322_v4 = vpop.f32.mrf.mxu0 }
  0xc8   :  { %v120_v8 = vadd.f32 %v5322_v4, %v4939_v5 }
  0xc9   :  { %v114_v6 = vpop.f32.mrf.mxu0 }
  0xca   :  { %v115_v7 = vadd.f32 %v4939_v5, %v114_v6  ;;  %v131_v10 = vsel %vm127_vm1, %v120_v8, 0.0 }
  0xcc   :  { %v128_v9 = vsel %vm127_vm1, %v115_v7, 0.0 }
  0xcd   :  { %129 = vadd.xlane.f32.xlu0 %v128_v9 }
  0xd1   :  { %132 = vadd.xlane.f32.xlu0 %v131_v10 }
 0x156   :  { %v130_v11 = vpop.xlane.xlu0 %129 }
 0x157   :  { %v135_v12 = vmul.f32 0.03125, %v130_v11 }
 0x159   :  { %v137_v13 = vsub.f32 %v115_v7, %v135_v12 }
 0x15a   :  { %v133_v14 = vpop.xlane.xlu0 %132 }
 0x15b   :  { %v136_v15 = vmul.f32 0.03125, %v133_v14  ;;  %v139_v16 = vmul.f32 %v137_v13, %v137_v13  ;;  %v156_v47 = vmul.f32 %v4944_v46, %v137_v13 }
 0x15d   :  { %v138_v17 = vsub.f32 %v120_v8, %v136_v15  ;;  %v141_v18 = vsel %vm127_vm1, %v139_v16, 0.0  ;;  %v4990_v8 = vld [vmem:[%s6591_s5 + $0x2] ss:$0 sm:$0xff] }
 0x15e   :  { %142 = vadd.xlane.f32.xlu1 %v141_v18 }
 0x15f   :  { %v140_v19 = vmul.f32 %v138_v17, %v138_v17  ;;  %v157_v52 = vmul.f32 %v4944_v46, %v138_v17 }
 0x161   :  { %v144_v20 = vsel %vm127_vm1, %v140_v19, 0.0 }
 0x162   :  { %145 = vadd.xlane.f32.xlu1 %v144_v20 }
 0x1e7   :  { %v143_v30 = vpop.xlane.xlu1 %142 }
 0x1e8   :  { %v148_v31 = vmul.f32 0.032258064, %v143_v30 }
 0x1ea   :  { %5691 = vrsqrt.f32 %v148_v31  ;;  %vm160_vm2 = vcmp.eq.f32.partialorder %v148_v31, inf  ;;  %v163_v36 = vand.u32 2147483648, %v148_v31  ;;  %vm162_vm3 = vcmp.eq.f32.partialorder %v148_v31, 0.0 }
 0x1eb   :  { %v146_v32 = vpop.xlane.xlu1 %145 }
 0x1ec   :  { %v149_v33 = vmul.f32 0.032258064, %v146_v32 }
 0x1ee   :  { %5693 = vrsqrt.f32 %v149_v33  ;;  %vm167_vm4 = vcmp.eq.f32.partialorder %v149_v33, inf  ;;  %v170_v42 = vand.u32 2147483648, %v149_v33  ;;  %vm169_vm5 = vcmp.eq.f32.partialorder %v149_v33, 0.0 }
 0x1f7   :  { %v5692_v34 = vpop.eup %5691 }
 0x1f8   :  { %v159_v35 = vmul.f32 %v5692_v34, %v148_v31 }
 0x1fa   :  { %v161_v37 = vsel %vm160_vm2, %v148_v31, %v159_v35 }
 0x1fb   :  { %v5694_v38 = vpop.eup %5693  ;;  %v164_v39 = vsel %vm162_vm3, %v163_v36, %v161_v37 }
 0x1fc   :  { %v172_v40 = vadd.f32 1e-06, %v164_v39  ;;  %v166_v41 = vmul.f32 %v5694_v38, %v149_v33 }
 0x1fe   :  { %5695 = vrcp.f32 %v172_v40  ;;  %v168_v43 = vsel %vm167_vm4, %v149_v33, %v166_v41 }
 0x1ff   :  { %v171_v44 = vsel %vm169_vm5, %v170_v42, %v168_v43 }
 0x200   :  { %v173_v45 = vadd.f32 1e-06, %v171_v44 }
 0x202   :  { %5697 = vrcp.f32 %v173_v45 }
 0x20b   :  { %v5696_v48 = vpop.eup %5695 }
 0x20c   :  { %v175_v50 = vmul.f32 %v5696_v48, %v156_v47 }
 0x20e   :  { %v184_v53 = vadd.f32 %v4945_v49, %v175_v50 }
 0x20f   :  { %v5698_v54 = vpop.eup %5697 }
 0x210   :  { %v5941_v55 = vadd.f32 %v186_v51, %v184_v53  ;;  %v177_v56 = vmul.f32 %v5698_v54, %v157_v52 }
 0x212   :  { %5331 = vmatprep.mubr.msk.f32.mxu1 %vm127_vm1, %v5941_v55  ;;  %5342 = vmatprep.mubr.msk.f32.mxu0 %vm127_vm1, %v5941_v55  ;;  %v185_v58 = vadd.f32 %v4945_v49, %v177_v56 }
 0x214   :  { %v5950_v59 = vadd.f32 %v187_v57, %v185_v58 }
 0x216   :  { %5332 = vmatmul.mubr.msk.f32.vlgmr.msra.gmra.mxu1 %vm127_vm1, %v5950_v59  ;;  %5343 = vmatmul.mubr.msk.f32.vlgmr.msra.gmra.mxu0 %vm127_vm1, %v5950_v59 }
 0x217   :  { %5346 = vmatpush3.msra.mxu1 %v4953_v29  ;;  %5353 = vmatprep.mubr.msk.f32.mxu1 %vm127_vm1, %v5941_v55 }
 0x218   :  { %5347 = vmatprep.subr.mxu1 %v4952_v60  ;;  %5358 = vmatprep.mubr.msk.f32.mxu0 %vm5830_vm6, %v5829_v63 }
 0x219   :  { %5348 = vmatpush3.msra.mxu1 %v4952_v60 }
 0x21a   :  { %5349 = vmatprep.subr.mxu1 %v4951_v61 }
 0x21b   :  { %5350 = vmatpush3.msra.mxu1 %v4951_v61 }
 0x21c   :  { %5351 = vmatprep.subr.mxu1 %v4950_v62 }
 0x21d   :  { %5352 = vmatpush3.msra.mxu1 %v4950_v62 }
 0x21e   :  { %5354 = vmatmul.mubr.msk.f32.vlgmr.msra.gmra.mxu1 %vm127_vm1, %v5950_v59  ;;  %5366 = vmatprep.subr.mxu1 %v5829_v63 }
 0x21f   :  { %5368 = vmatprep.mubr.msk.f32.mxu1 %vm5830_vm6, %v5829_v63 }
 0x2d6   :  { %v5333_v0 = vpop.f32.mrf.mxu1  ;;  %v5344_v1 = vpop.f32.mrf.mxu0 }
 0x2d7   :  { %v415_v12 = vadd.f32 %v5344_v1, %v4987_v3  ;;  %v334_v14 = vadd.f32 %v5333_v0, %v4984_v2 }
 0x2d8   :  { %v328_v4 = vpop.f32.mrf.mxu1  ;;  %v409_v5 = vpop.f32.mrf.mxu0 }
 0x2d9   :  { %v329_v6 = vadd.f32 %v4984_v2, %v328_v4  ;;  %v410_v7 = vadd.f32 %v4987_v3, %v409_v5 }
 0x2db   :  { %663 = vrot.lane.b32.xlu0 %v410_v7, %s5831_s23  ;;  %5357 = vmatpush3.xpose.msk.msra.mxu0 %vm499_vm7, %v410_v7 }
 0x2dc   :  { %661 = vrot.lane.b32.xlu1 %v329_v6, %s5831_s23  ;;  %5361 = vmatprep.subr.mxu0 %v5829_v63 }
 0x2de   :  { %v5355_v9 = vpop.f32.mrf.mxu1  ;;  %5359 = vmatmul.mubr.msk.f32.vlgmr.msra.gmra.mxu0 %vm499_vm7, %v329_v6 }
 0x2df   :  { %v5989_v10 = vadd.f32 %v5355_v9, %v4990_v8  ;;  %1006 = vrot.lane.b32.xlu0 %v410_v7, %s5832_s26  ;;  %5363 = vmatprep.mubr.msk.f32.mxu0 %vm5830_vm6, %v5829_v63 }
 0x2e0   :  { %v490_v11 = vpop.f32.mrf.mxu1  ;;  %835 = vrot.lane.b32.xlu1 %v410_v7, %s5833_s27 }
 0x2e1   :  { %v5995_v13 = vadd.f32 %v4990_v8, %v490_v11 }
 0x2e3   :  { %5362 = vmatpush3.msra.mxu0 %v5995_v13  ;;  %1338 = vrot.lane.b32.xlu0 %v415_v12, %s5831_s23 }
 0x2e4   :  { %833 = vrot.lane.b32.xlu1 %v329_v6, %s5833_s27  ;;  %5371 = vmatprep.subr.mxu0 %v5829_v63 }
 0x2e7   :  { %1509 = vrot.lane.b32.xlu0 %v415_v12, %s5833_s27 }
 0x2e8   :  { %1004 = vrot.lane.b32.xlu1 %v329_v6, %s5832_s26 }
 0x2eb   :  { %1679 = vrot.lane.b32.xlu0 %v415_v12, %s5832_s26 }
 0x2ec   :  { %1336 = vrot.lane.b32.xlu1 %v334_v14, %s5831_s23 }
 0x2f0   :  { %1507 = vrot.lane.b32.xlu1 %v334_v14, %s5833_s27 }
 0x2f4   :  { %1677 = vrot.lane.b32.xlu1 %v334_v14, %s5832_s26 }
 0x34d   :  { %v664_v15 = vpop.permute.xlu0 %663 }
 0x34e   :  { %v662_v16 = vpop.permute.xlu1 %661  ;;  %5367 = vmatpush3.xpose.msk.msra.mxu1 %vm499_vm7, %v664_v15 }
 0x34f   :  { %5376 = vmatprep.subr.mxu1 %v5829_v63 }
 0x351   :  { %5369 = vmatmul.mubr.msk.f32.vlgmr.msra.gmra.mxu1 %vm499_vm7, %v662_v16  ;;  %v1007_v18 = vpop.permute.xlu0 %1006 }
 0x352   :  { %v836_v17 = vpop.permute.xlu1 %835  ;;  %5378 = vmatprep.mubr.msk.f32.mxu1 %vm5830_vm6, %v5829_v63 }
 0x353   :  { %5377 = vmatpush3.xpose.msk.msra.mxu1 %vm499_vm7, %v836_v17 }
 0x354   :  { %5386 = vmatprep.subr.mxu1 %v5829_v63 }
 0x355   :  { %v1339_v21 = vpop.permute.xlu0 %1338 }
 0x356   :  { %v834_v19 = vpop.permute.xlu1 %833 }
 0x357   :  { %5379 = vmatmul.mubr.msk.f32.vlgmr.msra.gmra.mxu1 %vm499_vm7, %v834_v19 }
 0x358   :  { %5387 = vmatpush3.xpose.msk.msra.mxu1 %vm499_vm7, %v1007_v18  ;;  %5388 = vmatprep.mubr.msk.f32.mxu1 %vm5830_vm6, %v5829_v63 }
 0x359   :  { %5396 = vmatprep.subr.mxu1 %v5829_v63  ;;  %v1510_v23 = vpop.permute.xlu0 %1509 }
 0x35a   :  { %v1005_v20 = vpop.permute.xlu1 %1004 }
 0x35b   :  { %5389 = vmatmul.mubr.msk.f32.vlgmr.msra.gmra.mxu1 %vm499_vm7, %v1005_v20 }
 0x35c   :  { %5397 = vmatpush3.xpose.msk.msra.mxu1 %vm499_vm7, %v415_v12  ;;  %5398 = vmatprep.mubr.msk.f32.mxu1 %vm5830_vm6, %v5829_v63 }
 0x35d   :  { %5406 = vmatprep.subr.mxu1 %v5829_v63  ;;  %v1680_v25 = vpop.permute.xlu0 %1679 }
 0x35e   :  { %v1337_v22 = vpop.permute.xlu1 %1336 }
 0x35f   :  { %5399 = vmatmul.mubr.msk.f32.vlgmr.msra.gmra.mxu1 %vm499_vm7, %v334_v14 }
 0x360   :  { %5407 = vmatpush3.xpose.msk.msra.mxu1 %vm499_vm7, %v1339_v21  ;;  %5408 = vmatprep.mubr.msk.f32.mxu1 %vm5830_vm6, %v5829_v63 }
 0x361   :  { %5416 = vmatprep.subr.mxu1 %v5829_v63 }
 0x362   :  { %v1508_v24 = vpop.permute.xlu1 %1507 }
 0x363   :  { %5409 = vmatmul.mubr.msk.f32.vlgmr.msra.gmra.mxu1 %vm499_vm7, %v1337_v22 }
 0x364   :  { %5417 = vmatpush3.xpose.msk.msra.mxu1 %vm499_vm7, %v1510_v23  ;;  %5418 = vmatprep.mubr.msk.f32.mxu1 %vm5830_vm6, %v5829_v63 }
 0x365   :  { %5426 = vmatprep.subr.mxu1 %v5829_v63 }
 0x366   :  { %v1678_v26 = vpop.permute.xlu1 %1677 }
 0x367   :  { %5419 = vmatmul.mubr.msk.f32.vlgmr.msra.gmra.mxu1 %vm499_vm7, %v1508_v24 }
 0x368   :  { %5427 = vmatpush3.xpose.msk.msra.mxu1 %vm499_vm7, %v1680_v25  ;;  %5428 = vmatprep.mubr.msk.f32.mxu1 %vm5830_vm6, %v5829_v63 }
 0x36b   :  { %5429 = vmatmul.mubr.msk.f32.vlgmr.msra.gmra.mxu1 %vm499_vm7, %v1678_v26 }
 0x39e   :  { %v572_v27 = vpop.f32.mrf.mxu0 }
 0x39f   :  { %v576_v28 = vsel %vm499_vm7, %v572_v27, -inf }
 0x3a0   :  { %577 = vmax.xlane.f32.xlu0 %v576_v28  ;;  %v5360_v29 = vpop.f32.mrf.mxu0 }
 0x411   :  { %v735_v30 = vpop.f32.mrf.mxu1 }
 0x412   :  { %v739_v31 = vsel %vm499_vm7, %v735_v30, -inf }
 0x413   :  { %740 = vmax.xlane.f32.xlu1 %v739_v31  ;;  %v5370_v32 = vpop.f32.mrf.mxu1 }
 0x417   :  { %v907_v33 = vpop.f32.mrf.mxu1 }
 0x418   :  { %v911_v34 = vsel %vm499_vm7, %v907_v33, -inf }
 0x419   :  { %v5380_v35 = vpop.f32.mrf.mxu1  ;;  %912 = vmax.xlane.f32.xlu0 %v911_v34 }
 0x41b   :  { %v1078_v36 = vpop.f32.mrf.mxu1 }
 0x41c   :  { %v1082_v37 = vsel %vm499_vm7, %v1078_v36, -inf }
 0x41d   :  { %v5390_v38 = vpop.f32.mrf.mxu1  ;;  %1083 = vmax.xlane.f32.xlu0 %v1082_v37 }
 0x41f   :  { %v1247_v39 = vpop.f32.mrf.mxu1 }
 0x420   :  { %v1251_v40 = vsel %vm499_vm7, %v1247_v39, -inf }
 0x421   :  { %v5400_v41 = vpop.f32.mrf.mxu1  ;;  %1252 = vmax.xlane.f32.xlu0 %v1251_v40 }
 0x423   :  { %v1410_v42 = vpop.f32.mrf.mxu1 }
 0x424   :  { %v1414_v43 = vsel %vm499_vm7, %v1410_v42, -inf }
 0x425   :  { %1415 = vmax.xlane.f32.xlu1 %v1414_v43  ;;  %v5410_v44 = vpop.f32.mrf.mxu1 }
 0x427   :  { %v1581_v45 = vpop.f32.mrf.mxu1 }
 0x428   :  { %v1585_v46 = vsel %vm499_vm7, %v1581_v45, -inf }
 0x429   :  { %v5420_v47 = vpop.f32.mrf.mxu1  ;;  %1586 = vmax.xlane.f32.xlu0 %v1585_v46  ;;  %v578_v48 = vpop.xlane.xlu0 %577 }
 0x42a   :  { %v579_v49 = vsub.f32 %v572_v27, %v578_v48 }
 0x42b   :  { %v1751_v50 = vpop.f32.mrf.mxu1 }
 0x42c   :  { %v580_v51 = vmul.f32 1.442695, %v579_v49  ;;  %v1755_v52 = vsel %vm499_vm7, %v1751_v50, -inf }
 0x42d   :  { %1756 = vmax.xlane.f32.xlu1 %v1755_v52  ;;  %v5430_v53 = vpop.f32.mrf.mxu1 }
 0x42e   :  { %5699 = vpow2.f32 %v580_v51 }
 0x43b   :  { %v5700_v54 = vpop.eup %5699 }
 0x43c   :  { %v582_v56 = vsel %vm499_vm7, %v5700_v54, 0.0 }
 0x43d   :  { %583 = vadd.xlane.f32.xlu0 %v582_v56 }
 0x49c   :  { %v741_v57 = vpop.xlane.xlu1 %740 }
 0x49d   :  { %v742_v58 = vsub.f32 %v735_v30, %v741_v57 }
 0x49f   :  { %v743_v60 = vmul.f32 1.442695, %v742_v58 }
 0x4a1   :  { %5701 = vpow2.f32 %v743_v60 }
 0x4a2   :  { %v913_v61 = vpop.xlane.xlu0 %912 }
 0x4a3   :  { %v914_v62 = vsub.f32 %v907_v33, %v913_v61 }
 0x4a5   :  { %v915_v0 = vmul.f32 1.442695, %v914_v62 }
 0x4a6   :  { %v1084_v5 = vpop.xlane.xlu0 %1083 }
 0x4a7   :  { %5703 = vpow2.f32 %v915_v0  ;;  %v1085_v12 = vsub.f32 %v1078_v36, %v1084_v5 }
 0x4a9   :  { %v1086_v18 = vmul.f32 1.442695, %v1085_v12  ;;  %v4955_v12 = vld [vmem:[%s6590_s4 + $0x68] sm:$0xff] }
 0x4aa   :  { %v1253_v6 = vpop.xlane.xlu0 %1252 }
 0x4ab   :  { %v1254_v9 = vsub.f32 %v1247_v39, %v1253_v6 }
 0x4ad   :  { %v1255_v16 = vmul.f32 1.442695, %v1254_v9  ;;  %v4956_v9 = vld [vmem:[%s6590_s4 + $0x70] sm:$0xff] }
 0x4ae   :  { %v5702_v1 = vpop.eup %5701  ;;  %v1416_v14 = vpop.xlane.xlu1 %1415 }
 0x4af   :  { %v745_v2 = vsel %vm499_vm7, %v5702_v1, 0.0  ;;  %v1417_v19 = vsub.f32 %v1410_v42, %v1416_v14 }
 0x4b0   :  { %746 = vadd.xlane.f32.xlu1 %v745_v2 }
 0x4b1   :  { %v1418_v22 = vmul.f32 1.442695, %v1417_v19 }
 0x4b2   :  { %v1587_v7 = vpop.xlane.xlu0 %1586 }
 0x4b3   :  { %v1588_v17 = vsub.f32 %v1581_v45, %v1587_v7 }
 0x4b4   :  { %v6049_v3 = vpop.eup %5703 }
 0x4b5   :  { %v917_v4 = vsel %vm499_vm7, %v6049_v3, 0.0  ;;  %v1589_v21 = vmul.f32 1.442695, %v1588_v17 }
 0x4b6   :  { %918 = vadd.xlane.f32.xlu0 %v917_v4  ;;  %v1757_v20 = vpop.xlane.xlu1 %1756 }
 0x4c1   :  { %922 = vrot.lane.b32.xlu1 %v5995_v13, %s5833_s27 }
 0x4c5   :  { %1093 = vrot.lane.b32.xlu1 %v5995_v13, %s5832_s26 }
 0x4c6   :  { %v584_v8 = vpop.xlane.xlu0 %583 }
 0x4c7   :  { %5705 = vrcp.f32 %v584_v8  ;;  %v4957_v8 = vld [vmem:[%s6590_s4 + $0x78] sm:$0xff] }
 0x4c8   :  { %5707 = vpow2.f32 %v1255_v16  ;;  %5436 = vmatprep.subr.mxu1 %v4957_v8 }
 0x4c9   :  { %1426 = vrot.lane.b32.xlu1 %v5989_v10, %s5831_s23  ;;  %5709 = vpow2.f32 %v1086_v18  ;;  %5437 = vmatpush3.msra.mxu1 %v4957_v8 }
 0x4ca   :  { %5711 = vpow2.f32 %v1589_v21  ;;  %5438 = vmatprep.subr.mxu1 %v4956_v9 }
 0x4cb   :  { %5713 = vpow2.f32 %v1418_v22  ;;  %5439 = vmatpush3.msra.mxu1 %v4956_v9 }
 0x4cc   :  { %751 = vrot.lane.b32.xlu0 %v5995_v13, %s5831_s23  ;;  %v1758_v13 = vsub.f32 %v1751_v50, %v1757_v20  ;;  %5440 = vmatprep.subr.mxu1 %v4955_v12 }
 0x4cd   :  { %5441 = vmatpush3.msra.mxu1 %v4955_v12 }
 0x4ce   :  { %v1759_v23 = vmul.f32 1.442695, %v1758_v13 }
 0x4d0   :  { %5715 = vpow2.f32 %v1759_v23 }
 0x4d4   :  { %v5706_v11 = vpop.eup %5705 }
 0x4d5   :  { %v586_v15 = vmul.f32 %v5706_v11, %v5700_v54  ;;  %v5708_v24 = vpop.eup %5707 }
 0x4d6   :  { %v5710_v25 = vpop.eup %5709  ;;  %v1257_v26 = vsel %vm499_vm7, %v5708_v24, 0.0 }
 0x4d7   :  { %5364 = vmatmul.mubr.msk.f32.vlgmr.msra.gmra.mxu0 %vm499_vm7, %v586_v15  ;;  %v6065_v27 = vpop.eup %5711  ;;  %v1088_v28 = vsel %vm499_vm7, %v5710_v25, 0.0  ;;  %v4954_v15 = vld [vmem:[%s6590_s4 + $0x60] sm:$0xff] }
 0x4d8   :  { %5373 = vmatprep.mubr.msk.f32.mxu0 %vm5830_vm6, %v5829_v63  ;;  %v5714_v29 = vpop.eup %5713  ;;  %v1591_v30 = vsel %vm499_vm7, %v6065_v27, 0.0  ;;  %5442 = vmatprep.subr.mxu1 %v4954_v15 }
 0x4d9   :  { %v1420_v31 = vsel %vm499_vm7, %v5714_v29, 0.0  ;;  %5443 = vmatpush3.msra.mxu1 %v4954_v15 }
 0x4dd   :  { %v6071_v32 = vpop.eup %5715 }
 0x4de   :  { %v1761_v33 = vsel %vm499_vm7, %v6071_v32, 0.0 }
 0x4eb   :  { %1258 = vadd.xlane.f32.xlu0 %v1257_v26 }
 0x4ed   :  { %1089 = vadd.xlane.f32.xlu1 %v1088_v28  ;;  %v5017_v28 = vld [vmem:[%s6591_s5 + $0x3] ss:$0 sm:$0xff] }
 0x4ef   :  { %1592 = vadd.xlane.f32.xlu0 %v1591_v30 }
 0x4f1   :  { %1421 = vadd.xlane.f32.xlu1 %v1420_v31 }
 0x4f5   :  { %1762 = vadd.xlane.f32.xlu1 %v1761_v33 }
 0x505   :  { %1596 = vrot.lane.b32.xlu0 %v5989_v10, %s5833_s27 }
 0x506   :  { %1766 = vrot.lane.b32.xlu1 %v5989_v10, %s5832_s26 }
 0x539   :  { %v747_v34 = vpop.xlane.xlu1 %746 }
 0x53a   :  { %5717 = vrcp.f32 %v747_v34 }
 0x53d   :  { %v923_v39 = vpop.permute.xlu1 %922 }
 0x53f   :  { %v919_v35 = vpop.xlane.xlu0 %918 }
 0x540   :  { %5719 = vrcp.f32 %v919_v35 }
 0x541   :  { %v1094_v42 = vpop.permute.xlu1 %1093 }
 0x543   :  { %v752_v36 = vpop.permute.xlu0 %751 }
 0x544   :  { %5372 = vmatpush3.msra.mxu0 %v752_v36 }
 0x545   :  { %5381 = vmatprep.subr.mxu0 %v5829_v63  ;;  %v1427_v43 = vpop.permute.xlu1 %1426 }
 0x547   :  { %v5718_v37 = vpop.eup %5717 }
 0x548   :  { %v749_v38 = vmul.f32 %v5718_v37, %v5702_v1 }
 0x54a   :  { %5374 = vmatmul.mubr.msk.f32.vlgmr.msra.gmra.mxu0 %vm499_vm7, %v749_v38 }
 0x54b   :  { %5382 = vmatpush3.msra.mxu0 %v923_v39  ;;  %5383 = vmatprep.mubr.msk.f32.mxu0 %vm5830_vm6, %v5829_v63 }
 0x54c   :  { %5391 = vmatprep.subr.mxu0 %v5829_v63 }
 0x54d   :  { %v5720_v40 = vpop.eup %5719 }
 0x54e   :  { %v921_v41 = vmul.f32 %v5720_v40, %v6049_v3 }
 0x550   :  { %5384 = vmatmul.mubr.msk.f32.vlgmr.msra.gmra.mxu0 %vm499_vm7, %v921_v41 }
 0x551   :  { %5392 = vmatpush3.msra.mxu0 %v1094_v42  ;;  %5393 = vmatprep.mubr.msk.f32.mxu0 %vm5830_vm6, %v5829_v63 }
 0x552   :  { %5401 = vmatprep.subr.mxu0 %v5829_v63 }
 0x574   :  { %v1259_v44 = vpop.xlane.xlu0 %1258 }
 0x576   :  { %v1090_v45 = vpop.xlane.xlu1 %1089 }
 0x577   :  { %5721 = vrcp.f32 %v1090_v45 }
 0x578   :  { %5723 = vrcp.f32 %v1259_v44  ;;  %v1593_v47 = vpop.xlane.xlu0 %1592 }
 0x57a   :  { %v1422_v46 = vpop.xlane.xlu1 %1421 }
 0x57b   :  { %5725 = vrcp.f32 %v1422_v46  ;;  %v4965_v46 = vld [vmem:[%s6590_s4 + $0xb8] sm:$0xff] }
 0x57c   :  { %5727 = vrcp.f32 %v1593_v47  ;;  %v1597_v57 = vpop.permute.xlu0 %1596  ;;  %v4960_v47 = vld [vmem:[%s6590_s4 + $0x90] sm:$0xff]  ;;  %5458 = vmatprep.subr.mxu1 %v4965_v46 }
 0x57e   :  { %v1763_v48 = vpop.xlane.xlu1 %1762 }
 0x57f   :  { %5729 = vrcp.f32 %v1763_v48  ;;  %v4964_v48 = vld [vmem:[%s6590_s4 + $0xb0] sm:$0xff] }
 0x582   :  { %v1767_v60 = vpop.permute.xlu1 %1766 }
 0x584   :  { %v5722_v49 = vpop.eup %5721 }
 0x585   :  { %v1092_v50 = vmul.f32 %v5722_v49, %v5710_v25  ;;  %v5724_v51 = vpop.eup %5723  ;;  %v4959_v49 = vld [vmem:[%s6590_s4 + $0x88] sm:$0xff] }
 0x586   :  { %v1261_v52 = vmul.f32 %v5724_v51, %v5708_v24  ;;  %v4958_v51 = vld [vmem:[%s6590_s4 + $0x80] sm:$0xff] }
 0x587   :  { %5394 = vmatmul.mubr.msk.f32.vlgmr.msra.gmra.mxu0 %vm499_vm7, %v1092_v50  ;;  %v4963_v50 = vld [vmem:[%s6590_s4 + $0xa8] sm:$0xff] }
 0x588   :  { %5402 = vmatpush3.msra.mxu0 %v5989_v10  ;;  %5403 = vmatprep.mubr.msk.f32.mxu0 %vm5830_vm6, %v5829_v63  ;;  %v5726_v53 = vpop.eup %5725 }
 0x589   :  { %5411 = vmatprep.subr.mxu0 %v5829_v63  ;;  %v1424_v54 = vmul.f32 %v5726_v53, %v5714_v29  ;;  %v5728_v56 = vpop.eup %5727 }
 0x58a   :  { %v1595_v10 = vmul.f32 %v5728_v56, %v6065_v27 }
 0x58b   :  { %5404 = vmatmul.mubr.msk.f32.vlgmr.msra.gmra.mxu0 %vm499_vm7, %v1261_v52  ;;  %v4962_v52 = vld [vmem:[%s6590_s4 + $0xa0] sm:$0xff] }
 0x58c   :  { %5412 = vmatpush3.msra.mxu0 %v1427_v43  ;;  %5413 = vmatprep.mubr.msk.f32.mxu0 %vm5830_vm6, %v5829_v63  ;;  %v5730_v58 = vpop.eup %5729 }
 0x58d   :  { %5421 = vmatprep.subr.mxu0 %v5829_v63  ;;  %v1765_v61 = vmul.f32 %v5730_v58, %v6071_v32 }
 0x58f   :  { %5414 = vmatmul.mubr.msk.f32.vlgmr.msra.gmra.mxu0 %vm499_vm7, %v1424_v54 }
 0x590   :  { %5422 = vmatpush3.msra.mxu0 %v1597_v57  ;;  %5423 = vmatprep.mubr.msk.f32.mxu0 %vm5830_vm6, %v5829_v63 }
 0x591   :  { %5431 = vmatprep.subr.mxu0 %v5829_v63 }
 0x593   :  { %5424 = vmatmul.mubr.msk.f32.vlgmr.msra.gmra.mxu0 %vm499_vm7, %v1595_v10 }
 0x594   :  { %5432 = vmatpush3.msra.mxu0 %v1767_v60  ;;  %5433 = vmatprep.mubr.msk.f32.mxu0 %vm5830_vm6, %v5829_v63 }
 0x597   :  { %v656_v62 = vpop.f32.mrf.mxu0  ;;  %5434 = vmatmul.mubr.msk.f32.vlgmr.msra.gmra.mxu0 %vm499_vm7, %v1765_v61 }
 0x598   :  { %660 = vst.msk [vmem:[#allocation2] sm:$0xff] %vm499_vm7, %v656_v62 }
 0x599   :  { %v5365_v0 = vpop.f32.mrf.mxu0 }
 0x60a   :  { %v823_v1 = vpop.f32.mrf.mxu0 }
 0x60b   :  { %828 = vrot.lane.b32.xlu0 %v823_v1, %s5834_s28 }
 0x60c   :  { %v5375_v2 = vpop.f32.mrf.mxu0 }
 0x610   :  { %v994_v3 = vpop.f32.mrf.mxu0 }
 0x611   :  { %999 = vrot.lane.b32.xlu1 %v994_v3, %s5835_s29 }
 0x612   :  { %v5385_v4 = vpop.f32.mrf.mxu0 }
 0x647   :  { %v1165_v5 = vpop.f32.mrf.mxu0 }
 0x648   :  { %1170 = vrot.lane.b32.xlu1 %v1165_v5, %s5836_s30 }
 0x649   :  { %v5395_v6 = vpop.f32.mrf.mxu0 }
 0x64b   :  { %v1331_v7 = vpop.f32.mrf.mxu0 }
 0x64c   :  { %1335 = vst.msk [vmem:[#allocation2 + $0x8] sm:$0xff] %vm499_vm7, %v1331_v7  ;;  %v5020_v7 = vld [vmem:[%s6591_s5 + $0x7] ss:$0 sm:$0xff] }
 0x64d   :  { %v5405_v11 = vpop.f32.mrf.mxu0 }
 0x64e   :  { %v5021_v11 = vld [vmem:[%s6591_s5 + $0x8] ss:$0 sm:$0xff] }
 0x64f   :  { %v1498_v14 = vpop.f32.mrf.mxu0 }
 0x650   :  { %1503 = vrot.lane.b32.xlu0 %v1498_v14, %s5834_s28 }
 0x651   :  { %v5415_v16 = vpop.f32.mrf.mxu0 }
 0x653   :  { %v1668_v17 = vpop.f32.mrf.mxu0 }
 0x654   :  { %1673 = vrot.lane.b32.xlu0 %v1668_v17, %s5835_s29 }
 0x655   :  { %v5425_v18 = vpop.f32.mrf.mxu0 }
 0x657   :  { %v1838_v19 = vpop.f32.mrf.mxu0 }
 0x658   :  { %1843 = vrot.lane.b32.xlu1 %v1838_v19, %s5836_s30  ;;  %v4973_v19 = vld [vmem:[%s6590_s4 + $0xf8] sm:$0xff] }
 0x659   :  { %v5435_v20 = vpop.f32.mrf.mxu0 }
 0x65a   :  { %v4969_v20 = vld [vmem:[%s6590_s4 + $0xd8] sm:$0xff] }
 0x67d   :  { %v829_v21 = vpop.permute.xlu0 %828 }
 0x67e   :  { %832 = vst.msk [vmem:[#allocation2] sm:$0xff] %vm831_vm8, %v829_v21  ;;  %v4972_v21 = vld [vmem:[%s6590_s4 + $0xf0] sm:$0xff] }
 0x683   :  { %v1000_v22 = vpop.permute.xlu1 %999 }
 0x684   :  { %1003 = vst.msk [vmem:[#allocation2] sm:$0xff] %vm1002_vm9, %v1000_v22  ;;  %v4968_v22 = vld [vmem:[%s6590_s4 + $0xd0] sm:$0xff] }
 0x6ba   :  { %v1171_v13 = vpop.permute.xlu1 %1170 }
 0x6bb   :  { %1174 = vst.msk [vmem:[#allocation2] sm:$0xff] %vm1173_vm10, %v1171_v13  ;;  %v4971_v13 = vld [vmem:[%s6590_s4 + $0xe8] sm:$0xff] }
 0x6c2   :  { %v1504_v23 = vpop.permute.xlu0 %1503  ;;  %v1847_v24 = vld [vmem:[#allocation2] sm:$0xff] }
 0x6c3   :  { %1506 = vst.msk [vmem:[#allocation2 + $0x8] sm:$0xff] %vm831_vm8, %v1504_v23  ;;  %5444 = vmatprep.mubr.msk.f32.mxu1 %vm127_vm1, %v1847_v24  ;;  %v4967_v23 = vld [vmem:[%s6590_s4 + $0xc8] sm:$0xff]  ;;  %v4970_v24 = vld [vmem:[%s6590_s4 + $0xe0] sm:$0xff] }
 0x6c6   :  { %v1674_v25 = vpop.permute.xlu0 %1673 }
 0x6c7   :  { %1676 = vst.msk [vmem:[#allocation2 + $0x8] sm:$0xff] %vm1002_vm9, %v1674_v25  ;;  %v4966_v25 = vld [vmem:[%s6590_s4 + $0xc0] sm:$0xff] }
 0x6ca   :  { %v1844_v26 = vpop.permute.xlu1 %1843 }
 0x6cb   :  { %1846 = vst.msk [vmem:[#allocation2 + $0x8] sm:$0xff] %vm1173_vm10, %v1844_v26  ;;  %v5022_v26 = vld [vmem:[%s6591_s5 + $0x4] ss:$0 sm:$0xff] }
 0x6d2   :  { %v1848_v27 = vld [vmem:[#allocation2 + $0x8] sm:$0xff] }
 0x6d3   :  { %5445 = vmatmul.mubr.msk.f32.vlgmr.msra.gmra.mxu1 %vm127_vm1, %v1848_v27  ;;  %v5025_v27 = vld [vmem:[%s6591_s5 + $0x5] ss:$0 sm:$0xff] }
 0x6d4   :  { %5459 = vmatpush3.msra.mxu1 %v4965_v46 }
 0x6d5   :  { %5460 = vmatprep.subr.mxu1 %v4964_v48 }
 0x6d6   :  { %5461 = vmatpush3.msra.mxu1 %v4964_v48 }
 0x6d7   :  { %5462 = vmatprep.subr.mxu1 %v4963_v50 }
 0x6d8   :  { %5463 = vmatpush3.msra.mxu1 %v4963_v50 }
 0x6d9   :  { %5464 = vmatprep.subr.mxu1 %v4962_v52 }
 0x6da   :  { %5465 = vmatpush3.msra.mxu1 %v4962_v52 }
 0x6db   :  { %5480 = vmatprep.subr.mxu1 %v4969_v20 }
 0x793   :  { %v5446_v29 = vpop.f32.mrf.mxu1 }
 0x794   :  { %v1933_v30 = vadd.f32 %v5446_v29, %v5017_v28 }
 0x795   :  { %v1927_v31 = vpop.f32.mrf.mxu1 }
 0x796   :  { %v1928_v32 = vadd.f32 %v5017_v28, %v1927_v31  ;;  %v1937_v33 = vadd.f32 %v1933_v30, %v5950_v59 }
 0x798   :  { %v1941_v34 = vsel %vm127_vm1, %v1937_v33, 0.0  ;;  %v1936_v35 = vadd.f32 %v1928_v32, %v5941_v55  ;;  %v4961_v55 = vld [vmem:[%s6590_s4 + $0x98] sm:$0xff] }
 0x799   :  { %1942 = vadd.xlane.f32.xlu1 %v1941_v34  ;;  %5447 = vmatprep.subr.mxu0 %v4961_v55 }
 0x79a   :  { %v1938_v36 = vsel %vm127_vm1, %v1936_v35, 0.0  ;;  %5448 = vmatpush3.msra.mxu0 %v4961_v55 }
 0x79b   :  { %1939 = vadd.xlane.f32.xlu0 %v1938_v36  ;;  %5449 = vmatprep.subr.mxu0 %v4960_v47 }
 0x79c   :  { %5450 = vmatpush3.msra.mxu0 %v4960_v47 }
 0x79d   :  { %5451 = vmatprep.subr.mxu0 %v4959_v49 }
 0x79e   :  { %5452 = vmatpush3.msra.mxu0 %v4959_v49 }
 0x79f   :  { %5453 = vmatprep.subr.mxu0 %v4958_v51 }
 0x7a0   :  { %5454 = vmatpush3.msra.mxu0 %v4958_v51 }
 0x7a1   :  { %5469 = vmatprep.subr.mxu0 %v4973_v19 }
 0x822   :  { %v1943_v37 = vpop.xlane.xlu1 %1942 }
 0x823   :  { %v1945_v38 = vmul.f32 0.03125, %v1943_v37 }
 0x824   :  { %v1940_v39 = vpop.xlane.xlu0 %1939 }
 0x825   :  { %v1944_v40 = vmul.f32 0.03125, %v1940_v39  ;;  %v1947_v41 = vsub.f32 %v1937_v33, %v1945_v38 }
 0x827   :  { %v1946_v42 = vsub.f32 %v1936_v35, %v1944_v40  ;;  %v1949_v45 = vmul.f32 %v1947_v41, %v1947_v41  ;;  %v1965_v15 = vmul.f32 %v5020_v7, %v1947_v41  ;;  %v5032_v41 = vld [vmem:[%s6591_s5 + $0x6] ss:$0 sm:$0xff] }
 0x829   :  { %v1948_v43 = vmul.f32 %v1946_v42, %v1946_v42  ;;  %v1953_v59 = vsel %vm127_vm1, %v1949_v45, 0.0  ;;  %v1964_v8 = vmul.f32 %v5020_v7, %v1946_v42  ;;  %v5046_v7 = vld [vmem:[%s6590_s4 + $0x158] sm:$0xff] }
 0x82b   :  { %v1950_v44 = vsel %vm127_vm1, %v1948_v43, 0.0 }
 0x82c   :  { %1951 = vadd.xlane.f32.xlu0 %v1950_v44 }
 0x830   :  { %1954 = vadd.xlane.f32.xlu0 %v1953_v59 }
 0x8b5   :  { %v1952_v53 = vpop.xlane.xlu0 %1951 }
 0x8b6   :  { %v1956_v54 = vmul.f32 0.03125, %v1952_v53 }
 0x8b8   :  { %v1966_v56 = vadd.f32 1e-05, %v1956_v54 }
 0x8b9   :  { %v1955_v57 = vpop.xlane.xlu0 %1954 }
 0x8ba   :  { %5731 = vrsqrt.f32 %v1966_v56  ;;  %v1957_v10 = vmul.f32 0.03125, %v1955_v57  ;;  %vm1970_vm11 = vcmp.eq.f32.partialorder %v1966_v56, inf  ;;  %v1973_v62 = vand.u32 2147483648, %v1966_v56 }
 0x8bb   :  { %vm1972_vm12 = vcmp.eq.f32.partialorder %v1966_v56, 0.0 }
 0x8bc   :  { %v1967_v58 = vadd.f32 1e-05, %v1957_v10 }
 0x8be   :  { %5733 = vrsqrt.f32 %v1967_v58  ;;  %vm1977_vm13 = vcmp.eq.f32.partialorder %v1967_v58, inf  ;;  %v1980_v4 = vand.u32 2147483648, %v1967_v58  ;;  %vm1979_vm14 = vcmp.eq.f32.partialorder %v1967_v58, 0.0 }
 0x8c7   :  { %v5732_v60 = vpop.eup %5731 }
 0x8c8   :  { %v1969_v61 = vmul.f32 %v5732_v60, %v1966_v56 }
 0x8ca   :  { %v1971_v0 = vsel %vm1970_vm11, %v1966_v56, %v1969_v61 }
 0x8cb   :  { %v1974_v1 = vsel %vm1972_vm12, %v1973_v62, %v1971_v0  ;;  %v5734_v2 = vpop.eup %5733  ;;  %v5038_v62 = vld [vmem:[%s6590_s4 + $0x118] sm:$0xff] }
 0x8cc   :  { %5735 = vrcp.f32 %v1974_v1  ;;  %v1976_v3 = vmul.f32 %v5734_v2, %v1967_v58  ;;  %v5042_v0 = vld [vmem:[%s6590_s4 + $0x138] sm:$0xff]  ;;  %v5037_v1 = vld [vmem:[%s6590_s4 + $0x110] sm:$0xff] }
 0x8cd   :  { %v5041_v2 = vld [vmem:[%s6590_s4 + $0x130] sm:$0xff] }
 0x8ce   :  { %v1978_v5 = vsel %vm1977_vm13, %v1967_v58, %v1976_v3  ;;  %v5036_v3 = vld [vmem:[%s6590_s4 + $0x108] sm:$0xff] }
 0x8cf   :  { %v1981_v6 = vsel %vm1979_vm14, %v1980_v4, %v1978_v5  ;;  %v5040_v4 = vld [vmem:[%s6590_s4 + $0x128] sm:$0xff]  ;;  %v5035_v5 = vld [vmem:[%s6590_s4 + $0x100] sm:$0xff] }
 0x8d0   :  { %5737 = vrcp.f32 %v1981_v6  ;;  %v5039_v6 = vld [vmem:[%s6590_s4 + $0x120] sm:$0xff] }
 0x8d9   :  { %v5736_v9 = vpop.eup %5735 }
 0x8da   :  { %v1983_v12 = vmul.f32 %v5736_v9, %v1964_v8 }
 0x8dc   :  { %v1992_v14 = vadd.f32 %v5021_v11, %v1983_v12 }
 0x8dd   :  { %v5738_v16 = vpop.eup %5737 }
 0x8de   :  { %5455 = vmatprep.mubr.msk.f32.mxu0 %vm127_vm1, %v1992_v14  ;;  %5466 = vmatprep.mubr.msk.f32.mxu1 %vm127_vm1, %v1992_v14  ;;  %v1985_v17 = vmul.f32 %v5738_v16, %v1965_v15 }
 0x8e0   :  { %v1993_v18 = vadd.f32 %v5021_v11, %v1985_v17 }
 0x8e2   :  { %5456 = vmatmul.mubr.msk.f32.vlgmr.msra.gmra.mxu0 %vm127_vm1, %v1993_v18  ;;  %5467 = vmatmul.mubr.msk.f32.vlgmr.msra.gmra.mxu1 %vm127_vm1, %v1993_v18 }
 0x8e3   :  { %5470 = vmatpush3.msra.mxu0 %v4973_v19  ;;  %5481 = vmatpush3.msra.mxu1 %v4969_v20 }
 0x8e4   :  { %5471 = vmatprep.subr.mxu0 %v4972_v21  ;;  %5482 = vmatprep.subr.mxu1 %v4968_v22 }
 0x8e5   :  { %5472 = vmatpush3.msra.mxu0 %v4972_v21  ;;  %5483 = vmatpush3.msra.mxu1 %v4968_v22 }
 0x8e6   :  { %5473 = vmatprep.subr.mxu0 %v4971_v13  ;;  %5484 = vmatprep.subr.mxu1 %v4967_v23 }
 0x8e7   :  { %5474 = vmatpush3.msra.mxu0 %v4971_v13  ;;  %5485 = vmatpush3.msra.mxu1 %v4967_v23 }
 0x8e8   :  { %5475 = vmatprep.subr.mxu0 %v4970_v24  ;;  %5486 = vmatprep.subr.mxu1 %v4966_v25 }
 0x8e9   :  { %5476 = vmatpush3.msra.mxu0 %v4970_v24  ;;  %5487 = vmatpush3.msra.mxu1 %v4966_v25  ;;  %v5033_v25 = vld [vmem:[%s6591_s5 + $0x9] ss:$0 sm:$0xff] }
 0x8ea   :  { %5491 = vmatprep.subr.mxu0 %v5038_v62  ;;  %5502 = vmatprep.subr.mxu1 %v5042_v0 }
 0x9a2   :  { %v5457_v28 = vpop.f32.mrf.mxu0  ;;  %v5468_v29 = vpop.f32.mrf.mxu1 }
 0x9a3   :  { %v2078_v30 = vadd.f32 %v5457_v28, %v5022_v26  ;;  %v2161_v31 = vadd.f32 %v5468_v29, %v5025_v27 }
 0x9a4   :  { %v2072_v32 = vpop.f32.mrf.mxu0  ;;  %v2155_v33 = vpop.f32.mrf.mxu1 }
 0x9a5   :  { %v2073_v34 = vadd.f32 %v5022_v26, %v2072_v32  ;;  %v2156_v35 = vadd.f32 %v5025_v27, %v2155_v33  ;;  %v2082_v38 = vmax.f32 %v2078_v30, 0.0  ;;  %v2165_v39 = vmax.f32 %v2161_v31, 0.0  ;;  %v5034_v31 = vld [vmem:[%s6591_s5 + $0xa] ss:$0 sm:$0xff] }
 0x9a7   :  { %v2081_v36 = vmax.f32 %v2073_v34, 0.0  ;;  %v2164_v37 = vmax.f32 %v2156_v35, 0.0  ;;  %v5045_v35 = vld [vmem:[%s6590_s4 + $0x150] sm:$0xff] }
 0x9a9   :  { %5477 = vmatprep.mubr.msk.f32.mxu0 %vm127_vm1, %v2164_v37  ;;  %5488 = vmatprep.mubr.msk.f32.mxu1 %vm127_vm1, %v2081_v36  ;;  %v5044_v36 = vld [vmem:[%s6590_s4 + $0x148] sm:$0xff]  ;;  %v5043_v37 = vld [vmem:[%s6590_s4 + $0x140] sm:$0xff] }
 0x9aa   :  { %5478 = vmatmul.mubr.msk.f32.vlgmr.msra.gmra.mxu0 %vm127_vm1, %v2165_v39  ;;  %5489 = vmatmul.mubr.msk.f32.vlgmr.msra.gmra.mxu1 %vm127_vm1, %v2082_v38 }
 0x9ab   :  { %5492 = vmatpush3.msra.mxu0 %v5038_v62  ;;  %5503 = vmatpush3.msra.mxu1 %v5042_v0 }
 0x9ac   :  { %5493 = vmatprep.subr.mxu0 %v5037_v1  ;;  %5504 = vmatprep.subr.mxu1 %v5041_v2 }
 0x9ad   :  { %5494 = vmatpush3.msra.mxu0 %v5037_v1  ;;  %5505 = vmatpush3.msra.mxu1 %v5041_v2 }
 0x9ae   :  { %5495 = vmatprep.subr.mxu0 %v5036_v3  ;;  %5506 = vmatprep.subr.mxu1 %v5040_v4 }
 0x9af   :  { %5496 = vmatpush3.msra.mxu0 %v5036_v3  ;;  %5507 = vmatpush3.msra.mxu1 %v5040_v4 }
 0x9b0   :  { %5497 = vmatprep.subr.mxu0 %v5035_v5  ;;  %5508 = vmatprep.subr.mxu1 %v5039_v6 }
 0x9b1   :  { %5498 = vmatpush3.msra.mxu0 %v5035_v5  ;;  %5509 = vmatpush3.msra.mxu1 %v5039_v6 }
 0x9b2   :  { %5524 = vmatprep.subr.mxu1 %v5829_v63  ;;  %5513 = vmatprep.subr.mxu0 %v5046_v7 }
 0xa6a   :  { %v5479_v40 = vpop.f32.mrf.mxu0  ;;  %v5490_v42 = vpop.f32.mrf.mxu1 }
 0xa6b   :  { %v2325_v43 = vadd.f32 %v5490_v42, %v5479_v40  ;;  %v5078_v40 = vld [vmem:[%s6591_s5 + $0xb] ss:$0 sm:$0xff] }
 0xa6c   :  { %v2238_v44 = vpop.f32.mrf.mxu0  ;;  %v2319_v45 = vpop.f32.mrf.mxu1 }
 0xa6d   :  { %v2335_v59 = vadd.f32 %v5032_v41, %v2325_v43  ;;  %v2320_v55 = vadd.f32 %v2319_v45, %v2238_v44 }
 0xa6f   :  { %v2334_v46 = vadd.f32 %v5032_v41, %v2320_v55  ;;  %v2337_v47 = vadd.f32 %v2335_v59, %v1993_v18  ;;  %v5081_v41 = vld [vmem:[%s6591_s5 + $0xc] ss:$0 sm:$0xff]  ;;  %v5084_v59 = vld [vmem:[%s6591_s5 + $0xd] ss:$0 sm:$0xff] }
 0xa71   :  { %v2341_v48 = vsel %vm127_vm1, %v2337_v47, 0.0  ;;  %v2336_v49 = vadd.f32 %v2334_v46, %v1992_v14 }
 0xa72   :  { %2342 = vadd.xlane.f32.xlu1 %v2341_v48 }
 0xa73   :  { %v2338_v50 = vsel %vm127_vm1, %v2336_v49, 0.0 }
 0xa74   :  { %2339 = vadd.xlane.f32.xlu0 %v2338_v50 }
 0xafb   :  { %v2343_v51 = vpop.xlane.xlu1 %2342 }
 0xafc   :  { %v2345_v52 = vmul.f32 0.03125, %v2343_v51 }
 0xafd   :  { %v2340_v53 = vpop.xlane.xlu0 %2339 }
 0xafe   :  { %v2347_v54 = vsub.f32 %v2337_v47, %v2345_v52  ;;  %v2344_v56 = vmul.f32 0.03125, %v2340_v53 }
 0xb00   :  { %v2346_v57 = vsub.f32 %v2336_v49, %v2344_v56  ;;  %v2349_v10 = vmul.f32 %v2347_v54, %v2347_v54  ;;  %v2365_v27 = vmul.f32 %v5033_v25, %v2347_v54 }
 0xb02   :  { %v2353_v58 = vsel %vm127_vm1, %v2349_v10, 0.0  ;;  %v2348_v60 = vmul.f32 %v2346_v57, %v2346_v57  ;;  %v2364_v28 = vmul.f32 %v5033_v25, %v2346_v57 }
 0xb03   :  { %2354 = vadd.xlane.f32.xlu1 %v2353_v58 }
 0xb04   :  { %v2350_v61 = vsel %vm127_vm1, %v2348_v60, 0.0 }
 0xb05   :  { %2351 = vadd.xlane.f32.xlu0 %v2350_v61 }
 0xb8c   :  { %v2355_v8 = vpop.xlane.xlu1 %2354 }
 0xb8d   :  { %v2357_v9 = vmul.f32 0.03125, %v2355_v8 }
 0xb8e   :  { %v2352_v11 = vpop.xlane.xlu0 %2351 }
 0xb8f   :  { %v2367_v12 = vadd.f32 1e-05, %v2357_v9  ;;  %v2356_v14 = vmul.f32 0.03125, %v2352_v11 }
 0xb91   :  { %5739 = vrsqrt.f32 %v2367_v12  ;;  %v2366_v15 = vadd.f32 1e-05, %v2356_v14  ;;  %vm2377_vm15 = vcmp.eq.f32.partialorder %v2367_v12, inf  ;;  %v2380_v18 = vand.u32 2147483648, %v2367_v12 }
 0xb92   :  { %vm2379_vm2 = vcmp.eq.f32.partialorder %v2367_v12, 0.0 }
 0xb93   :  { %5741 = vrsqrt.f32 %v2366_v15  ;;  %vm2370_vm3 = vcmp.eq.f32.partialorder %v2366_v15, inf  ;;  %v2373_v13 = vand.u32 2147483648, %v2366_v15  ;;  %vm2372_vm4 = vcmp.eq.f32.partialorder %v2366_v15, 0.0 }
 0xb9e   :  { %v5740_v16 = vpop.eup %5739 }
 0xb9f   :  { %v2376_v17 = vmul.f32 %v5740_v16, %v2367_v12 }
 0xba0   :  { %v5742_v19 = vpop.eup %5741 }
 0xba1   :  { %v2378_v20 = vsel %vm2377_vm15, %v2367_v12, %v2376_v17  ;;  %v2369_v22 = vmul.f32 %v5742_v19, %v2366_v15 }
 0xba2   :  { %v2381_v21 = vsel %vm2379_vm2, %v2380_v18, %v2378_v20  ;;  %vm4845_vm2 = vcmask 57344  }
 0xba3   :  { %5743 = vrcp.f32 %v2381_v21  ;;  %v2371_v23 = vsel %vm2370_vm3, %v2366_v15, %v2369_v22 }
 0xba4   :  { %v2374_v24 = vsel %vm2372_vm4, %v2373_v13, %v2371_v23 }
 0xba5   :  { %5745 = vrcp.f32 %v2374_v24 }
 0xbb0   :  { %v5744_v26 = vpop.eup %5743 }
 0xbb1   :  { %v2385_v30 = vmul.f32 %v5744_v26, %v2365_v27 }
 0xbb2   :  { %v5746_v29 = vpop.eup %5745 }
 0xbb3   :  { %v2383_v32 = vmul.f32 %v5746_v29, %v2364_v28  ;;  %v6256_v34 = vadd.f32 %v5034_v31, %v2385_v30 }
 0xbb5   :  { %v6254_v33 = vadd.f32 %v5034_v31, %v2383_v32 }
 0xbb7   :  { %5499 = vmatprep.mubr.msk.f32.mxu0 %vm127_vm1, %v6254_v33  ;;  %5510 = vmatprep.mubr.msk.f32.mxu1 %vm127_vm1, %v6254_v33 }
 0xbb8   :  { %5500 = vmatmul.mubr.msk.f32.vlgmr.msra.gmra.mxu0 %vm127_vm1, %v6256_v34  ;;  %5511 = vmatmul.mubr.msk.f32.vlgmr.msra.gmra.mxu1 %vm127_vm1, %v6256_v34 }
 0xbb9   :  { %5514 = vmatpush3.msra.mxu0 %v5046_v7  ;;  %5521 = vmatprep.mubr.msk.f32.mxu0 %vm127_vm1, %v6254_v33 }
 0xbba   :  { %5515 = vmatprep.subr.mxu0 %v5045_v35  ;;  %5526 = vmatprep.mubr.msk.f32.mxu1 %vm5830_vm6, %v5829_v63 }
 0xbbb   :  { %5516 = vmatpush3.msra.mxu0 %v5045_v35 }
 0xbbc   :  { %5517 = vmatprep.subr.mxu0 %v5044_v36 }
 0xbbd   :  { %5518 = vmatpush3.msra.mxu0 %v5044_v36 }
 0xbbe   :  { %5519 = vmatprep.subr.mxu0 %v5043_v37 }
 0xbbf   :  { %5520 = vmatpush3.msra.mxu0 %v5043_v37 }
 0xbc0   :  { %5522 = vmatmul.mubr.msk.f32.vlgmr.msra.gmra.mxu0 %vm127_vm1, %v6256_v34  ;;  %5529 = vmatprep.subr.mxu0 %v5829_v63 }
 0xbc1   :  { %5531 = vmatprep.mubr.msk.f32.mxu0 %vm5830_vm6, %v5829_v63 }
 0xc78   :  { %v5501_v38 = vpop.f32.mrf.mxu0  ;;  %v5512_v39 = vpop.f32.mrf.mxu1 }
 0xc79   :  { %v2621_v48 = vadd.f32 %v5512_v39, %v5081_v41  ;;  %v2540_v50 = vadd.f32 %v5501_v38, %v5078_v40 }
 0xc7a   :  { %v2534_v42 = vpop.f32.mrf.mxu0  ;;  %v2615_v43 = vpop.f32.mrf.mxu1 }
 0xc7b   :  { %v2535_v44 = vadd.f32 %v5078_v40, %v2534_v42  ;;  %v2616_v45 = vadd.f32 %v5081_v41, %v2615_v43 }
 0xc7d   :  { %2868 = vrot.lane.b32.xlu0 %v2616_v45, %s5831_s23  ;;  %5525 = vmatpush3.xpose.msk.msra.mxu1 %vm499_vm7, %v2616_v45 }
 0xc7e   :  { %2866 = vrot.lane.b32.xlu1 %v2535_v44, %s5831_s23  ;;  %5534 = vmatprep.subr.mxu1 %v5829_v63 }
 0xc80   :  { %v5523_v55 = vpop.f32.mrf.mxu0  ;;  %5527 = vmatmul.mubr.msk.f32.vlgmr.msra.gmra.mxu1 %vm499_vm7, %v2535_v44 }
 0xc81   :  { %v6298_v46 = vadd.f32 %v5523_v55, %v5084_v59  ;;  %3209 = vrot.lane.b32.xlu0 %v2616_v45, %s5832_s26  ;;  %5536 = vmatprep.mubr.msk.f32.mxu1 %vm5830_vm6, %v5829_v63 }
 0xc82   :  { %v2696_v47 = vpop.f32.mrf.mxu0  ;;  %3039 = vrot.lane.b32.xlu1 %v2616_v45, %s5833_s27 }
 0xc83   :  { %v6304_v49 = vadd.f32 %v5084_v59, %v2696_v47 }
 0xc85   :  { %5530 = vmatpush3.msra.mxu0 %v6304_v49  ;;  %3540 = vrot.lane.b32.xlu0 %v2621_v48, %s5831_s23 }
 0xc86   :  { %3037 = vrot.lane.b32.xlu1 %v2535_v44, %s5833_s27  ;;  %5539 = vmatprep.subr.mxu0 %v5829_v63 }
 0xc89   :  { %3711 = vrot.lane.b32.xlu0 %v2621_v48, %s5833_s27 }
 0xc8a   :  { %3207 = vrot.lane.b32.xlu1 %v2535_v44, %s5832_s26 }
 0xc8d   :  { %3881 = vrot.lane.b32.xlu0 %v2621_v48, %s5832_s26 }
 0xc8e   :  { %3538 = vrot.lane.b32.xlu1 %v2540_v50, %s5831_s23 }
 0xc92   :  { %3709 = vrot.lane.b32.xlu1 %v2540_v50, %s5833_s27 }
 0xc96   :  { %3879 = vrot.lane.b32.xlu1 %v2540_v50, %s5832_s26 }
 0xcef   :  { %v2869_v51 = vpop.permute.xlu0 %2868 }
 0xcf0   :  { %v2867_v52 = vpop.permute.xlu1 %2866  ;;  %5535 = vmatpush3.xpose.msk.msra.mxu1 %vm499_vm7, %v2869_v51 }
 0xcf1   :  { %5544 = vmatprep.subr.mxu1 %v5829_v63 }
 0xcf3   :  { %5537 = vmatmul.mubr.msk.f32.vlgmr.msra.gmra.mxu1 %vm499_vm7, %v2867_v52  ;;  %v3210_v54 = vpop.permute.xlu0 %3209 }
 0xcf4   :  { %v3040_v53 = vpop.permute.xlu1 %3039  ;;  %5546 = vmatprep.mubr.msk.f32.mxu1 %vm5830_vm6, %v5829_v63 }
 0xcf5   :  { %5545 = vmatpush3.xpose.msk.msra.mxu1 %vm499_vm7, %v3040_v53 }
 0xcf6   :  { %5554 = vmatprep.subr.mxu1 %v5829_v63 }
 0xcf7   :  { %v3541_v10 = vpop.permute.xlu0 %3540 }
 0xcf8   :  { %v3038_v56 = vpop.permute.xlu1 %3037 }
 0xcf9   :  { %5547 = vmatmul.mubr.msk.f32.vlgmr.msra.gmra.mxu1 %vm499_vm7, %v3038_v56 }
 0xcfa   :  { %5555 = vmatpush3.xpose.msk.msra.mxu1 %vm499_vm7, %v3210_v54  ;;  %5556 = vmatprep.mubr.msk.f32.mxu1 %vm5830_vm6, %v5829_v63 }
 0xcfb   :  { %5564 = vmatprep.subr.mxu1 %v5829_v63  ;;  %v3712_v60 = vpop.permute.xlu0 %3711 }
 0xcfc   :  { %v3208_v57 = vpop.permute.xlu1 %3207 }
 0xcfd   :  { %5557 = vmatmul.mubr.msk.f32.vlgmr.msra.gmra.mxu1 %vm499_vm7, %v3208_v57 }
 0xcfe   :  { %5565 = vmatpush3.xpose.msk.msra.mxu1 %vm499_vm7, %v2621_v48  ;;  %5566 = vmatprep.mubr.msk.f32.mxu1 %vm5830_vm6, %v5829_v63 }
 0xcff   :  { %5574 = vmatprep.subr.mxu1 %v5829_v63  ;;  %v3882_v62 = vpop.permute.xlu0 %3881 }
 0xd00   :  { %v3539_v58 = vpop.permute.xlu1 %3538 }
 0xd01   :  { %5567 = vmatmul.mubr.msk.f32.vlgmr.msra.gmra.mxu1 %vm499_vm7, %v2540_v50 }
 0xd02   :  { %5575 = vmatpush3.xpose.msk.msra.mxu1 %vm499_vm7, %v3541_v10  ;;  %5576 = vmatprep.mubr.msk.f32.mxu1 %vm5830_vm6, %v5829_v63 }
 0xd03   :  { %5584 = vmatprep.subr.mxu1 %v5829_v63 }
 0xd04   :  { %v3710_v61 = vpop.permute.xlu1 %3709 }
 0xd05   :  { %5577 = vmatmul.mubr.msk.f32.vlgmr.msra.gmra.mxu1 %vm499_vm7, %v3539_v58 }
 0xd06   :  { %5585 = vmatpush3.xpose.msk.msra.mxu1 %vm499_vm7, %v3712_v60  ;;  %5586 = vmatprep.mubr.msk.f32.mxu1 %vm5830_vm6, %v5829_v63 }
 0xd07   :  { %5594 = vmatprep.subr.mxu1 %v5829_v63 }
 0xd08   :  { %v3880_v0 = vpop.permute.xlu1 %3879 }
 0xd09   :  { %5587 = vmatmul.mubr.msk.f32.vlgmr.msra.gmra.mxu1 %vm499_vm7, %v3710_v61 }
 0xd0a   :  { %5595 = vmatpush3.xpose.msk.msra.mxu1 %vm499_vm7, %v3882_v62  ;;  %5596 = vmatprep.mubr.msk.f32.mxu1 %vm5830_vm6, %v5829_v63 }
 0xd0d   :  { %5597 = vmatmul.mubr.msk.f32.vlgmr.msra.gmra.mxu1 %vm499_vm7, %v3880_v0 }
 0xd40   :  { %v2777_v1 = vpop.f32.mrf.mxu1 }
 0xd41   :  { %v2781_v2 = vsel %vm499_vm7, %v2777_v1, -inf }
 0xd42   :  { %2782 = vmax.xlane.f32.xlu0 %v2781_v2  ;;  %v5528_v3 = vpop.f32.mrf.mxu1 }
 0xdb3   :  { %v2940_v4 = vpop.f32.mrf.mxu1 }
 0xdb4   :  { %v2944_v5 = vsel %vm499_vm7, %v2940_v4, -inf }
 0xdb5   :  { %2945 = vmax.xlane.f32.xlu1 %v2944_v5  ;;  %v5538_v6 = vpop.f32.mrf.mxu1 }
 0xdb9   :  { %v3111_v7 = vpop.f32.mrf.mxu1 }
 0xdba   :  { %v3115_v8 = vsel %vm499_vm7, %v3111_v7, -inf }
 0xdbb   :  { %3116 = vmax.xlane.f32.xlu0 %v3115_v8  ;;  %v5548_v9 = vpop.f32.mrf.mxu1 }
 0xdbd   :  { %v3281_v11 = vpop.f32.mrf.mxu1 }
 0xdbe   :  { %v3285_v12 = vsel %vm499_vm7, %v3281_v11, -inf }
 0xdbf   :  { %3286 = vmax.xlane.f32.xlu0 %v3285_v12  ;;  %v5558_v14 = vpop.f32.mrf.mxu1 }
 0xdc1   :  { %v3449_v15 = vpop.f32.mrf.mxu1 }
 0xdc2   :  { %v3453_v16 = vsel %vm499_vm7, %v3449_v15, -inf }
 0xdc3   :  { %3454 = vmax.xlane.f32.xlu0 %v3453_v16  ;;  %v5568_v17 = vpop.f32.mrf.mxu1 }
 0xdc5   :  { %v3612_v18 = vpop.f32.mrf.mxu1 }
 0xdc6   :  { %v3616_v19 = vsel %vm499_vm7, %v3612_v18, -inf }
 0xdc7   :  { %3617 = vmax.xlane.f32.xlu1 %v3616_v19  ;;  %v5578_v20 = vpop.f32.mrf.mxu1 }
 0xdc9   :  { %v3783_v21 = vpop.f32.mrf.mxu1 }
 0xdca   :  { %v3787_v22 = vsel %vm499_vm7, %v3783_v21, -inf }
 0xdcb   :  { %3788 = vmax.xlane.f32.xlu0 %v3787_v22  ;;  %v5588_v13 = vpop.f32.mrf.mxu1  ;;  %v2783_v23 = vpop.xlane.xlu0 %2782 }
 0xdcc   :  { %v2784_v24 = vsub.f32 %v2777_v1, %v2783_v23 }
 0xdcd   :  { %v3953_v25 = vpop.f32.mrf.mxu1 }
 0xdce   :  { %v2785_v26 = vmul.f32 1.442695, %v2784_v24  ;;  %v3957_v27 = vsel %vm499_vm7, %v3953_v25, -inf }
 0xdcf   :  { %3958 = vmax.xlane.f32.xlu1 %v3957_v27  ;;  %v5598_v28 = vpop.f32.mrf.mxu1 }
 0xdd0   :  { %5747 = vpow2.f32 %v2785_v26 }
 0xddd   :  { %v5748_v29 = vpop.eup %5747 }
 0xdde   :  { %v2787_v30 = vsel %vm499_vm7, %v5748_v29, 0.0 }
 0xddf   :  { %2788 = vadd.xlane.f32.xlu0 %v2787_v30 }
 0xe3e   :  { %v2946_v31 = vpop.xlane.xlu1 %2945 }
 0xe3f   :  { %v2947_v32 = vsub.f32 %v2940_v4, %v2946_v31 }
 0xe41   :  { %v2948_v35 = vmul.f32 1.442695, %v2947_v32 }
 0xe43   :  { %5749 = vpow2.f32 %v2948_v35 }
 0xe44   :  { %v3117_v36 = vpop.xlane.xlu0 %3116 }
 0xe45   :  { %v3118_v37 = vsub.f32 %v3111_v7, %v3117_v36 }
 0xe47   :  { %v3119_v38 = vmul.f32 1.442695, %v3118_v37 }
 0xe48   :  { %v3287_v43 = vpop.xlane.xlu0 %3286 }
 0xe49   :  { %5751 = vpow2.f32 %v3119_v38  ;;  %v3288_v48 = vsub.f32 %v3281_v11, %v3287_v43 }
 0xe4b   :  { %v3289_v54 = vmul.f32 1.442695, %v3288_v48  ;;  %v5048_v48 = vld [vmem:[%s6590_s4 + $0x168] sm:$0xff] }
 0xe4c   :  { %v3455_v44 = vpop.xlane.xlu0 %3454 }
 0xe4d   :  { %v3456_v55 = vsub.f32 %v3449_v15, %v3455_v44 }
 0xe4f   :  { %v3457_v52 = vmul.f32 1.442695, %v3456_v55  ;;  %v5049_v55 = vld [vmem:[%s6590_s4 + $0x170] sm:$0xff] }
 0xe50   :  { %v5750_v39 = vpop.eup %5749  ;;  %v3618_v50 = vpop.xlane.xlu1 %3617 }
 0xe51   :  { %v2950_v40 = vsel %vm499_vm7, %v5750_v39, 0.0  ;;  %v3619_v56 = vsub.f32 %v3612_v18, %v3618_v50 }
 0xe52   :  { %2951 = vadd.xlane.f32.xlu1 %v2950_v40 }
 0xe53   :  { %v3620_v58 = vmul.f32 1.442695, %v3619_v56 }
 0xe54   :  { %v3789_v45 = vpop.xlane.xlu0 %3788 }
 0xe55   :  { %v3790_v53 = vsub.f32 %v3783_v21, %v3789_v45 }
 0xe56   :  { %v6358_v41 = vpop.eup %5751 }
 0xe57   :  { %v3121_v42 = vsel %vm499_vm7, %v6358_v41, 0.0  ;;  %v3791_v10 = vmul.f32 1.442695, %v3790_v53 }
 0xe58   :  { %3122 = vadd.xlane.f32.xlu0 %v3121_v42  ;;  %v3959_v57 = vpop.xlane.xlu1 %3958 }
 0xe63   :  { %3126 = vrot.lane.b32.xlu1 %v6304_v49, %s5833_s27 }
 0xe67   :  { %3296 = vrot.lane.b32.xlu1 %v6304_v49, %s5832_s26 }
 0xe68   :  { %v2789_v59 = vpop.xlane.xlu0 %2788 }
 0xe69   :  { %5753 = vrcp.f32 %v2789_v59  ;;  %v5050_v59 = vld [vmem:[%s6590_s4 + $0x178] sm:$0xff] }
 0xe6a   :  { %5755 = vpow2.f32 %v3457_v52  ;;  %5604 = vmatprep.subr.mxu1 %v5050_v59 }
 0xe6b   :  { %3628 = vrot.lane.b32.xlu1 %v6298_v46, %s5831_s23  ;;  %5757 = vpow2.f32 %v3289_v54  ;;  %5605 = vmatpush3.msra.mxu1 %v5050_v59 }
 0xe6c   :  { %5759 = vpow2.f32 %v3791_v10  ;;  %5606 = vmatprep.subr.mxu1 %v5049_v55 }
 0xe6d   :  { %5761 = vpow2.f32 %v3620_v58  ;;  %5607 = vmatpush3.msra.mxu1 %v5049_v55 }
 0xe6e   :  { %2956 = vrot.lane.b32.xlu0 %v6304_v49, %s5831_s23  ;;  %v3960_v49 = vsub.f32 %v3953_v25, %v3959_v57  ;;  %5608 = vmatprep.subr.mxu1 %v5048_v48 }
 0xe6f   :  { %5609 = vmatpush3.msra.mxu1 %v5048_v48 }
 0xe70   :  { %v3961_v60 = vmul.f32 1.442695, %v3960_v49 }
 0xe72   :  { %5763 = vpow2.f32 %v3961_v60 }
 0xe76   :  { %v5754_v47 = vpop.eup %5753 }
 0xe77   :  { %v2791_v51 = vmul.f32 %v5754_v47, %v5748_v29  ;;  %v5756_v61 = vpop.eup %5755 }
 0xe78   :  { %v5758_v62 = vpop.eup %5757  ;;  %v3459_v0 = vsel %vm499_vm7, %v5756_v61, 0.0 }
 0xe79   :  { %5532 = vmatmul.mubr.msk.f32.vlgmr.msra.gmra.mxu0 %vm499_vm7, %v2791_v51  ;;  %v6374_v1 = vpop.eup %5759  ;;  %v3291_v2 = vsel %vm499_vm7, %v5758_v62, 0.0  ;;  %v5047_v51 = vld [vmem:[%s6590_s4 + $0x160] sm:$0xff] }
 0xe7a   :  { %5541 = vmatprep.mubr.msk.f32.mxu0 %vm5830_vm6, %v5829_v63  ;;  %v5762_v3 = vpop.eup %5761  ;;  %v3793_v4 = vsel %vm499_vm7, %v6374_v1, 0.0  ;;  %5610 = vmatprep.subr.mxu1 %v5047_v51 }
 0xe7b   :  { %v3622_v5 = vsel %vm499_vm7, %v5762_v3, 0.0  ;;  %5611 = vmatpush3.msra.mxu1 %v5047_v51 }
 0xe7f   :  { %v6380_v6 = vpop.eup %5763 }
 0xe80   :  { %v3963_v7 = vsel %vm499_vm7, %v6380_v6, 0.0 }
 0xe8d   :  { %3460 = vadd.xlane.f32.xlu0 %v3459_v0 }
 0xe8f   :  { %3292 = vadd.xlane.f32.xlu1 %v3291_v2  ;;  %v5111_v2 = vld [vmem:[%s6591_s5 + $0xe] ss:$0 sm:$0xff] }
 0xe91   :  { %3794 = vadd.xlane.f32.xlu0 %v3793_v4 }
 0xe93   :  { %3623 = vadd.xlane.f32.xlu1 %v3622_v5 }
 0xe97   :  { %3964 = vadd.xlane.f32.xlu1 %v3963_v7 }
 0xea7   :  { %3798 = vrot.lane.b32.xlu0 %v6298_v46, %s5833_s27 }
 0xea8   :  { %3968 = vrot.lane.b32.xlu1 %v6298_v46, %s5832_s26 }
 0xedb   :  { %v2952_v8 = vpop.xlane.xlu1 %2951 }
 0xedc   :  { %5765 = vrcp.f32 %v2952_v8 }
 0xedf   :  { %v3127_v15 = vpop.permute.xlu1 %3126 }
 0xee1   :  { %v3123_v9 = vpop.xlane.xlu0 %3122 }
 0xee2   :  { %5767 = vrcp.f32 %v3123_v9 }
 0xee3   :  { %v3297_v18 = vpop.permute.xlu1 %3296 }
 0xee5   :  { %v2957_v11 = vpop.permute.xlu0 %2956 }
 0xee6   :  { %5540 = vmatpush3.msra.mxu0 %v2957_v11 }
 0xee7   :  { %5549 = vmatprep.subr.mxu0 %v5829_v63  ;;  %v3629_v19 = vpop.permute.xlu1 %3628 }
 0xee9   :  { %v5766_v12 = vpop.eup %5765 }
 0xeea   :  { %v2954_v14 = vmul.f32 %v5766_v12, %v5750_v39 }
 0xeec   :  { %5542 = vmatmul.mubr.msk.f32.vlgmr.msra.gmra.mxu0 %vm499_vm7, %v2954_v14 }
 0xeed   :  { %5550 = vmatpush3.msra.mxu0 %v3127_v15  ;;  %5551 = vmatprep.mubr.msk.f32.mxu0 %vm5830_vm6, %v5829_v63 }
 0xeee   :  { %5559 = vmatprep.subr.mxu0 %v5829_v63 }
 0xeef   :  { %v5768_v16 = vpop.eup %5767 }
 0xef0   :  { %v3125_v17 = vmul.f32 %v5768_v16, %v6358_v41 }
 0xef2   :  { %5552 = vmatmul.mubr.msk.f32.vlgmr.msra.gmra.mxu0 %vm499_vm7, %v3125_v17 }
 0xef3   :  { %5560 = vmatpush3.msra.mxu0 %v3297_v18  ;;  %5561 = vmatprep.mubr.msk.f32.mxu0 %vm5830_vm6, %v5829_v63 }
 0xef4   :  { %5569 = vmatprep.subr.mxu0 %v5829_v63 }
 0xf16   :  { %v3461_v20 = vpop.xlane.xlu0 %3460 }
 0xf18   :  { %v3293_v21 = vpop.xlane.xlu1 %3292 }
 0xf19   :  { %5769 = vrcp.f32 %v3293_v21 }
 0xf1a   :  { %5771 = vrcp.f32 %v3461_v20  ;;  %v3795_v13 = vpop.xlane.xlu0 %3794 }
 0xf1c   :  { %v3624_v22 = vpop.xlane.xlu1 %3623 }
 0xf1d   :  { %5773 = vrcp.f32 %v3624_v22  ;;  %v5058_v22 = vld [vmem:[%s6590_s4 + $0x1b8] sm:$0xff] }
 0xf1e   :  { %5775 = vrcp.f32 %v3795_v13  ;;  %v3799_v31 = vpop.permute.xlu0 %3798  ;;  %v5053_v13 = vld [vmem:[%s6590_s4 + $0x190] sm:$0xff]  ;;  %5626 = vmatprep.subr.mxu1 %v5058_v22 }
 0xf20   :  { %v3965_v23 = vpop.xlane.xlu1 %3964 }
 0xf21   :  { %5777 = vrcp.f32 %v3965_v23  ;;  %v5057_v23 = vld [vmem:[%s6590_s4 + $0x1b0] sm:$0xff] }
 0xf24   :  { %v3969_v35 = vpop.permute.xlu1 %3968 }
 0xf26   :  { %v5770_v24 = vpop.eup %5769 }
 0xf27   :  { %v3295_v25 = vmul.f32 %v5770_v24, %v5758_v62  ;;  %v5772_v26 = vpop.eup %5771  ;;  %v5052_v24 = vld [vmem:[%s6590_s4 + $0x188] sm:$0xff] }
 0xf28   :  { %v3463_v27 = vmul.f32 %v5772_v26, %v5756_v61  ;;  %v5051_v26 = vld [vmem:[%s6590_s4 + $0x180] sm:$0xff] }
 0xf29   :  { %5562 = vmatmul.mubr.msk.f32.vlgmr.msra.gmra.mxu0 %vm499_vm7, %v3295_v25  ;;  %v5056_v25 = vld [vmem:[%s6590_s4 + $0x1a8] sm:$0xff] }
 0xf2a   :  { %5570 = vmatpush3.msra.mxu0 %v6298_v46  ;;  %5571 = vmatprep.mubr.msk.f32.mxu0 %vm5830_vm6, %v5829_v63  ;;  %v5774_v28 = vpop.eup %5773 }
 0xf2b   :  { %5579 = vmatprep.subr.mxu0 %v5829_v63  ;;  %v3626_v29 = vmul.f32 %v5774_v28, %v5762_v3  ;;  %v5776_v30 = vpop.eup %5775 }
 0xf2c   :  { %v3797_v46 = vmul.f32 %v5776_v30, %v6374_v1 }
 0xf2d   :  { %5572 = vmatmul.mubr.msk.f32.vlgmr.msra.gmra.mxu0 %vm499_vm7, %v3463_v27  ;;  %v5055_v27 = vld [vmem:[%s6590_s4 + $0x1a0] sm:$0xff] }
 0xf2e   :  { %5580 = vmatpush3.msra.mxu0 %v3629_v19  ;;  %5581 = vmatprep.mubr.msk.f32.mxu0 %vm5830_vm6, %v5829_v63  ;;  %v5778_v32 = vpop.eup %5777 }
 0xf2f   :  { %5589 = vmatprep.subr.mxu0 %v5829_v63  ;;  %v3967_v36 = vmul.f32 %v5778_v32, %v6380_v6 }
 0xf31   :  { %5582 = vmatmul.mubr.msk.f32.vlgmr.msra.gmra.mxu0 %vm499_vm7, %v3626_v29 }
 0xf32   :  { %5590 = vmatpush3.msra.mxu0 %v3799_v31  ;;  %5591 = vmatprep.mubr.msk.f32.mxu0 %vm5830_vm6, %v5829_v63 }
 0xf33   :  { %5599 = vmatprep.subr.mxu0 %v5829_v63 }
 0xf35   :  { %5592 = vmatmul.mubr.msk.f32.vlgmr.msra.gmra.mxu0 %vm499_vm7, %v3797_v46 }
 0xf36   :  { %5600 = vmatpush3.msra.mxu0 %v3969_v35  ;;  %5601 = vmatprep.mubr.msk.f32.mxu0 %vm5830_vm6, %v5829_v63 }
 0xf39   :  { %v2861_v37 = vpop.f32.mrf.mxu0  ;;  %5602 = vmatmul.mubr.msk.f32.vlgmr.msra.gmra.mxu0 %vm499_vm7, %v3967_v36 }
 0xf3a   :  { %2865 = vst.msk [vmem:[#allocation2] sm:$0xff] %vm499_vm7, %v2861_v37 }
 0xf3b   :  { %v5533_v38 = vpop.f32.mrf.mxu0 }
 0xfac   :  { %v3028_v39 = vpop.f32.mrf.mxu0 }
 0xfad   :  { %3033 = vrot.lane.b32.xlu0 %v3028_v39, %s5834_s28 }
 0xfae   :  { %v5543_v40 = vpop.f32.mrf.mxu0 }
 0xfb2   :  { %v3198_v41 = vpop.f32.mrf.mxu0 }
 0xfb3   :  { %3203 = vrot.lane.b32.xlu1 %v3198_v41, %s5835_s29 }
 0xfb4   :  { %v5553_v42 = vpop.f32.mrf.mxu0 }
 0xfe9   :  { %v3368_v43 = vpop.f32.mrf.mxu0 }
 0xfea   :  { %3373 = vrot.lane.b32.xlu1 %v3368_v43, %s5836_s30 }
 0xfeb   :  { %v5563_v44 = vpop.f32.mrf.mxu0 }
 0xfed   :  { %v3533_v45 = vpop.f32.mrf.mxu0 }
 0xfee   :  { %3537 = vst.msk [vmem:[#allocation2 + $0x8] sm:$0xff] %vm499_vm7, %v3533_v45  ;;  %v5114_v45 = vld [vmem:[%s6591_s5 + $0x12] ss:$0 sm:$0xff] }
 0xfef   :  { %v5573_v47 = vpop.f32.mrf.mxu0 }
 0xff0   :  { %v5115_v47 = vld [vmem:[%s6591_s5 + $0x13] ss:$0 sm:$0xff] }
 0xff1   :  { %v3700_v50 = vpop.f32.mrf.mxu0 }
 0xff2   :  { %3705 = vrot.lane.b32.xlu0 %v3700_v50, %s5834_s28 }
 0xff3   :  { %v5583_v52 = vpop.f32.mrf.mxu0 }
 0xff5   :  { %v3870_v53 = vpop.f32.mrf.mxu0 }
 0xff6   :  { %3875 = vrot.lane.b32.xlu0 %v3870_v53, %s5835_s29 }
 0xff7   :  { %v5593_v54 = vpop.f32.mrf.mxu0 }
 0xff9   :  { %v4040_v56 = vpop.f32.mrf.mxu0 }
 0xffa   :  { %4045 = vrot.lane.b32.xlu1 %v4040_v56, %s5836_s30  ;;  %v5066_v56 = vld [vmem:[%s6590_s4 + $0x1f8] sm:$0xff] }
 0xffb   :  { %v5603_v57 = vpop.f32.mrf.mxu0 }
 0xffc   :  { %v5062_v57 = vld [vmem:[%s6590_s4 + $0x1d8] sm:$0xff] }
0x101f   :  { %v3034_v10 = vpop.permute.xlu0 %3033 }
0x1020   :  { %3036 = vst.msk [vmem:[#allocation2] sm:$0xff] %vm831_vm8, %v3034_v10  ;;  %v5065_v10 = vld [vmem:[%s6590_s4 + $0x1f0] sm:$0xff] }
0x1025   :  { %v3204_v58 = vpop.permute.xlu1 %3203 }
0x1026   :  { %3206 = vst.msk [vmem:[#allocation2] sm:$0xff] %vm1002_vm9, %v3204_v58  ;;  %v5061_v58 = vld [vmem:[%s6590_s4 + $0x1d0] sm:$0xff] }
0x105c   :  { %v3374_v49 = vpop.permute.xlu1 %3373 }
0x105d   :  { %3376 = vst.msk [vmem:[#allocation2] sm:$0xff] %vm1173_vm10, %v3374_v49  ;;  %v5064_v49 = vld [vmem:[%s6590_s4 + $0x1e8] sm:$0xff] }
0x1064   :  { %v3706_v60 = vpop.permute.xlu0 %3705  ;;  %v4049_v61 = vld [vmem:[#allocation2] sm:$0xff] }
0x1065   :  { %3708 = vst.msk [vmem:[#allocation2 + $0x8] sm:$0xff] %vm831_vm8, %v3706_v60  ;;  %5612 = vmatprep.mubr.msk.f32.mxu1 %vm127_vm1, %v4049_v61  ;;  %v5060_v60 = vld [vmem:[%s6590_s4 + $0x1c8] sm:$0xff]  ;;  %v5063_v61 = vld [vmem:[%s6590_s4 + $0x1e0] sm:$0xff] }
0x1068   :  { %v3876_v62 = vpop.permute.xlu0 %3875 }
0x1069   :  { %3878 = vst.msk [vmem:[#allocation2 + $0x8] sm:$0xff] %vm1002_vm9, %v3876_v62  ;;  %v5059_v62 = vld [vmem:[%s6590_s4 + $0x1c0] sm:$0xff] }
0x106c   :  { %v4046_v0 = vpop.permute.xlu1 %4045 }
0x106d   :  { %4048 = vst.msk [vmem:[#allocation2 + $0x8] sm:$0xff] %vm1173_vm10, %v4046_v0  ;;  %v5116_v0 = vld [vmem:[%s6591_s5 + $0xf] ss:$0 sm:$0xff] }
0x1074   :  { %v4050_v1 = vld [vmem:[#allocation2 + $0x8] sm:$0xff] }
0x1075   :  { %5613 = vmatmul.mubr.msk.f32.vlgmr.msra.gmra.mxu1 %vm127_vm1, %v4050_v1  ;;  %v5119_v1 = vld [vmem:[%s6591_s5 + $0x10] ss:$0 sm:$0xff] }
0x1076   :  { %5627 = vmatpush3.msra.mxu1 %v5058_v22 }
0x1077   :  { %5628 = vmatprep.subr.mxu1 %v5057_v23 }
0x1078   :  { %5629 = vmatpush3.msra.mxu1 %v5057_v23 }
0x1079   :  { %5630 = vmatprep.subr.mxu1 %v5056_v25 }
0x107a   :  { %5631 = vmatpush3.msra.mxu1 %v5056_v25 }
0x107b   :  { %5632 = vmatprep.subr.mxu1 %v5055_v27 }
0x107c   :  { %5633 = vmatpush3.msra.mxu1 %v5055_v27 }
0x107d   :  { %5648 = vmatprep.subr.mxu1 %v5062_v57 }
0x1135   :  { %v5614_v3 = vpop.f32.mrf.mxu1 }
0x1136   :  { %v4135_v4 = vadd.f32 %v5614_v3, %v5111_v2 }
0x1137   :  { %v4129_v5 = vpop.f32.mrf.mxu1 }
0x1138   :  { %v4130_v6 = vadd.f32 %v5111_v2, %v4129_v5  ;;  %v4139_v7 = vadd.f32 %v4135_v4, %v6256_v34 }
0x113a   :  { %v4143_v8 = vsel %vm127_vm1, %v4139_v7, 0.0  ;;  %v4138_v9 = vadd.f32 %v4130_v6, %v6254_v33  ;;  %v5054_v33 = vld [vmem:[%s6590_s4 + $0x198] sm:$0xff] }
0x113b   :  { %4144 = vadd.xlane.f32.xlu1 %v4143_v8  ;;  %5615 = vmatprep.subr.mxu0 %v5054_v33 }
0x113c   :  { %v4140_v11 = vsel %vm127_vm1, %v4138_v9, 0.0  ;;  %5616 = vmatpush3.msra.mxu0 %v5054_v33 }
0x113d   :  { %4141 = vadd.xlane.f32.xlu0 %v4140_v11  ;;  %5617 = vmatprep.subr.mxu0 %v5053_v13 }
0x113e   :  { %5618 = vmatpush3.msra.mxu0 %v5053_v13 }
0x113f   :  { %5619 = vmatprep.subr.mxu0 %v5052_v24 }
0x1140   :  { %5620 = vmatpush3.msra.mxu0 %v5052_v24 }
0x1141   :  { %5621 = vmatprep.subr.mxu0 %v5051_v26 }
0x1142   :  { %5622 = vmatpush3.msra.mxu0 %v5051_v26 }
0x1143   :  { %5637 = vmatprep.subr.mxu0 %v5066_v56 }
0x11c4   :  { %v4145_v12 = vpop.xlane.xlu1 %4144 }
0x11c5   :  { %v4147_v14 = vmul.f32 0.03125, %v4145_v12 }
0x11c6   :  { %v4142_v15 = vpop.xlane.xlu0 %4141 }
0x11c7   :  { %v4146_v16 = vmul.f32 0.03125, %v4142_v15  ;;  %v4149_v17 = vsub.f32 %v4139_v7, %v4147_v14 }
0x11c9   :  { %v4148_v18 = vsub.f32 %v4138_v9, %v4146_v16  ;;  %v4151_v21 = vmul.f32 %v4149_v17, %v4149_v17  ;;  %v4167_v51 = vmul.f32 %v5114_v45, %v4149_v17  ;;  %v5126_v17 = vld [vmem:[%s6591_s5 + $0x11] ss:$0 sm:$0xff] }
0x11cb   :  { %v4150_v19 = vmul.f32 %v4148_v18, %v4148_v18  ;;  %v4155_v34 = vsel %vm127_vm1, %v4151_v21, 0.0  ;;  %v4166_v59 = vmul.f32 %v5114_v45, %v4148_v18 }
0x11cd   :  { %v4152_v20 = vsel %vm127_vm1, %v4150_v19, 0.0 }
0x11ce   :  { %4153 = vadd.xlane.f32.xlu0 %v4152_v20 }
0x11d2   :  { %4156 = vadd.xlane.f32.xlu0 %v4155_v34 }
0x1257   :  { %v4154_v28 = vpop.xlane.xlu0 %4153 }
0x1258   :  { %v4158_v29 = vmul.f32 0.03125, %v4154_v28 }
0x125a   :  { %v4168_v30 = vadd.f32 1e-05, %v4158_v29 }
0x125b   :  { %v4157_v31 = vpop.xlane.xlu0 %4156 }
0x125c   :  { %5779 = vrsqrt.f32 %v4168_v30  ;;  %v4159_v46 = vmul.f32 0.03125, %v4157_v31  ;;  %vm4172_vm5 = vcmp.eq.f32.partialorder %v4168_v30, inf  ;;  %v4175_v37 = vand.u32 2147483648, %v4168_v30 }
0x125d   :  { %vm4174_vm7 = vcmp.eq.f32.partialorder %v4168_v30, 0.0 }
0x125e   :  { %v4169_v32 = vadd.f32 1e-05, %v4159_v46 }
0x1260   :  { %5781 = vrsqrt.f32 %v4169_v32  ;;  %vm4179_vm8 = vcmp.eq.f32.partialorder %v4169_v32, inf  ;;  %v4182_v42 = vand.u32 2147483648, %v4169_v32  ;;  %vm4181_vm9 = vcmp.eq.f32.partialorder %v4169_v32, 0.0 }
0x1269   :  { %v5780_v35 = vpop.eup %5779 }
0x126a   :  { %v4171_v36 = vmul.f32 %v5780_v35, %v4168_v30 }
0x126c   :  { %v4173_v38 = vsel %vm4172_vm5, %v4168_v30, %v4171_v36 }
0x126d   :  { %v4176_v39 = vsel %vm4174_vm7, %v4175_v37, %v4173_v38  ;;  %v5782_v40 = vpop.eup %5781  ;;  %v4599_v37 = vld [vmem:[%s6592_s6 + $0x18] sm:$0xff]  ;;  %v4598_v38 = vld [vmem:[%s6592_s6 + $0x10] sm:$0xff] }
0x126e   :  { %5783 = vrcp.f32 %v4176_v39  ;;  %v4178_v41 = vmul.f32 %v5782_v40, %v4169_v32  ;;  %v4597_v39 = vld [vmem:[%s6592_s6 + $0x8] sm:$0xff]  ;;  %v4596_v40 = vld [vmem:[%s6592_s6] sm:$0xff] }
0x1270   :  { %v4180_v43 = vsel %vm4179_vm8, %v4169_v32, %v4178_v41 }
0x1271   :  { %v4183_v44 = vsel %vm4181_vm9, %v4182_v42, %v4180_v43 }
0x1272   :  { %5785 = vrcp.f32 %v4183_v44 }
0x127b   :  { %v5784_v55 = vpop.eup %5783 }
0x127c   :  { %v4185_v48 = vmul.f32 %v5784_v55, %v4166_v59 }
0x127e   :  { %v6484_v50 = vadd.f32 %v5115_v47, %v4185_v48 }
0x127f   :  { %v5786_v52 = vpop.eup %5785 }
0x1280   :  { %5623 = vmatprep.mubr.msk.f32.mxu0 %vm127_vm1, %v6484_v50  ;;  %5634 = vmatprep.mubr.msk.f32.mxu1 %vm127_vm1, %v6484_v50  ;;  %v4187_v53 = vmul.f32 %v5786_v52, %v4167_v51 }
0x1282   :  { %v4195_v54 = vadd.f32 %v5115_v47, %v4187_v53 }
0x1284   :  { %5624 = vmatmul.mubr.msk.f32.vlgmr.msra.gmra.mxu0 %vm127_vm1, %v4195_v54  ;;  %5635 = vmatmul.mubr.msk.f32.vlgmr.msra.gmra.mxu1 %vm127_vm1, %v4195_v54 }
0x1285   :  { %5638 = vmatpush3.msra.mxu0 %v5066_v56  ;;  %5649 = vmatpush3.msra.mxu1 %v5062_v57 }
0x1286   :  { %5639 = vmatprep.subr.mxu0 %v5065_v10  ;;  %5650 = vmatprep.subr.mxu1 %v5061_v58 }
0x1287   :  { %5640 = vmatpush3.msra.mxu0 %v5065_v10  ;;  %5651 = vmatpush3.msra.mxu1 %v5061_v58  ;;  %v5127_v10 = vld [vmem:[%s6591_s5 + $0x14] ss:$0 sm:$0xff] }
0x1288   :  { %5641 = vmatprep.subr.mxu0 %v5064_v49  ;;  %5652 = vmatprep.subr.mxu1 %v5060_v60 }
0x1289   :  { %5642 = vmatpush3.msra.mxu0 %v5064_v49  ;;  %5653 = vmatpush3.msra.mxu1 %v5060_v60 }
0x128a   :  { %5643 = vmatprep.subr.mxu0 %v5063_v61  ;;  %5654 = vmatprep.subr.mxu1 %v5059_v62 }
0x128b   :  { %5644 = vmatpush3.msra.mxu0 %v5063_v61  ;;  %5655 = vmatpush3.msra.mxu1 %v5059_v62 }
0x128c   :  { %5670 = vmatprep.subr.mxu1 %v5829_v63  ;;  %5659 = vmatprep.subr.mxu0 %v4599_v37 }
0x1344   :  { %v5625_v2 = vpop.f32.mrf.mxu0  ;;  %v5636_v3 = vpop.f32.mrf.mxu1 }
0x1345   :  { %v4280_v4 = vadd.f32 %v5625_v2, %v5116_v0  ;;  %v4363_v5 = vadd.f32 %v5636_v3, %v5119_v1 }
0x1346   :  { %v4274_v6 = vpop.f32.mrf.mxu0  ;;  %v4357_v7 = vpop.f32.mrf.mxu1 }
0x1347   :  { %v4275_v8 = vadd.f32 %v5116_v0, %v4274_v6  ;;  %v4358_v9 = vadd.f32 %v5119_v1, %v4357_v7  ;;  %v4284_v14 = vmax.f32 %v4280_v4, 0.0  ;;  %v4367_v15 = vmax.f32 %v4363_v5, 0.0  ;;  %v5128_v0 = vld [vmem:[%s6591_s5 + $0x15] ss:$0 sm:$0xff]  ;;  %v5129_v4 = vld [vmem:[%s6593_s7] ss:$0 sm:$0xff] }
0x1349   :  { %v4283_v11 = vmax.f32 %v4275_v8, 0.0  ;;  %v4366_v12 = vmax.f32 %v4358_v9, 0.0 }
0x134b   :  { %5645 = vmatprep.mubr.msk.f32.mxu0 %vm127_vm1, %v4366_v12  ;;  %5656 = vmatprep.mubr.msk.f32.mxu1 %vm127_vm1, %v4283_v11 }
0x134c   :  { %5646 = vmatmul.mubr.msk.f32.vlgmr.msra.gmra.mxu0 %vm127_vm1, %v4367_v15  ;;  %5657 = vmatmul.mubr.msk.f32.vlgmr.msra.gmra.mxu1 %vm127_vm1, %v4284_v14 }
0x134d   :  { %5672 = vmatprep.mubr.msk.f32.mxu1 %vm5830_vm6, %v5829_v63  ;;  %5660 = vmatpush3.msra.mxu0 %v4599_v37 }
0x134e   :  { %5661 = vmatprep.subr.mxu0 %v4598_v38 }
0x134f   :  { %5662 = vmatpush3.msra.mxu0 %v4598_v38 }
0x1350   :  { %5663 = vmatprep.subr.mxu0 %v4597_v39 }
0x1351   :  { %5664 = vmatpush3.msra.mxu0 %v4597_v39 }
0x1352   :  { %5665 = vmatprep.subr.mxu0 %v4596_v40 }
0x1353   :  { %5666 = vmatpush3.msra.mxu0 %v4596_v40  ;;  %v5134_v40 = vld [vmem:[%s6593_s7 + $0x1] ss:$0 sm:$0xff] }
0x1354   :  { %5675 = vmatprep.subr.mxu0 %v5829_v63 }
0x140c   :  { %v5647_v16 = vpop.f32.mrf.mxu0  ;;  %v5658_v18 = vpop.f32.mrf.mxu1 }
0x140d   :  { %v4527_v19 = vadd.f32 %v5658_v18, %v5647_v16 }
0x140e   :  { %v4440_v20 = vpop.f32.mrf.mxu0  ;;  %v4521_v21 = vpop.f32.mrf.mxu1 }
0x140f   :  { %v4537_v34 = vadd.f32 %v5126_v17, %v4527_v19  ;;  %v4522_v33 = vadd.f32 %v4521_v21, %v4440_v20 }
0x1411   :  { %v4536_v22 = vadd.f32 %v5126_v17, %v4522_v33  ;;  %v4539_v13 = vadd.f32 %v4537_v34, %v4195_v54 }
0x1413   :  { %v4543_v23 = vsel %vm127_vm1, %v4539_v13, 0.0  ;;  %v4538_v24 = vadd.f32 %v4536_v22, %v6484_v50  ;;  %v5137_v22 = vld [vmem:[%s6593_s7 + $0x4] sm:$0x1] }
0x1414   :  { %4544 = vadd.xlane.f32.xlu1 %v4543_v23 }
0x1415   :  { %v4540_v25 = vsel %vm127_vm1, %v4538_v24, 0.0 }
0x1416   :  { %4541 = vadd.xlane.f32.xlu0 %v4540_v25 }
0x149d   :  { %v4545_v26 = vpop.xlane.xlu1 %4544 }
0x149e   :  { %v4547_v27 = vmul.f32 0.03125, %v4545_v26 }
0x149f   :  { %v4542_v28 = vpop.xlane.xlu0 %4541 }
0x14a0   :  { %v4549_v29 = vsub.f32 %v4539_v13, %v4547_v27  ;;  %v4546_v30 = vmul.f32 0.03125, %v4542_v28  ;;  %v5837_v13 = vmov 0  }
0x14a1   :  { %5690 = vset.pattern.permute.xlu0 %v5837_v13 }
0x14a2   :  { %v4548_v31 = vsub.f32 %v4538_v24, %v4546_v30  ;;  %v4551_v46 = vmul.f32 %v4549_v29, %v4549_v29  ;;  %v4567_v49 = vmul.f32 %v5127_v10, %v4549_v29 }
0x14a4   :  { %v4555_v32 = vsel %vm127_vm1, %v4551_v46, 0.0  ;;  %v4550_v35 = vmul.f32 %v4548_v31, %v4548_v31  ;;  %v4566_v60 = vmul.f32 %v5127_v10, %v4548_v31 }
0x14a5   :  { %4556 = vadd.xlane.f32.xlu1 %v4555_v32 }
0x14a6   :  { %v4552_v36 = vsel %vm127_vm1, %v4550_v35, 0.0 }
0x14a7   :  { %4553 = vadd.xlane.f32.xlu0 %v4552_v36 }
0x152e   :  { %v4557_v41 = vpop.xlane.xlu1 %4556 }
0x152f   :  { %v4559_v42 = vmul.f32 0.03125, %v4557_v41 }
0x1530   :  { %v4554_v43 = vpop.xlane.xlu0 %4553 }
0x1531   :  { %v4569_v44 = vadd.f32 1e-05, %v4559_v42  ;;  %v4558_v45 = vmul.f32 0.03125, %v4554_v43  ;;  %v5135_v43 = vld [vmem:[%s6593_s7 + $0x2] ss:$0 sm:$0xff] }
0x1533   :  { %5787 = vrsqrt.f32 %v4569_v44  ;;  %v4568_v59 = vadd.f32 1e-05, %v4558_v45  ;;  %vm4579_vm10 = vcmp.eq.f32.partialorder %v4569_v44, inf  ;;  %v4582_v48 = vand.u32 2147483648, %v4569_v44 }
0x1534   :  { %vm4581_vm11 = vcmp.eq.f32.partialorder %v4569_v44, 0.0 }
0x1535   :  { %5789 = vrsqrt.f32 %v4568_v59  ;;  %vm4572_vm12 = vcmp.eq.f32.partialorder %v4568_v59, inf  ;;  %v4575_v54 = vand.u32 2147483648, %v4568_v59  ;;  %vm4574_vm13 = vcmp.eq.f32.partialorder %v4568_v59, 0.0 }
0x1540   :  { %v5788_v55 = vpop.eup %5787 }
0x1541   :  { %v4578_v47 = vmul.f32 %v5788_v55, %v4569_v44 }
0x1542   :  { %v5790_v50 = vpop.eup %5789 }
0x1543   :  { %v4580_v51 = vsel %vm4579_vm10, %v4569_v44, %v4578_v47  ;;  %v4571_v53 = vmul.f32 %v5790_v50, %v4568_v59 }
0x1544   :  { %v4583_v52 = vsel %vm4581_vm11, %v4582_v48, %v4580_v51  ;;  %v5136_v48 = vld [vmem:[%s6593_s7 + $0x3] sm:$0x1]  ;;  %v4761_v51 = vlaneseq  ;;  %s5838_s7 = smov [#allocation3]  }
0x1545   :  { %5791 = vrcp.f32 %v4583_v52  ;;  %v4573_v56 = vsel %vm4572_vm12, %v4568_v59, %v4571_v53  ;;  %s4931_s25 = sshll.u32 %s5838_s7, 4  ;;  %s4932_s25 = int_to_ptr.vmem [resolvable:$true] %s4931_s25 }
0x1546   :  { %v4576_v57 = vsel %vm4574_vm13, %v4575_v54, %v4573_v56  ;;  %v4762_v52 = vshrl.u32 %v4761_v51, 7  ;;  %s5807_s9 = scalar_lea.vmem %s4932_s25, 32  ;;  %p5812_p1 = scmp.lt.s32.totalorder %s4932_s25, %s4932_s25 }
0x1547   :  { %5793 = vrcp.f32 %v4576_v57  ;;  %p5808_p0 = scmp.ne.s32.totalorder %s4932_s25, %s5807_s9  ;;  %p5813_p2 = scmp.lt.s32.totalorder %s5807_s9, %s5807_s9 }
0x1548   :  { %v4763_v53 = vsub.s32 0, %v4762_v52 }
0x1549   :  { %p5814_p3 = por %p5813_p2, %p5812_p1 }
0x154b   :  { %p5815_p4 = pnand %p5814_p3, %p5808_p0 }
0x1552   :  { %v5792_v58 = vpop.eup %5791 }
0x1553   :  { %v4587_v62 = vmul.f32 %v5792_v58, %v4567_v49 }
0x1554   :  { %v5794_v61 = vpop.eup %5793 }
0x1555   :  { %v4585_v1 = vmul.f32 %v5794_v61, %v4566_v60  ;;  %v4595_v3 = vadd.f32 %v5128_v0, %v4587_v62 }
0x1557   :  { %v4594_v2 = vadd.f32 %v5128_v0, %v4585_v1 }
0x1559   :  { %5667 = vmatprep.mubr.msk.f32.mxu0 %vm127_vm1, %v4594_v2 }
0x155a   :  { %5668 = vmatmul.mubr.msk.f32.vlgmr.msra.gmra.mxu0 %vm127_vm1, %v4595_v3 }
0x155b   :  { %5677 = vmatprep.mubr.msk.f32.mxu0 %vm5830_vm6, %v5829_v63 }
0x161a   :  { %v5669_v5 = vpop.f32.mrf.mxu0 }
0x161b   :  { %v4685_v6 = vadd.f32 %v5669_v5, %v5129_v4 }
0x161c   :  { %v4679_v7 = vpop.f32.mrf.mxu0 }
0x161d   :  { %v4689_v8 = vmax.f32 %v4685_v6, 0.0  ;;  %v4680_v9 = vadd.f32 %v5129_v4, %v4679_v7 }
0x161f   :  { %v4688_v11 = vmax.f32 %v4680_v9, 0.0  ;;  %v4697_v12 = vsel %vm41_vm0, %v4689_v8, 0.0 }
0x1620   :  { %4698 = vadd.xlane.f32.xlu1 %v4697_v12 }
0x1621   :  { %v4694_v14 = vsel %vm41_vm0, %v4688_v11, 0.0 }
0x1622   :  { %4695 = vadd.xlane.f32.xlu0 %v4694_v14 }
0x16a9   :  { %v4699_v15 = vpop.xlane.xlu1 %4698 }
0x16aa   :  { %v4702_v16 = vmul.f32 0.0625, %v4699_v15 }
0x16ab   :  { %v4696_v17 = vpop.xlane.xlu0 %4695 }
0x16ac   :  { %v4704_v63 = vsub.f32 %v4689_v8, %v4702_v16  ;;  %v4701_v18 = vmul.f32 0.0625, %v4696_v17 }
0x16ae   :  { %v4703_v19 = vsub.f32 %v4688_v11, %v4701_v18  ;;  %v4706_v20 = vmul.f32 %v4704_v63, %v4704_v63  ;;  %v4723_v41 = vmul.f32 %v5134_v40, %v4704_v63 }
0x16b0   :  { %v4710_v21 = vsel %vm41_vm0, %v4706_v20, 0.0  ;;  %v4705_v34 = vmul.f32 %v4703_v19, %v4703_v19  ;;  %v4722_v45 = vmul.f32 %v5134_v40, %v4703_v19 }
0x16b1   :  { %4711 = vadd.xlane.f32.xlu1 %v4710_v21 }
0x16b2   :  { %v4707_v33 = vsel %vm41_vm0, %v4705_v34, 0.0 }
0x16b3   :  { %4708 = vadd.xlane.f32.xlu0 %v4707_v33 }
0x16c9   :  { %4758 = vperm.xlu0 %5690, %v5137_v22  }
0x173a   :  { %v4712_v23 = vpop.xlane.xlu1 %4711 }
0x173b   :  { %v4715_v24 = vmul.f32 0.06666667, %v4712_v23 }
0x173c   :  { %v4709_v25 = vpop.xlane.xlu0 %4708 }
0x173d   :  { %5795 = vrsqrt.f32 %v4715_v24  ;;  %v4714_v26 = vmul.f32 0.06666667, %v4709_v25  ;;  %vm4733_vm1 = vcmp.eq.f32.partialorder %v4715_v24, inf  ;;  %v4736_v29 = vand.u32 2147483648, %v4715_v24 }
0x173e   :  { %vm4735_vm6 = vcmp.eq.f32.partialorder %v4715_v24, 0.0 }
0x173f   :  { %5797 = vrsqrt.f32 %v4714_v26  ;;  %vm4726_vm14 = vcmp.eq.f32.partialorder %v4714_v26, inf  ;;  %v4729_v36 = vand.u32 2147483648, %v4714_v26  ;;  %vm4728_vm15 = vcmp.eq.f32.partialorder %v4714_v26, 0.0 }
0x1744   :  { %v4759_v54 = vpop.permute.xlu0 %4758 }
0x1745   :  { %v4764_v56 = vrot.slane %v4759_v54, %v4763_v53 }
0x174a   :  { %v5796_v27 = vpop.eup %5795 }
0x174b   :  { %v4732_v28 = vmul.f32 %v5796_v27, %v4715_v24 }
0x174c   :  { %v5798_v30 = vpop.eup %5797 }
0x174d   :  { %v4734_v31 = vsel %vm4733_vm1, %v4715_v24, %v4732_v28  ;;  %v4725_v32 = vmul.f32 %v5798_v30, %v4714_v26 }
0x174e   :  { %v4737_v46 = vsel %vm4735_vm6, %v4736_v29, %v4734_v31 }
0x174f   :  { %v4739_v35 = vadd.f32 1e-06, %v4737_v46  ;;  %v4727_v37 = vsel %vm4726_vm14, %v4714_v26, %v4725_v32 }
0x1750   :  { %v4730_v38 = vsel %vm4728_vm15, %v4729_v36, %v4727_v37 }
0x1751   :  { %5799 = vrcp.f32 %v4739_v35  ;;  %v4738_v39 = vadd.f32 1e-06, %v4730_v38 }
0x1753   :  { %5801 = vrcp.f32 %v4738_v39 }
0x175e   :  { %v5800_v42 = vpop.eup %5799 }
0x175f   :  { %v4743_v44 = vmul.f32 %v5800_v42, %v4723_v41 }
0x1760   :  { %v5802_v59 = vpop.eup %5801 }
0x1761   :  { %v4751_v55 = vadd.f32 %v5135_v43, %v4743_v44  ;;  %v4741_v47 = vmul.f32 %v5802_v59, %v4722_v45 }
0x1763   :  { %5676 = vmatpush3.xpose.msk.msra.mxu0 %vm41_vm0, %v4751_v55  ;;  %v4750_v50 = vadd.f32 %v5135_v43, %v4741_v47 }
0x1765   :  { %5671 = vmatpush3.xpose.msk.msra.mxu1 %vm41_vm0, %v4750_v50 }
0x1766   :  { %5678 = vmatmul.mubr.msk.f32.vlgmr.msra.gmra.mxu0 %vm41_vm0, %v5136_v48 }
0x1768   :  { %5673 = vmatmul.mubr.msk.f32.vlgmr.msra.gmra.mxu1 %vm41_vm0, %v5136_v48 }
0x1826   :  { %v4916_v57 = vpop.f32.mrf.mxu0 }
0x1827   :  { %v4917_v10 = vadd.f32 %v4916_v57, %v4764_v56 }
0x1828   :  { %v5679_v58 = vpop.f32.mrf.mxu0  ;;  %v4837_v60 = vpop.f32.mrf.mxu1 }
0x1829   :  { %v4920_v49 = vmul.f32 0.5, %v4917_v10  ;;  %v4838_v61 = vadd.f32 %v4837_v60, %v4764_v56 }
0x182a   :  { %v5674_v62 = vpop.f32.mrf.mxu1 }
0x182b   :  { %5803 = vtanh.f32 %v4920_v49  ;;  %v4841_v0 = vmul.f32 0.5, %v4838_v61 }
0x182d   :  { %5805 = vtanh.f32 %v4841_v0 }
0x1838   :  { %v5804_v1 = vpop.eup %5803 }
0x1839   :  { %v4922_v2 = vadd.f32 1.0, %v5804_v1 }
0x183a   :  { %v5806_v3 = vpop.eup %5805 }
0x183b   :  { %v4923_v4 = vmul.f32 0.5, %v4922_v2  ;;  %v4843_v5 = vadd.f32 1.0, %v5806_v3 }
0x183d   :  { %4924 = vst.msk [vmem:[#allocation3 + $0x1] sm:$0x1] %vm4845_vm2, %v4923_v4  ;;  %v4844_v6 = vmul.f32 0.5, %v4843_v5 }
0x183f   :  { %4846 = vst.msk [vmem:[#allocation3] sm:$0x1] %vm4845_vm2, %v4844_v6 }
0x1840   :  { %5818 = shalt.err (!%p5815_p4)
}
0x1841   :  { %4934 = dma.vmem_to_hbm [thread:$0]  %s4932_s25, 32, %s6594_s8, [#allocation4]  }
0x1842   :  { %5827 = dma.done.wait [#allocation4], 32  }
0x1843   :  { %5828 = vsyncadd [#allocation4], 4294967264 }
0x1844   :  { %4938 = vsyncpa [#allocation4], 1 }

</bundles_post_ra>
